<compile_context>
chip_gen: v7x
topology: tpu7x:2x2x1
jax: 0.10.0
libtpu: 0.0.40
codegen_flags: <defaults>
</compile_context>

<pallas_src>
import functools

import numpy as np
import jax
import jax.numpy as jnp
from jax.experimental import pallas as pl
from jax.experimental.pallas import tpu as pltpu

SHIFT_N = 8


def _requant_shift(mul_f32, shift_n):
    """tb_module_1x1 / tb_module_3x3_dw ordering: int(mul + 2^(n-1)) >> n (round const added in float)."""
    mul_i = (mul_f32 + float(2 ** (shift_n - 1))).astype(jnp.int32)
    return jnp.right_shift(mul_i, shift_n).astype(jnp.float32)


# ---------------------------------------------------------------------------
# Fused kernel: 1x1 expand -> 3x3 depthwise -> 1x1 project (+ residual)
# One grid step == one image (H*W rows).  All intermediates stay in VMEM.
# ---------------------------------------------------------------------------
def fused_block_kernel(x_ref, w0_ref, s0_ref, bs0_ref,
                       w1_ref, s1_ref, bs1_ref,
                       w2_ref, s2_ref, bs2_ref, ids_ref,
                       o_ref, *, shift_n, H, W, use_residual):
    rshift_i = 2 ** (shift_n - 1)
    HW = H * W

    x = x_ref[...]                                                   # (HW, Cin) bf16

    # ---- Stage 1: 1x1 expand + requant + clamp + ReLU -------------------------------
    p1 = jnp.dot(x, w0_ref[...], preferred_element_type=jnp.float32)  # (HW, Cm) f32 (MXU)
    y1 = _requant_shift(p1 * s0_ref[...] + bs0_ref[...], shift_n)
    y1 = jnp.maximum(jnp.clip(y1, -127.0, 127.0), 0.0)

    # ---- Stage 2: 3x3 depthwise (zero 'same' padding) + requant + clamp + ReLU ------
    Cm = y1.shape[-1]
    yh = y1.reshape(H, W, Cm)                                        # lane dim = Cm
    w1 = w1_ref[...]                                                 # (9, Cm) f32

    def wtap(k):  # (1,1,Cm) broadcastable channelwise weight for tap k = ky*3 + kx
        return w1[k:k + 1, :].reshape(1, 1, Cm)

    zrow = jnp.zeros((1, W, Cm), jnp.float32)
    y_rows = (jnp.concatenate([zrow, yh[:H - 1]], axis=0),           # y[h-1]  (ky=0)
              yh,                                                    # y[h]    (ky=1)
              jnp.concatenate([yh[1:], zrow], axis=0))               # y[h+1]  (ky=2)

    # Column sums per kx (separable over ky): only the 3 column-sums need W shifts.
    col = []
    for kx in range(3):
        t = (y_rows[0] * wtap(0 + kx)
             + y_rows[1] * wtap(3 + kx)
             + y_rows[2] * wtap(6 + kx))
        col.append(t)

    zcol = jnp.zeros((H, 1, Cm), jnp.float32)
    left = jnp.concatenate([zcol, col[0][:, :W - 1, :]], axis=1)     # tap x-1 (kx=0), zero at x=0
    right = jnp.concatenate([col[2][:, 1:, :], zcol], axis=1)        # tap x+1 (kx=2), zero at x=W-1
    p2 = (left + col[1] + right).reshape(HW, Cm)

    y2 = _requant_shift(p2 * s1_ref[...] + bs1_ref[...], shift_n)
    y2 = jnp.maximum(jnp.clip(y2, -127.0, 127.0), 0.0)               # values in [0,127] -> exact bf16

    # ---- Stage 3: 1x1 project + requant (+ scaled-identity residual) + clamp --------
    p3 = jnp.dot(y2.astype(jnp.bfloat16), w2_ref[...],
                 preferred_element_type=jnp.float32)                 # (HW, Cout) f32 (MXU)
    if use_residual:
        # tb_module_1x1_residual ordering: int-cast BEFORE adding the round constant.
        m3 = (p3 * s2_ref[...] + bs2_ref[...]).astype(jnp.int32) + rshift_i
        m3 = jnp.right_shift(m3, shift_n)
        ident = (ids_ref[...] * x.astype(jnp.float32)).astype(jnp.int32) + rshift_i
        ident = jnp.right_shift(ident, shift_n)
        out = jnp.clip((m3 + ident).astype(jnp.float32), -127.0, 127.0)
    else:
        out = jnp.clip(_requant_shift(p3 * s2_ref[...] + bs2_ref[...], shift_n), -127.0, 127.0)

    o_ref[...] = out.astype(o_ref.dtype)


# ---------------------------------------------------------------------------
# Wrapper: one fused pallas_call over the batch dimension
# ---------------------------------------------------------------------------
def tb_block_forward(x_feat, params, *, N, H, W, shift_n=SHIFT_N, use_residual=True):
    """x_feat: (N*H*W, C_in) integer-valued float32 point features (dense grid, row-major)."""
    M, C_in = x_feat.shape
    HW = H * W
    assert M == N * HW
    C_mid = params["w0"].shape[1]
    C_out = params["w2"].shape[1]
    if use_residual:
        assert C_out == C_in

    f32 = jnp.float32
    # bf16 storage for activations & matmul weights (exact for int8-range integers); f32 accumulation.
    x_bf = x_feat.astype(jnp.bfloat16)
    w0 = params["w0"].astype(jnp.bfloat16)
    w2 = params["w2"].astype(jnp.bfloat16)
    w1 = params["w1"].astype(f32)
    s0 = params["s0"].reshape(1, C_mid).astype(f32)
    bs0 = (params["b0"] * params["s0"]).reshape(1, C_mid).astype(f32)   # bias folded into scale
    s1 = params["s1"].reshape(1, C_mid).astype(f32)
    bs1 = (params["b1"] * params["s1"]).reshape(1, C_mid).astype(f32)
    s2 = params["s2"].reshape(1, C_out).astype(f32)
    bs2 = (params["b2"] * params["s2"]).reshape(1, C_out).astype(f32)
    ids = params["id_scale"].reshape(1, C_out).astype(f32)

    kernel = functools.partial(fused_block_kernel, shift_n=shift_n, H=H, W=W,
                               use_residual=use_residual)

    out_bf = pl.pallas_call(
        kernel,
        out_shape=jax.ShapeDtypeStruct((M, C_out), jnp.bfloat16),
        grid=(N,),
        in_specs=[
            pl.BlockSpec((HW, C_in), lambda n: (n, 0)),      # x (also the residual identity)
            pl.BlockSpec((C_in, C_mid), lambda n: (0, 0)),   # w0
            pl.BlockSpec((1, C_mid), lambda n: (0, 0)),      # s0
            pl.BlockSpec((1, C_mid), lambda n: (0, 0)),      # b0*s0
            pl.BlockSpec((9, C_mid), lambda n: (0, 0)),      # w1 (depthwise taps)
            pl.BlockSpec((1, C_mid), lambda n: (0, 0)),      # s1
            pl.BlockSpec((1, C_mid), lambda n: (0, 0)),      # b1*s1
            pl.BlockSpec((C_mid, C_out), lambda n: (0, 0)),  # w2
            pl.BlockSpec((1, C_out), lambda n: (0, 0)),      # s2
            pl.BlockSpec((1, C_out), lambda n: (0, 0)),      # b2*s2
            pl.BlockSpec((1, C_out), lambda n: (0, 0)),      # id_scale
        ],
        out_specs=pl.BlockSpec((HW, C_out), lambda n: (n, 0)),
        compiler_params=pltpu.CompilerParams(dimension_semantics=("parallel",)),
    )(x_bf, w0, s0, bs0, w1, s1, bs1, w2, s2, bs2, ids)

    return out_bf.astype(jnp.float32)


# ---------------------------------------------------------------------------
# Pure-JAX reference (mirrors the PyTorch integer semantics) for validation
# ---------------------------------------------------------------------------
def ref_block(x_feat, params, *, N, H, W, shift_n=SHIFT_N):
    rshift = 2 ** (shift_n - 1)

    def requant(psum, b, s, relu):
        mul = (psum + b) * s + rshift
        sh = jnp.right_shift(mul.astype(jnp.int32), shift_n).astype(jnp.float32)
        out = jnp.clip(sh, -127.0, 127.0)
        return jnp.maximum(out, 0.0) if relu else out

    y1 = requant(x_feat @ params["w0"], params["b0"], params["s0"], True)
    Cm = y1.shape[1]
    yp = jnp.pad(y1.reshape(N, H, W, Cm), ((0, 0), (1, 1), (1, 1), (0, 0)))
    acc = jnp.zeros((N, H, W, Cm), jnp.float32)
    for ky in range(3):
        for kx in range(3):
            acc = acc + yp[:, ky:ky + H, kx:kx + W, :] * params["w1"][ky * 3 + kx]
    y2 = requant(acc.reshape(N * H * W, Cm), params["b1"], params["s1"], True)

    mul = ((y2 @ params["w2"] + params["b2"]) * params["s2"]).astype(jnp.int32) + rshift
    mul = jnp.right_shift(mul, shift_n)
    ident = (params["id_scale"] * x_feat).astype(jnp.int32) + rshift
    ident = jnp.right_shift(ident, shift_n)
    return jnp.clip((mul + ident).astype(jnp.float32), -127.0, 127.0)


if __name__ == "__main__":
    key = jax.random.PRNGKey(0)
    N, H, W = 2, 16, 16
    C_in, C_mid = 32, 128        # inverted-residual: expand 4x (lane-dense mid stage), project back
    M = N * H * W

    ks = jax.random.split(key, 11)
    # Integer-valued float inputs / weights (quantized int8-style values).
    x = jax.random.randint(ks[0], (M, C_in), -10, 11).astype(jnp.float32)
    params = {
        "w0": jax.random.randint(ks[1], (C_in, C_mid), -3, 4).astype(jnp.float32),
        "b0": jax.random.randint(ks[2], (C_mid,), -50, 51).astype(jnp.float32),
        "s0": jax.random.randint(ks[3], (C_mid,), 1, 31).astype(jnp.float32),
        "w1": jax.random.randint(ks[4], (9, C_mid), -3, 4).astype(jnp.float32),
        "b1": jax.random.randint(ks[5], (C_mid,), -50, 51).astype(jnp.float32),
        "s1": jax.random.randint(ks[6], (C_mid,), 1, 31).astype(jnp.float32),
        "w2": jax.random.randint(ks[7], (C_mid, C_in), -3, 4).astype(jnp.float32),
        "b2": jax.random.randint(ks[8], (C_in,), -50, 51).astype(jnp.float32),
        "s2": jax.random.randint(ks[9], (C_in,), 1, 31).astype(jnp.float32),
        "id_scale": jax.random.randint(ks[10], (C_in,), 1, 6).astype(jnp.float32),
    }

    out = tb_block_forward(x, params, N=N, H=H, W=W, shift_n=SHIFT_N, use_residual=True)
    out = jax.block_until_ready(out)

    ref = jax.block_until_ready(ref_block(x, params, N=N, H=H, W=W, shift_n=SHIFT_N))
    np.testing.assert_array_equal(np.asarray(out), np.asarray(ref))
    print("KERNEL_OK")
</pallas_src>

<mosaic_0001>
module attributes {stable_mosaic.version = 11 : i64} {
  func.func @fused_block_kernel(%arg0: i32, %arg1: memref<256x32xbf16, #tpu.memory_space<vmem>>, %arg2: memref<32x128xbf16, #tpu.memory_space<vmem>>, %arg3: memref<1x128xf32, #tpu.memory_space<vmem>>, %arg4: memref<1x128xf32, #tpu.memory_space<vmem>>, %arg5: memref<9x128xf32, #tpu.memory_space<vmem>>, %arg6: memref<1x128xf32, #tpu.memory_space<vmem>>, %arg7: memref<1x128xf32, #tpu.memory_space<vmem>>, %arg8: memref<128x32xbf16, #tpu.memory_space<vmem>>, %arg9: memref<1x32xf32, #tpu.memory_space<vmem>>, %arg10: memref<1x32xf32, #tpu.memory_space<vmem>>, %arg11: memref<1x32xf32, #tpu.memory_space<vmem>>, %arg12: memref<256x32xbf16, #tpu.memory_space<vmem>>) attributes {dimension_semantics = [#tpu.dimension_semantics<parallel>], iteration_bounds = array<i64: 2>, scalar_prefetch = 0 : i64, scratch_operands = 0 : i64, tpu.core_type = #tpu.core_type<tc>, window_params = [{transform_indices = @transform_0, window_bounds = array<i64: 256, 32>}, {pipeline_mode = #tpu.pipeline_mode<synchronous>, transform_indices = @transform_1, window_bounds = array<i64: 32, 128>}, {pipeline_mode = #tpu.pipeline_mode<synchronous>, transform_indices = @transform_2, window_bounds = array<i64: 1, 128>}, {pipeline_mode = #tpu.pipeline_mode<synchronous>, transform_indices = @transform_3, window_bounds = array<i64: 1, 128>}, {pipeline_mode = #tpu.pipeline_mode<synchronous>, transform_indices = @transform_4, window_bounds = array<i64: 9, 128>}, {pipeline_mode = #tpu.pipeline_mode<synchronous>, transform_indices = @transform_5, window_bounds = array<i64: 1, 128>}, {pipeline_mode = #tpu.pipeline_mode<synchronous>, transform_indices = @transform_6, window_bounds = array<i64: 1, 128>}, {pipeline_mode = #tpu.pipeline_mode<synchronous>, transform_indices = @transform_7, window_bounds = array<i64: 128, 32>}, {pipeline_mode = #tpu.pipeline_mode<synchronous>, transform_indices = @transform_8, window_bounds = array<i64: 1, 32>}, {pipeline_mode = #tpu.pipeline_mode<synchronous>, transform_indices = @transform_9, window_bounds = array<i64: 1, 32>}, {pipeline_mode = #tpu.pipeline_mode<synchronous>, transform_indices = @transform_10, window_bounds = array<i64: 1, 32>}, {transform_indices = @transform_11, window_bounds = array<i64: 256, 32>}]} {
    %c0 = arith.constant 0 : index
    %c0_0 = arith.constant 0 : index
    %0 = vector.load %arg1[%c0, %c0_0] : memref<256x32xbf16, #tpu.memory_space<vmem>>, vector<256x32xbf16>
    %c0_1 = arith.constant 0 : index
    %c0_2 = arith.constant 0 : index
    %1 = vector.load %arg2[%c0_1, %c0_2] : memref<32x128xbf16, #tpu.memory_space<vmem>>, vector<32x128xbf16>
    %cst = arith.constant dense<0.000000e+00> : vector<256x128xf32>
    %2 = tpu.matmul %0, %1, %cst {dimension_numbers = #tpu.dot_dimension_numbers<[1], [0], [0], [1], [0, 0, 1, 1], [], []>} : vector<256x32xbf16>, vector<32x128xbf16>, vector<256x128xf32> -> vector<256x128xf32>
    %c0_3 = arith.constant 0 : index
    %c0_4 = arith.constant 0 : index
    %3 = vector.load %arg3[%c0_3, %c0_4] : memref<1x128xf32, #tpu.memory_space<vmem>>, vector<1x128xf32>
    %4 = vector.broadcast %3 : vector<1x128xf32> to vector<256x128xf32>
    %5 = arith.mulf %2, %4 : vector<256x128xf32>
    %c0_5 = arith.constant 0 : index
    %c0_6 = arith.constant 0 : index
    %6 = vector.load %arg4[%c0_5, %c0_6] : memref<1x128xf32, #tpu.memory_space<vmem>>, vector<1x128xf32>
    %7 = vector.broadcast %6 : vector<1x128xf32> to vector<256x128xf32>
    %8 = arith.addf %5, %7 : vector<256x128xf32>
    %cst_7 = arith.constant 1.280000e+02 : f32
    %9 = vector.broadcast %cst_7 : f32 to vector<256x128xf32>
    %10 = arith.addf %8, %9 : vector<256x128xf32>
    %11 = arith.fptosi %10 : vector<256x128xf32> to vector<256x128xi32>
    %c8_i32 = arith.constant 8 : i32
    %12 = vector.broadcast %c8_i32 : i32 to vector<256x128xi32>
    %13 = arith.shrsi %11, %12 : vector<256x128xi32>
    %14 = arith.sitofp %13 : vector<256x128xi32> to vector<256x128xf32>
    %cst_8 = arith.constant -1.270000e+02 : f32
    %cst_9 = arith.constant 1.270000e+02 : f32
    %15 = vector.broadcast %cst_8 : f32 to vector<256x128xf32>
    %16 = arith.maximumf %15, %14 : vector<256x128xf32>
    %17 = vector.broadcast %cst_9 : f32 to vector<256x128xf32>
    %18 = arith.minimumf %17, %16 : vector<256x128xf32>
    %cst_10 = arith.constant 0.000000e+00 : f32
    %19 = vector.broadcast %cst_10 : f32 to vector<256x128xf32>
    %20 = arith.maximumf %18, %19 : vector<256x128xf32>
    %21 = vector.shape_cast %20 : vector<256x128xf32> to vector<16x16x128xf32>
    %c0_11 = arith.constant 0 : index
    %c0_12 = arith.constant 0 : index
    %22 = vector.load %arg5[%c0_11, %c0_12] : memref<9x128xf32, #tpu.memory_space<vmem>>, vector<9x128xf32>
    %cst_13 = arith.constant 0.000000e+00 : f32
    %23 = vector.broadcast %cst_13 : f32 to vector<1x16x128xf32>
    %24 = vector.extract_strided_slice %21 {offsets = [0, 0, 0], sizes = [15, 16, 128], strides = [1, 1, 1]} : vector<16x16x128xf32> to vector<15x16x128xf32>
    %25 = tpu.concatenate %23, %24 in 0 : vector<1x16x128xf32>, vector<15x16x128xf32> -> vector<16x16x128xf32>
    %26 = vector.extract_strided_slice %21 {offsets = [1, 0, 0], sizes = [15, 16, 128], strides = [1, 1, 1]} : vector<16x16x128xf32> to vector<15x16x128xf32>
    %27 = tpu.concatenate %26, %23 in 0 : vector<15x16x128xf32>, vector<1x16x128xf32> -> vector<16x16x128xf32>
    %28 = vector.extract_strided_slice %22 {offsets = [0, 0], sizes = [1, 128], strides = [1, 1]} : vector<9x128xf32> to vector<1x128xf32>
    %29 = vector.shape_cast %28 : vector<1x128xf32> to vector<1x1x128xf32>
    %30 = vector.broadcast %29 : vector<1x1x128xf32> to vector<16x16x128xf32>
    %31 = arith.mulf %25, %30 : vector<16x16x128xf32>
    %32 = vector.extract_strided_slice %22 {offsets = [3, 0], sizes = [1, 128], strides = [1, 1]} : vector<9x128xf32> to vector<1x128xf32>
    %33 = vector.shape_cast %32 : vector<1x128xf32> to vector<1x1x128xf32>
    %34 = vector.broadcast %33 : vector<1x1x128xf32> to vector<16x16x128xf32>
    %35 = arith.mulf %21, %34 : vector<16x16x128xf32>
    %36 = arith.addf %31, %35 : vector<16x16x128xf32>
    %37 = vector.extract_strided_slice %22 {offsets = [6, 0], sizes = [1, 128], strides = [1, 1]} : vector<9x128xf32> to vector<1x128xf32>
    %38 = vector.shape_cast %37 : vector<1x128xf32> to vector<1x1x128xf32>
    %39 = vector.broadcast %38 : vector<1x1x128xf32> to vector<16x16x128xf32>
    %40 = arith.mulf %27, %39 : vector<16x16x128xf32>
    %41 = arith.addf %36, %40 : vector<16x16x128xf32>
    %42 = vector.extract_strided_slice %22 {offsets = [1, 0], sizes = [1, 128], strides = [1, 1]} : vector<9x128xf32> to vector<1x128xf32>
    %43 = vector.shape_cast %42 : vector<1x128xf32> to vector<1x1x128xf32>
    %44 = vector.broadcast %43 : vector<1x1x128xf32> to vector<16x16x128xf32>
    %45 = arith.mulf %25, %44 : vector<16x16x128xf32>
    %46 = vector.extract_strided_slice %22 {offsets = [4, 0], sizes = [1, 128], strides = [1, 1]} : vector<9x128xf32> to vector<1x128xf32>
    %47 = vector.shape_cast %46 : vector<1x128xf32> to vector<1x1x128xf32>
    %48 = vector.broadcast %47 : vector<1x1x128xf32> to vector<16x16x128xf32>
    %49 = arith.mulf %21, %48 : vector<16x16x128xf32>
    %50 = arith.addf %45, %49 : vector<16x16x128xf32>
    %51 = vector.extract_strided_slice %22 {offsets = [7, 0], sizes = [1, 128], strides = [1, 1]} : vector<9x128xf32> to vector<1x128xf32>
    %52 = vector.shape_cast %51 : vector<1x128xf32> to vector<1x1x128xf32>
    %53 = vector.broadcast %52 : vector<1x1x128xf32> to vector<16x16x128xf32>
    %54 = arith.mulf %27, %53 : vector<16x16x128xf32>
    %55 = arith.addf %50, %54 : vector<16x16x128xf32>
    %56 = vector.extract_strided_slice %22 {offsets = [2, 0], sizes = [1, 128], strides = [1, 1]} : vector<9x128xf32> to vector<1x128xf32>
    %57 = vector.shape_cast %56 : vector<1x128xf32> to vector<1x1x128xf32>
    %58 = vector.broadcast %57 : vector<1x1x128xf32> to vector<16x16x128xf32>
    %59 = arith.mulf %25, %58 : vector<16x16x128xf32>
    %60 = vector.extract_strided_slice %22 {offsets = [5, 0], sizes = [1, 128], strides = [1, 1]} : vector<9x128xf32> to vector<1x128xf32>
    %61 = vector.shape_cast %60 : vector<1x128xf32> to vector<1x1x128xf32>
    %62 = vector.broadcast %61 : vector<1x1x128xf32> to vector<16x16x128xf32>
    %63 = arith.mulf %21, %62 : vector<16x16x128xf32>
    %64 = arith.addf %59, %63 : vector<16x16x128xf32>
    %65 = vector.extract_strided_slice %22 {offsets = [8, 0], sizes = [1, 128], strides = [1, 1]} : vector<9x128xf32> to vector<1x128xf32>
    %66 = vector.shape_cast %65 : vector<1x128xf32> to vector<1x1x128xf32>
    %67 = vector.broadcast %66 : vector<1x1x128xf32> to vector<16x16x128xf32>
    %68 = arith.mulf %27, %67 : vector<16x16x128xf32>
    %69 = arith.addf %64, %68 : vector<16x16x128xf32>
    %cst_14 = arith.constant 0.000000e+00 : f32
    %70 = vector.broadcast %cst_14 : f32 to vector<16x1x128xf32>
    %71 = vector.extract_strided_slice %41 {offsets = [0, 0, 0], sizes = [16, 15, 128], strides = [1, 1, 1]} : vector<16x16x128xf32> to vector<16x15x128xf32>
    %72 = tpu.concatenate %70, %71 in 1 : vector<16x1x128xf32>, vector<16x15x128xf32> -> vector<16x16x128xf32>
    %73 = vector.extract_strided_slice %69 {offsets = [0, 1, 0], sizes = [16, 15, 128], strides = [1, 1, 1]} : vector<16x16x128xf32> to vector<16x15x128xf32>
    %74 = tpu.concatenate %73, %70 in 1 : vector<16x15x128xf32>, vector<16x1x128xf32> -> vector<16x16x128xf32>
    %75 = arith.addf %72, %55 : vector<16x16x128xf32>
    %76 = arith.addf %75, %74 : vector<16x16x128xf32>
    %77 = vector.shape_cast %76 : vector<16x16x128xf32> to vector<256x128xf32>
    %c0_15 = arith.constant 0 : index
    %c0_16 = arith.constant 0 : index
    %78 = vector.load %arg6[%c0_15, %c0_16] : memref<1x128xf32, #tpu.memory_space<vmem>>, vector<1x128xf32>
    %79 = vector.broadcast %78 : vector<1x128xf32> to vector<256x128xf32>
    %80 = arith.mulf %77, %79 : vector<256x128xf32>
    %c0_17 = arith.constant 0 : index
    %c0_18 = arith.constant 0 : index
    %81 = vector.load %arg7[%c0_17, %c0_18] : memref<1x128xf32, #tpu.memory_space<vmem>>, vector<1x128xf32>
    %82 = vector.broadcast %81 : vector<1x128xf32> to vector<256x128xf32>
    %83 = arith.addf %80, %82 : vector<256x128xf32>
    %cst_19 = arith.constant 1.280000e+02 : f32
    %84 = vector.broadcast %cst_19 : f32 to vector<256x128xf32>
    %85 = arith.addf %83, %84 : vector<256x128xf32>
    %86 = arith.fptosi %85 : vector<256x128xf32> to vector<256x128xi32>
    %c8_i32_20 = arith.constant 8 : i32
    %87 = vector.broadcast %c8_i32_20 : i32 to vector<256x128xi32>
    %88 = arith.shrsi %86, %87 : vector<256x128xi32>
    %89 = arith.sitofp %88 : vector<256x128xi32> to vector<256x128xf32>
    %cst_21 = arith.constant -1.270000e+02 : f32
    %cst_22 = arith.constant 1.270000e+02 : f32
    %90 = vector.broadcast %cst_21 : f32 to vector<256x128xf32>
    %91 = arith.maximumf %90, %89 : vector<256x128xf32>
    %92 = vector.broadcast %cst_22 : f32 to vector<256x128xf32>
    %93 = arith.minimumf %92, %91 : vector<256x128xf32>
    %cst_23 = arith.constant 0.000000e+00 : f32
    %94 = vector.broadcast %cst_23 : f32 to vector<256x128xf32>
    %95 = arith.maximumf %93, %94 : vector<256x128xf32>
    %96 = arith.truncf %95 : vector<256x128xf32> to vector<256x128xbf16>
    %c0_24 = arith.constant 0 : index
    %c0_25 = arith.constant 0 : index
    %97 = vector.load %arg8[%c0_24, %c0_25] : memref<128x32xbf16, #tpu.memory_space<vmem>>, vector<128x32xbf16>
    %cst_26 = arith.constant dense<0.000000e+00> : vector<256x32xf32>
    %98 = tpu.matmul %96, %97, %cst_26 {dimension_numbers = #tpu.dot_dimension_numbers<[1], [0], [0], [1], [0, 0, 1, 1], [], []>} : vector<256x128xbf16>, vector<128x32xbf16>, vector<256x32xf32> -> vector<256x32xf32>
    %c0_27 = arith.constant 0 : index
    %c0_28 = arith.constant 0 : index
    %99 = vector.load %arg9[%c0_27, %c0_28] : memref<1x32xf32, #tpu.memory_space<vmem>>, vector<1x32xf32>
    %100 = vector.broadcast %99 : vector<1x32xf32> to vector<256x32xf32>
    %101 = arith.mulf %98, %100 : vector<256x32xf32>
    %c0_29 = arith.constant 0 : index
    %c0_30 = arith.constant 0 : index
    %102 = vector.load %arg10[%c0_29, %c0_30] : memref<1x32xf32, #tpu.memory_space<vmem>>, vector<1x32xf32>
    %103 = vector.broadcast %102 : vector<1x32xf32> to vector<256x32xf32>
    %104 = arith.addf %101, %103 : vector<256x32xf32>
    %105 = arith.fptosi %104 : vector<256x32xf32> to vector<256x32xi32>
    %c128_i32 = arith.constant 128 : i32
    %106 = vector.broadcast %c128_i32 : i32 to vector<256x32xi32>
    %107 = arith.addi %105, %106 : vector<256x32xi32>
    %c8_i32_31 = arith.constant 8 : i32
    %108 = vector.broadcast %c8_i32_31 : i32 to vector<256x32xi32>
    %109 = arith.shrsi %107, %108 : vector<256x32xi32>
    %c0_32 = arith.constant 0 : index
    %c0_33 = arith.constant 0 : index
    %110 = vector.load %arg11[%c0_32, %c0_33] : memref<1x32xf32, #tpu.memory_space<vmem>>, vector<1x32xf32>
    %111 = arith.extf %0 : vector<256x32xbf16> to vector<256x32xf32>
    %112 = vector.broadcast %110 : vector<1x32xf32> to vector<256x32xf32>
    %113 = arith.mulf %112, %111 : vector<256x32xf32>
    %114 = arith.fptosi %113 : vector<256x32xf32> to vector<256x32xi32>
    %c128_i32_34 = arith.constant 128 : i32
    %115 = vector.broadcast %c128_i32_34 : i32 to vector<256x32xi32>
    %116 = arith.addi %114, %115 : vector<256x32xi32>
    %c8_i32_35 = arith.constant 8 : i32
    %117 = vector.broadcast %c8_i32_35 : i32 to vector<256x32xi32>
    %118 = arith.shrsi %116, %117 : vector<256x32xi32>
    %119 = arith.addi %109, %118 : vector<256x32xi32>
    %120 = arith.sitofp %119 : vector<256x32xi32> to vector<256x32xf32>
    %cst_36 = arith.constant -1.270000e+02 : f32
    %cst_37 = arith.constant 1.270000e+02 : f32
    %121 = vector.broadcast %cst_36 : f32 to vector<256x32xf32>
    %122 = arith.maximumf %121, %120 : vector<256x32xf32>
    %123 = vector.broadcast %cst_37 : f32 to vector<256x32xf32>
    %124 = arith.minimumf %123, %122 : vector<256x32xf32>
    %125 = arith.truncf %124 : vector<256x32xf32> to vector<256x32xbf16>
    %c0_38 = arith.constant 0 : index
    %c0_39 = arith.constant 0 : index
    %126 = vector.load %arg12[%c0_38, %c0_39] : memref<256x32xbf16, #tpu.memory_space<vmem>>, vector<256x32xbf16>
    tpu.vector_store %arg12[%c0_38, %c0_39], %125 {strides = array<i32>} : memref<256x32xbf16, #tpu.memory_space<vmem>>, vector<256x32xbf16>,
    return
  }
  func.func @transform_0(%arg0: i32) -> (i32, i32) {
    %c0_i32 = arith.constant 0 : i32
    %c0_i32_0 = arith.constant 0 : i32
    return %arg0, %c0_i32 : i32, i32
  }
  func.func @transform_1(%arg0: i32) -> (i32, i32) {
    %c0_i32 = arith.constant 0 : i32
    %c0_i32_0 = arith.constant 0 : i32
    %c0_i32_1 = arith.constant 0 : i32
    return %c0_i32, %c0_i32_0 : i32, i32
  }
  func.func @transform_2(%arg0: i32) -> (i32, i32) {
    %c0_i32 = arith.constant 0 : i32
    %c0_i32_0 = arith.constant 0 : i32
    %c0_i32_1 = arith.constant 0 : i32
    return %c0_i32, %c0_i32_0 : i32, i32
  }
  func.func @transform_3(%arg0: i32) -> (i32, i32) {
    %c0_i32 = arith.constant 0 : i32
    %c0_i32_0 = arith.constant 0 : i32
    %c0_i32_1 = arith.constant 0 : i32
    return %c0_i32, %c0_i32_0 : i32, i32
  }
  func.func @transform_4(%arg0: i32) -> (i32, i32) {
    %c0_i32 = arith.constant 0 : i32
    %c0_i32_0 = arith.constant 0 : i32
    %c0_i32_1 = arith.constant 0 : i32
    return %c0_i32, %c0_i32_0 : i32, i32
  }
  func.func @transform_5(%arg0: i32) -> (i32, i32) {
    %c0_i32 = arith.constant 0 : i32
    %c0_i32_0 = arith.constant 0 : i32
    %c0_i32_1 = arith.constant 0 : i32
    return %c0_i32, %c0_i32_0 : i32, i32
  }
  func.func @transform_6(%arg0: i32) -> (i32, i32) {
    %c0_i32 = arith.constant 0 : i32
    %c0_i32_0 = arith.constant 0 : i32
    %c0_i32_1 = arith.constant 0 : i32
    return %c0_i32, %c0_i32_0 : i32, i32
  }
  func.func @transform_7(%arg0: i32) -> (i32, i32) {
    %c0_i32 = arith.constant 0 : i32
    %c0_i32_0 = arith.constant 0 : i32
    %c0_i32_1 = arith.constant 0 : i32
    return %c0_i32, %c0_i32_0 : i32, i32
  }
  func.func @transform_8(%arg0: i32) -> (i32, i32) {
    %c0_i32 = arith.constant 0 : i32
    %c0_i32_0 = arith.constant 0 : i32
    %c0_i32_1 = arith.constant 0 : i32
    return %c0_i32, %c0_i32_0 : i32, i32
  }
  func.func @transform_9(%arg0: i32) -> (i32, i32) {
    %c0_i32 = arith.constant 0 : i32
    %c0_i32_0 = arith.constant 0 : i32
    %c0_i32_1 = arith.constant 0 : i32
    return %c0_i32, %c0_i32_0 : i32, i32
  }
  func.func @transform_10(%arg0: i32) -> (i32, i32) {
    %c0_i32 = arith.constant 0 : i32
    %c0_i32_0 = arith.constant 0 : i32
    %c0_i32_1 = arith.constant 0 : i32
    return %c0_i32, %c0_i32_0 : i32, i32
  }
  func.func @transform_11(%arg0: i32) -> (i32, i32) {
    %c0_i32 = arith.constant 0 : i32
    %c0_i32_0 = arith.constant 0 : i32
    return %arg0, %c0_i32 : i32, i32
  }
}

</mosaic_0001>

<bundles_post_ra>
// kernel: tpu_custom_call.1
= control target key start
LH: loop header
LB: loop body
LE: loop exit
PB: predicated region body
PF: predicated region fallthrough
CT: control target
= control target key end

     0   :  { %s3853_s17 = smov 0   ;;  %s5052_s0 = inlined_call_operand.vmem [shape: bf16[512,32], index: 0, kind: input, shape index: {}]   ;;  %s5053_s1 = inlined_call_operand.vmem [shape: bf16[32,128], index: 1, kind: input, shape index: {}]   ;;  %s5054_s2 = inlined_call_operand.vmem [shape: f32[1,128], index: 2, kind: input, shape index: {}]   ;;  %s5055_s3 = inlined_call_operand.vmem [shape: f32[1,128], index: 3, kind: input, shape index: {}]   ;;  %s5056_s4 = inlined_call_operand.vmem [shape: f32[9,128], index: 4, kind: input, shape index: {}]   ;;  %s5057_s5 = inlined_call_operand.vmem [shape: f32[1,128], index: 5, kind: input, shape index: {}]   ;;  %s5058_s6 = inlined_call_operand.vmem [shape: f32[1,128], index: 6, kind: input, shape index: {}]   ;;  %s5059_s7 = inlined_call_operand.vmem [shape: bf16[128,32], index: 7, kind: input, shape index: {}]   ;;  %s5060_s8 = inlined_call_operand.vmem [shape: f32[1,32], index: 8, kind: input, shape index: {}]   ;;  %s5061_s9 = inlined_call_operand.vmem [shape: f32[1,32], index: 9, kind: input, shape index: {}]   ;;  %s5062_s10 = inlined_call_operand.vmem [shape: f32[1,32], index: 10, kind: input, shape index: {}]   ;;  %s5063_s11 = inlined_call_operand.vmem [shape: bf16[512,32], index: 11, kind: output, shape index: {}]  }
   0x1 LB: > { %s3094_s18 = sadd.s32 4294967295, %s3791_s17   ;;  %p3098_p0 = scmp.ge.s32.totalorder %s3791_s17, 1  ;;  %s3791_s17 = sphi %s3853_s17, %s21_s17  }
   0x2   : > { %p338_p1 = scmp.lt.s32.totalorder %s3791_s17, 3 }
   0x4   : > { %p339_p2 = pnand %p3098_p0, %p338_p1 }
   0x6   : > { %342 = sbr.rel (%p339_p2) target bundleno = 806 (0x326), region = 64 }
   0xd   : > { %v3721_v0 = vld [vmem:[%s5053_s1] sm:$0xff]   ;;  %s3099_s21 = sshll.u32 %s3094_s18, 5  ;;  %v3722_v1 = vld [vmem:[%s5053_s1 + $0x8] sm:$0xff]   ;;  %vm519_vm0 = vcmask 261120   ;;  %v3741_v20 = vld [vmem:[%s5059_s7 + $0x10] sm:$0xff]   ;;  %v1033_v26 = vlaneseq  ;;  %vm1575_vm1 = vcmask 1040384  }
   0xe   : > { %p379_p3 = scmp.lt.s32.totalorder %s3099_s21, 63  ;;  %3357 = vmatprep.subr.bf16.mxu0 %v3721_v0  ;;  %v3739_v18 = vld [vmem:[%s5059_s7] sm:$0xff]   ;;  %v3740_v19 = vld [vmem:[%s5059_s7 + $0x8] sm:$0xff]   ;;  %v3742_v21 = vld [vmem:[%s5059_s7 + $0x18] sm:$0xff]   ;;  %vm1704_vm2 = vcmask 1046528   ;;  %vm3005_vm3 = vcmask 257024  }
   0xf   : > { %3358 = vmatpush3.bf16.msra.mxu0 %v3721_v0  ;;  %3441 = vmatprep.subr.bf16.mxu1 %v3739_v18  ;;  %v3743_v22 = vld [vmem:[%s5059_s7 + $0x20] sm:$0xff]   ;;  %v3744_v23 = vld [vmem:[%s5059_s7 + $0x28] sm:$0xff]   ;;  %v3745_v24 = vld [vmem:[%s5059_s7 + $0x30] sm:$0xff]   ;;  %v1034_v27 = vshrl.u32 %v1033_v26, 7 }
  0x10   : > { %s5083_s21 = smov (!%p379_p3, %s3099_s21), 63  ;;  %3359 = vmatprep.subr.bf16.mxu0 %v3722_v1  ;;  %3449 = vmatpush3.bf16.msra.mxu1 %v3739_v18  ;;  %v3746_v25 = vld [vmem:[%s5059_s7 + $0x38] sm:$0xff]   ;;  %v3936_v28 = vld [vmem:[%s5054_s2] ss:$0 sm:$0xff] }
  0x11   : > { %s3100_s24 = sshll.u32 %s5083_s21, 2  ;;  %3442 = vmatprep.subr.bf16.mxu1 %v3740_v19  ;;  %v1035_v29 = vsub.s32 0, %v1034_v27  ;;  %v3941_v31 = vld [vmem:[%s5055_s3] ss:$0 sm:$0xff]  ;;  %v1070_v35 = vsub.s32 3, %v1034_v27  ;;  %v1205_v36 = vsub.s32 1, %v1034_v27 }
  0x12   : > { %s3875_s27 = scalar_lea.vmem %s5052_s0, %s3100_s24  ;;  %v1031_v32 = vld [vmem:[%s5056_s4] sm:$0xff]  ;;  %v1240_v38 = vsub.s32 4, %v1034_v27  ;;  %v1375_v39 = vsub.s32 2, %v1034_v27  ;;  %v1410_v43 = vsub.s32 5, %v1034_v27  ;;  %v1138_v48 = vsub.s32 6, %v1034_v27  ;;  %s4888_s23 = scalar_lea.vmem %s5063_s11, %s3100_s24 }
  0x13   : > { %3360 = vmatpush3.bf16.msra.mxu0 %v3722_v1  ;;  %v391_v2 = vld [vmem:[%s3875_s27] sm:$0xff]   ;;  %v393_v3 = vld [vmem:[%s3875_s27 + $0x8] sm:$0xff]   ;;  %v395_v4 = vld [vmem:[%s3875_s27 + $0x10] sm:$0xff]   ;;  %v3949_v42 = vrot.slane %v1031_v32, %v1035_v29  ;;  %v1308_v49 = vsub.s32 7, %v1034_v27  ;;  %v3954_v51 = vrot.slane %v1031_v32, %v1070_v35  ;;  %v3956_v52 = vrot.slane %v1031_v32, %v1205_v36 }
  0x14   : > { %3361 = vmatprep.mubr.msk.bf16.mxu0 %vm519_vm0, %v391_v2  ;;  %v397_v5 = vld [vmem:[%s3875_s27 + $0x18] sm:$0xff]   ;;  %v399_v6 = vld [vmem:[%s3875_s27 + $0x20] sm:$0xff]   ;;  %v401_v7 = vld [vmem:[%s3875_s27 + $0x28] sm:$0xff]   ;;  %3393 = vmatprep.subr.bf16.mxu0 %v3739_v18  ;;  %v3959_v55 = vrot.slane %v1031_v32, %v1240_v38  ;;  %v3961_v56 = vrot.slane %v1031_v32, %v1375_v39  ;;  %v3964_v59 = vrot.slane %v1031_v32, %v1410_v43 }
  0x15   : > { %v403_v8 = vld [vmem:[%s3875_s27 + $0x30] sm:$0xff]   ;;  %v405_v9 = vld [vmem:[%s3875_s27 + $0x38] sm:$0xff]   ;;  %v407_v10 = vld [vmem:[%s3875_s27 + $0x40] sm:$0xff]   ;;  %3450 = vmatpush3.bf16.msra.mxu1 %v3740_v19  ;;  %v3967_v61 = vmul.f32 0.0, %v3949_v42  ;;  %v3969_v1 = vrot.slane %v1031_v32, %v1138_v48  ;;  %v3971_v2 = vrot.slane %v1031_v32, %v1308_v49 }
  0x16   : > { %3362 = vmatmul.mubr.msk.bf16.vlgmr.msra.gmra.mrb[0].mxu0 %vm519_vm0, %v393_v3  ;;  %v409_v11 = vld [vmem:[%s3875_s27 + $0x48] sm:$0xff]   ;;  %v411_v12 = vld [vmem:[%s3875_s27 + $0x50] sm:$0xff]   ;;  %v413_v13 = vld [vmem:[%s3875_s27 + $0x58] sm:$0xff]   ;;  %3443 = vmatprep.subr.bf16.mxu1 %v3741_v20 }
  0x17   : > { %3365 = vmatprep.mubr.msk.bf16.mxu0 %vm519_vm0, %v395_v4  ;;  %v415_v14 = vld [vmem:[%s3875_s27 + $0x60] sm:$0xff]   ;;  %v417_v15 = vld [vmem:[%s3875_s27 + $0x68] sm:$0xff]   ;;  %v419_v16 = vld [vmem:[%s3875_s27 + $0x70] sm:$0xff]   ;;  %3394 = vmatpush3.bf16.msra.mxu0 %v3739_v18 }
  0x18   : > { %v421_v17 = vld [vmem:[%s3875_s27 + $0x78] sm:$0xff]   ;;  %3395 = vmatprep.subr.bf16.mxu0 %v3740_v19 }
  0x19   : > { %3451 = vmatpush3.bf16.msra.mxu1 %v3741_v20 }
  0x1a   : > { %3444 = vmatprep.subr.bf16.mxu1 %v3742_v21 }
  0x1b   : > { %3396 = vmatpush3.bf16.msra.mxu0 %v3740_v19 }
  0x1c   : > { %3397 = vmatprep.subr.bf16.mxu0 %v3741_v20 }
  0x1d   : > { %3452 = vmatpush3.bf16.msra.mxu1 %v3742_v21 }
  0x1e   : > { %3366 = vmatmul.mubr.msk.bf16.gmra.mrb[4].mxu0 %vm519_vm0, %v397_v5  ;;  %3445 = vmatprep.subr.bf16.mxu1 %v3743_v22 }
  0x1f   : > { %3369 = vmatprep.mubr.msk.bf16.mxu0 %vm519_vm0, %v399_v6  ;;  %3398 = vmatpush3.bf16.msra.mxu0 %v3741_v20 }
  0x20   : > { %3399 = vmatprep.subr.bf16.mxu0 %v3742_v21 }
  0x21   : > { %3453 = vmatpush3.bf16.msra.mxu1 %v3743_v22 }
  0x22   : > { %3446 = vmatprep.subr.bf16.mxu1 %v3744_v23 }
  0x23   : > { %3400 = vmatpush3.bf16.msra.mxu0 %v3742_v21 }
  0x24   : > { %3401 = vmatprep.subr.bf16.mxu0 %v3743_v22 }
  0x25   : > { %3454 = vmatpush3.bf16.msra.mxu1 %v3744_v23 }
  0x26   : > { %3370 = vmatmul.mubr.msk.bf16.gmra.mrb[8].mxu0 %vm519_vm0, %v401_v7  ;;  %3447 = vmatprep.subr.bf16.mxu1 %v3745_v24  ;;  %v3975_v7 = vmul.f32 0.0, %v3956_v52 }
  0x27   : > { %3373 = vmatprep.mubr.msk.bf16.mxu0 %vm519_vm0, %v403_v8  ;;  %3402 = vmatpush3.bf16.msra.mxu0 %v3743_v22 }
  0x28   : > { %3403 = vmatprep.subr.bf16.mxu0 %v3744_v23 }
  0x29   : > { %3455 = vmatpush3.bf16.msra.mxu1 %v3745_v24 }
  0x2a   : > { %3448 = vmatprep.subr.bf16.mxu1 %v3746_v25 }
  0x2b   : > { %3404 = vmatpush3.bf16.msra.mxu0 %v3744_v23 }
  0x2c   : > { %3405 = vmatprep.subr.bf16.mxu0 %v3745_v24 }
  0x2d   : > { %3456 = vmatpush3.bf16.msra.mxu1 %v3746_v25 }
  0x2e   : > { %3374 = vmatmul.mubr.msk.bf16.gmra.mrb[12].mxu0 %vm519_vm0, %v405_v9 }
  0x2f   : > { %3377 = vmatprep.mubr.msk.bf16.mxu0 %vm519_vm0, %v407_v10  ;;  %3406 = vmatpush3.bf16.msra.mxu0 %v3745_v24 }
  0x30   : > { %3407 = vmatprep.subr.bf16.mxu0 %v3746_v25 }
  0x33   : > { %3408 = vmatpush3.bf16.msra.mxu0 %v3746_v25 }
  0x36   : > { %3378 = vmatmul.mubr.msk.bf16.gmra.mrb[16].mxu0 %vm519_vm0, %v409_v11 }
  0x37   : > { %3381 = vmatprep.mubr.msk.bf16.mxu0 %vm519_vm0, %v411_v12  ;;  %v3979_v12 = vmul.f32 0.0, %v3961_v56 }
  0x3e   : > { %3382 = vmatmul.mubr.msk.bf16.gmra.mrb[20].mxu0 %vm519_vm0, %v413_v13 }
  0x3f   : > { %3385 = vmatprep.mubr.msk.bf16.mxu0 %vm519_vm0, %v415_v14 }
  0x46   : > { %3386 = vmatmul.mubr.msk.bf16.gmra.mrb[24].mxu0 %vm519_vm0, %v417_v15 }
  0x47   : > { %3389 = vmatprep.mubr.msk.bf16.mxu0 %vm519_vm0, %v419_v16 }
  0x4e   : > { %3390 = vmatmul.mubr.msk.bf16.gmra.mrb[28].mxu0 %vm519_vm0, %v421_v17 }
  0xe9   : > { %v3363_v30 = vpop.f32.mrb[0].mxu0 }
  0xea   : > { %v738_v33 = vmul.f32 %v3363_v30, %v3936_v28  ;;  %v602_v34 = vpop.f32.mrb[1].mxu0 }
  0xeb   : > { %v736_v37 = vmul.f32 %v3936_v28, %v602_v34  ;;  %v3364_v40 = vpop.f32.mrb[2].mxu0 }
  0xec   : > { %v777_v41 = vadd.f32 %v3941_v31, %v738_v33  ;;  %v739_v44 = vmul.f32 %v3364_v40, %v3936_v28  ;;  %v605_v45 = vpop.f32.mrb[3].mxu0 }
  0xed   : > { %v775_v46 = vadd.f32 %v3941_v31, %v736_v37  ;;  %v737_v47 = vmul.f32 %v3936_v28, %v605_v45 }
  0xee   : > { %v809_v50 = vadd.f32 128.0, %v777_v41  ;;  %v778_v53 = vadd.f32 %v3941_v31, %v739_v44 }
  0xef   : > { %v807_v54 = vadd.f32 128.0, %v775_v46  ;;  %v776_v57 = vadd.f32 %v3941_v31, %v737_v47 }
  0xf0   : > { %v3461_v58 = vtrunc.f32 %v809_v50  ;;  %v810_v60 = vadd.f32 128.0, %v778_v53 }
  0xf1   : > { %v3457_v62 = vtrunc.f32 %v807_v54  ;;  %v808_v63 = vadd.f32 128.0, %v776_v57  ;;  %v3367_v0 = vpop.f32.mrb[4].mxu0 }
  0xf2   : > { %v3462_v3 = vcvt.f32.s32 %v3461_v58  ;;  %v3463_v4 = vtrunc.f32 %v810_v60  ;;  %v742_v5 = vmul.f32 %v3367_v0, %v3936_v28  ;;  %v618_v6 = vpop.f32.mrb[5].mxu0 }
  0xf3   : > { %v3458_v8 = vcvt.f32.s32 %v3457_v62  ;;  %v3459_v9 = vtrunc.f32 %v808_v63  ;;  %v740_v10 = vmul.f32 %v3936_v28, %v618_v6  ;;  %v3368_v11 = vpop.f32.mrb[6].mxu0 }
  0xf4   : > { %v873_v13 = vshra.s32 %v3462_v3, 8  ;;  %v3464_v14 = vcvt.f32.s32 %v3463_v4  ;;  %v781_v15 = vadd.f32 %v3941_v31, %v742_v5  ;;  %v743_v16 = vmul.f32 %v3368_v11, %v3936_v28  ;;  %v621_v17 = vpop.f32.mrb[7].mxu0 }
  0xf5   : > { %v871_v18 = vshra.s32 %v3458_v8, 8  ;;  %v3460_v19 = vcvt.f32.s32 %v3459_v9  ;;  %v779_v20 = vadd.f32 %v3941_v31, %v740_v10  ;;  %v741_v21 = vmul.f32 %v3936_v28, %v621_v17 }
  0xf6   : > { %v905_v22 = vcvt.s32.f32 %v873_v13  ;;  %v874_v23 = vshra.s32 %v3464_v14, 8  ;;  %v813_v24 = vadd.f32 128.0, %v781_v15  ;;  %v782_v25 = vadd.f32 %v3941_v31, %v743_v16 }
  0xf7   : > { %v903_v26 = vcvt.s32.f32 %v871_v18  ;;  %v872_v27 = vshra.s32 %v3460_v19, 8  ;;  %v811_v29 = vadd.f32 128.0, %v779_v20  ;;  %v780_v30 = vadd.f32 %v3941_v31, %v741_v21 }
  0xf8   : > { %v3141_v32 = vclamps-f32 %v905_v22, 127.0  ;;  %v906_v33 = vcvt.s32.f32 %v874_v23  ;;  %v3469_v34 = vtrunc.f32 %v813_v24  ;;  %v814_v35 = vadd.f32 128.0, %v782_v25 }
  0xf9   : > { %v3139_v36 = vclamps-f32 %v903_v26, 127.0  ;;  %v904_v37 = vcvt.s32.f32 %v872_v27  ;;  %v3465_v38 = vtrunc.f32 %v811_v29  ;;  %v812_v39 = vadd.f32 128.0, %v780_v30  ;;  %v3371_v40 = vpop.f32.mrb[8].mxu0 }
  0xfa   : > { %v3987_v41 = vmax.f32 %v3141_v32, 0.0  ;;  %v3142_v43 = vclamps-f32 %v906_v33, 127.0  ;;  %v3470_v44 = vcvt.f32.s32 %v3469_v34  ;;  %v3471_v45 = vtrunc.f32 %v814_v35  ;;  %v634_v46 = vpop.f32.mrb[9].mxu0 }
  0xfb   : > { %v3989_v47 = vmax.f32 %v3139_v36, 0.0  ;;  %v3140_v48 = vclamps-f32 %v904_v37, 127.0  ;;  %v3466_v49 = vcvt.f32.s32 %v3465_v38  ;;  %v3467_v50 = vtrunc.f32 %v812_v39  ;;  %v3372_v53 = vpop.f32.mrb[10].mxu0 }
  0xfc   : > { %v1074_v54 = vmul.f32 %v3954_v51, %v3987_v41  ;;  %v1244_v57 = vmul.f32 %v3959_v55, %v3987_v41  ;;  %v1414_v58 = vmul.f32 %v3964_v59, %v3987_v41  ;;  %v3997_v60 = vmax.f32 %v3142_v43, 0.0  ;;  %v637_v62 = vpop.f32.mrb[11].mxu0 }
  0xfd   : > { %v1038_v63 = vmul.f32 %v3949_v42, %v3989_v47  ;;  %v1208_v0 = vmul.f32 %v3956_v52, %v3989_v47  ;;  %v1378_v3 = vmul.f32 %v3961_v56, %v3989_v47  ;;  %v4005_v4 = vmax.f32 %v3140_v48, 0.0 }
  0xfe   : > { %v1075_v5 = vmul.f32 %v3954_v51, %v3997_v60  ;;  %v1245_v6 = vmul.f32 %v3959_v55, %v3997_v60  ;;  %v1415_v8 = vmul.f32 %v3964_v59, %v3997_v60  ;;  %v877_v9 = vshra.s32 %v3470_v44, 8 }
  0xff   : > { %v4013_v10 = vadd.f32 %v1074_v54, %v1038_v63  ;;  %v4015_v11 = vadd.f32 %v1244_v57, %v1208_v0  ;;  %v4017_v13 = vadd.f32 %v1414_v58, %v1378_v3  ;;  %v1039_v14 = vmul.f32 %v3949_v42, %v4005_v4 }
 0x100   : > { %v4023_v15 = vmul.f32 %v3954_v51, %v4005_v4  ;;  %v1209_v16 = vmul.f32 %v3956_v52, %v4005_v4  ;;  %v1379_v17 = vmul.f32 %v3961_v56, %v4005_v4  ;;  %v909_v18 = vcvt.s32.f32 %v877_v9 }
 0x101   : > { %v4029_v19 = vadd.f32 %v1075_v5, %v1039_v14  ;;  %v875_v20 = vshra.s32 %v3466_v49, 8  ;;  %v3472_v21 = vcvt.f32.s32 %v3471_v45  ;;  %v3468_v22 = vcvt.f32.s32 %v3467_v50  ;;  %v3375_v23 = vpop.f32.mrb[12].mxu0 }
 0x102   : > { %v4031_v24 = vadd.f32 %v1245_v6, %v1209_v16  ;;  %v4033_v25 = vadd.f32 %v1415_v8, %v1379_v17  ;;  %v3145_v26 = vclamps-f32 %v909_v18, 127.0  ;;  %v746_v27 = vmul.f32 %v3371_v40, %v3936_v28  ;;  %v650_v29 = vpop.f32.mrb[13].mxu0 }
 0x103   : > { %v907_v30 = vcvt.s32.f32 %v875_v20  ;;  %v878_v32 = vshra.s32 %v3472_v21, 8  ;;  %v876_v33 = vshra.s32 %v3468_v22, 8  ;;  %v744_v34 = vmul.f32 %v3936_v28, %v634_v46  ;;  %v3376_v35 = vpop.f32.mrb[14].mxu0 }
 0x104   : > { %v4037_v36 = vmax.f32 %v3145_v26, 0.0  ;;  %v785_v37 = vadd.f32 %v3941_v31, %v746_v27  ;;  %v747_v38 = vmul.f32 %v3372_v53, %v3936_v28  ;;  %v745_v39 = vmul.f32 %v3936_v28, %v637_v62  ;;  %v653_v43 = vpop.f32.mrb[15].mxu0 }
 0x105   : > { %v3143_v44 = vclamps-f32 %v907_v30, 127.0  ;;  %v910_v45 = vcvt.s32.f32 %v878_v32  ;;  %v908_v48 = vcvt.s32.f32 %v876_v33  ;;  %v783_v40 = vadd.f32 %v3941_v31, %v744_v34 }
 0x106   : > { %v817_v49 = vadd.f32 128.0, %v785_v37  ;;  %v786_v50 = vadd.f32 %v3941_v31, %v747_v38  ;;  %v784_v46 = vadd.f32 %v3941_v31, %v745_v39  ;;  %v750_v54 = vmul.f32 %v3375_v23, %v3936_v28 }
 0x107   : > { %v4046_v57 = vmax.f32 %v3143_v44, 0.0  ;;  %v3146_v58 = vclamps-f32 %v910_v45, 127.0  ;;  %v3144_v63 = vclamps-f32 %v908_v48, 127.0  ;;  %v815_v53 = vadd.f32 128.0, %v783_v40 }
 0x108   : > { %v3477_v0 = vtrunc.f32 %v817_v49  ;;  %v818_v62 = vadd.f32 128.0, %v786_v50  ;;  %v816_v3 = vadd.f32 128.0, %v784_v46  ;;  %v789_v5 = vadd.f32 %v3941_v31, %v750_v54 }
 0x109   : > { %v4049_v6 = vmax.f32 %v3146_v58, 0.0  ;;  %v4051_v8 = vmax.f32 %v3144_v63, 0.0  ;;  %v3473_v9 = vtrunc.f32 %v815_v53  ;;  %v748_v14 = vmul.f32 %v3936_v28, %v650_v29  ;;  %v3379_v16 = vpop.f32.mrb[16].mxu0 }
 0x10a   : > { %v3478_v17 = vcvt.f32.s32 %v3477_v0  ;;  %v3479_v18 = vtrunc.f32 %v818_v62  ;;  %v3475_v20 = vtrunc.f32 %v816_v3  ;;  %v821_v21 = vadd.f32 128.0, %v789_v5  ;;  %v666_v22 = vpop.f32.mrb[17].mxu0 }
 0x10b   : > { %v3474_v23 = vcvt.f32.s32 %v3473_v9  ;;  %v787_v26 = vadd.f32 %v3941_v31, %v748_v14  ;;  %v751_v27 = vmul.f32 %v3376_v35, %v3936_v28  ;;  %v749_v30 = vmul.f32 %v3936_v28, %v653_v43  ;;  %v3380_v32 = vpop.f32.mrb[18].mxu0 }
 0x10c   : > { %v881_v33 = vshra.s32 %v3478_v17, 8  ;;  %v3480_v34 = vcvt.f32.s32 %v3479_v18  ;;  %v3476_v37 = vcvt.f32.s32 %v3475_v20  ;;  %v3485_v38 = vtrunc.f32 %v821_v21  ;;  %v669_v39 = vpop.f32.mrb[19].mxu0 }
 0x10d   : > { %v879_v29 = vshra.s32 %v3474_v23, 8  ;;  %v819_v44 = vadd.f32 128.0, %v787_v26  ;;  %v790_v45 = vadd.f32 %v3941_v31, %v751_v27  ;;  %v788_v48 = vadd.f32 %v3941_v31, %v749_v30 }
 0x10e   : > { %v913_v40 = vcvt.s32.f32 %v881_v33  ;;  %v882_v49 = vshra.s32 %v3480_v34, 8  ;;  %v880_v50 = vshra.s32 %v3476_v37, 8  ;;  %v3486_v46 = vcvt.f32.s32 %v3485_v38 }
 0x10f   : > { %v911_v54 = vcvt.s32.f32 %v879_v29  ;;  %v3481_v35 = vtrunc.f32 %v819_v44  ;;  %v822_v58 = vadd.f32 128.0, %v790_v45  ;;  %v820_v43 = vadd.f32 128.0, %v788_v48 }
 0x110   : > { %v3149_v63 = vclamps-f32 %v913_v40, 127.0  ;;  %v914_v53 = vcvt.s32.f32 %v882_v49  ;;  %v912_v0 = vcvt.s32.f32 %v880_v50  ;;  %v885_v62 = vshra.s32 %v3486_v46, 8 }
 0x111   : > { %v3147_v3 = vclamps-f32 %v911_v54, 127.0  ;;  %v3482_v5 = vcvt.f32.s32 %v3481_v35  ;;  %v3487_v9 = vtrunc.f32 %v822_v58  ;;  %v3483_v14 = vtrunc.f32 %v820_v43  ;;  %v3383_v17 = vpop.f32.mrb[20].mxu0 }
 0x112   : > { %v4059_v18 = vmax.f32 %v3149_v63, 0.0  ;;  %v3150_v20 = vclamps-f32 %v914_v53, 127.0  ;;  %v3148_v21 = vclamps-f32 %v912_v0, 127.0  ;;  %v917_v23 = vcvt.s32.f32 %v885_v62  ;;  %v682_v26 = vpop.f32.mrb[21].mxu0 }
 0x113   : > { %v4061_v27 = vmax.f32 %v3147_v3, 0.0  ;;  %v883_v30 = vshra.s32 %v3482_v5, 8  ;;  %v3488_v33 = vcvt.f32.s32 %v3487_v9  ;;  %v3484_v34 = vcvt.f32.s32 %v3483_v14  ;;  %v3384_v37 = vpop.f32.mrb[22].mxu0 }
 0x114   : > { %v4063_v38 = vmax.f32 %v3150_v20, 0.0  ;;  %v4065_v29 = vmax.f32 %v3148_v21, 0.0  ;;  %v3153_v44 = vclamps-f32 %v917_v23, 127.0  ;;  %v754_v45 = vmul.f32 %v3379_v16, %v3936_v28  ;;  %v685_v48 = vpop.f32.mrb[23].mxu0 }
 0x115   : > { %v915_v40 = vcvt.s32.f32 %v883_v30  ;;  %v886_v49 = vshra.s32 %v3488_v33, 8  ;;  %v884_v50 = vshra.s32 %v3484_v34, 8  ;;  %v752_v46 = vmul.f32 %v3936_v28, %v666_v22 }
 0x116   : > { %v4069_v54 = vmax.f32 %v3153_v44, 0.0  ;;  %v793_v35 = vadd.f32 %v3941_v31, %v754_v45  ;;  %v755_v58 = vmul.f32 %v3380_v32, %v3936_v28  ;;  %v753_v43 = vmul.f32 %v3936_v28, %v669_v39 }
 0x117   : > { %v3151_v63 = vclamps-f32 %v915_v40, 127.0  ;;  %v918_v53 = vcvt.s32.f32 %v886_v49  ;;  %v916_v0 = vcvt.s32.f32 %v884_v50  ;;  %v791_v62 = vadd.f32 %v3941_v31, %v752_v46 }
 0x118   : > { %5070 = vst [vmem:[#allocation2_spill] sm:$0xff] %v4069_v54  ;;  %v825_v16 = vadd.f32 128.0, %v793_v35  ;;  %v794_v3 = vadd.f32 %v3941_v31, %v755_v58  ;;  %v792_v5 = vadd.f32 %v3941_v31, %v753_v43  ;;  %v758_v22 = vmul.f32 %v3383_v17, %v3936_v28 }
 0x119   : > { %v4078_v9 = vmax.f32 %v3151_v63, 0.0  ;;  %v3154_v14 = vclamps-f32 %v918_v53, 127.0  ;;  %v3152_v20 = vclamps-f32 %v916_v0, 127.0  ;;  %v823_v21 = vadd.f32 128.0, %v791_v62  ;;  %v3387_v32 = vpop.f32.mrb[24].mxu0 }
 0x11a   : > { %v3493_v23 = vtrunc.f32 %v825_v16  ;;  %v826_v39 = vadd.f32 128.0, %v794_v3  ;;  %v824_v30 = vadd.f32 128.0, %v792_v5  ;;  %v797_v33 = vadd.f32 %v3941_v31, %v758_v22  ;;  %v698_v34 = vpop.f32.mrb[25].mxu0 }
 0x11b   : > { %v4081_v44 = vmax.f32 %v3154_v14, 0.0  ;;  %v4083_v45 = vmax.f32 %v3152_v20, 0.0  ;;  %v3489_v40 = vtrunc.f32 %v823_v21  ;;  %v756_v49 = vmul.f32 %v3936_v28, %v682_v26  ;;  %v3388_v17 = vpop.f32.mrb[26].mxu0 }
 0x11c   : > { %v3494_v50 = vcvt.f32.s32 %v3493_v23  ;;  %v3495_v46 = vtrunc.f32 %v826_v39  ;;  %v3491_v35 = vtrunc.f32 %v824_v30  ;;  %v829_v58 = vadd.f32 128.0, %v797_v33  ;;  %v701_v43 = vpop.f32.mrb[27].mxu0 }
 0x11d   : > { %5071 = vst [vmem:[#allocation3_spill] sm:$0xff] %v4081_v44  ;;  %v3490_v63 = vcvt.f32.s32 %v3489_v40  ;;  %v795_v53 = vadd.f32 %v3941_v31, %v756_v49  ;;  %v759_v0 = vmul.f32 %v3384_v37, %v3936_v28  ;;  %v757_v62 = vmul.f32 %v3936_v28, %v685_v48 }
 0x11e   : > { %v889_v16 = vshra.s32 %v3494_v50, 8  ;;  %v3496_v3 = vcvt.f32.s32 %v3495_v46  ;;  %v3492_v5 = vcvt.f32.s32 %v3491_v35  ;;  %v3501_v22 = vtrunc.f32 %v829_v58 }
 0x11f   : > { %v887_v14 = vshra.s32 %v3490_v63, 8  ;;  %v827_v20 = vadd.f32 128.0, %v795_v53  ;;  %v798_v26 = vadd.f32 %v3941_v31, %v759_v0  ;;  %v796_v21 = vadd.f32 %v3941_v31, %v757_v62 }
 0x120   : > { %v921_v23 = vcvt.s32.f32 %v889_v16  ;;  %v890_v39 = vshra.s32 %v3496_v3, 8  ;;  %v888_v30 = vshra.s32 %v3492_v5, 8  ;;  %v3502_v33 = vcvt.f32.s32 %v3501_v22 }
 0x121   : > { %v919_v40 = vcvt.s32.f32 %v887_v14  ;;  %v3497_v49 = vtrunc.f32 %v827_v20  ;;  %v830_v44 = vadd.f32 128.0, %v798_v26  ;;  %v828_v37 = vadd.f32 128.0, %v796_v21  ;;  %v4091_v54 = vpop.f32.mrb[28].mxu0 }
 0x122   : > { %v3157_v48 = vclamps-f32 %v921_v23, 127.0  ;;  %v922_v50 = vcvt.s32.f32 %v890_v39  ;;  %v920_v46 = vcvt.s32.f32 %v888_v30  ;;  %v893_v35 = vshra.s32 %v3502_v33, 8  ;;  %v4093_v58 = vpop.f32.mrb[29].mxu0 }
 0x123   : > { %v3155_v63 = vclamps-f32 %v919_v40, 127.0  ;;  %v3498_v53 = vcvt.f32.s32 %v3497_v49  ;;  %v3503_v0 = vtrunc.f32 %v830_v44  ;;  %v3499_v62 = vtrunc.f32 %v828_v37  ;;  %v4095_v16 = vpop.f32.mrb[30].mxu0 }
 0x124   : > { %v4097_v3 = vmax.f32 %v3157_v48, 0.0  ;;  %v3158_v5 = vclamps-f32 %v922_v50, 127.0  ;;  %v3156_v22 = vclamps-f32 %v920_v46, 127.0  ;;  %v925_v14 = vcvt.s32.f32 %v893_v35  ;;  %v4099_v20 = vpop.f32.mrb[31].mxu0 }
 0x125   : > { %v4101_v26 = vmax.f32 %v3155_v63, 0.0  ;;  %v891_v21 = vshra.s32 %v3498_v53, 8  ;;  %v3504_v23 = vcvt.f32.s32 %v3503_v0  ;;  %v3500_v39 = vcvt.f32.s32 %v3499_v62 }
 0x126   : > { %v4103_v30 = vmax.f32 %v3158_v5, 0.0  ;;  %v4105_v33 = vmax.f32 %v3156_v22, 0.0  ;;  %v3161_v44 = vclamps-f32 %v925_v14, 127.0  ;;  %v762_v40 = vmul.f32 %v3387_v32, %v3936_v28 }
 0x127   : > { %v923_v49 = vcvt.s32.f32 %v891_v21  ;;  %v894_v37 = vshra.s32 %v3504_v23, 8  ;;  %v892_v48 = vshra.s32 %v3500_v39, 8  ;;  %v760_v50 = vmul.f32 %v3936_v28, %v698_v34 }
 0x128   : > { %v4109_v46 = vmax.f32 %v3161_v44, 0.0  ;;  %v801_v35 = vadd.f32 %v3941_v31, %v762_v40  ;;  %v763_v63 = vmul.f32 %v3388_v17, %v3936_v28  ;;  %v761_v53 = vmul.f32 %v3936_v28, %v701_v43 }
 0x129   : > { %v3159_v0 = vclamps-f32 %v923_v49, 127.0  ;;  %v926_v62 = vcvt.s32.f32 %v894_v37  ;;  %v924_v5 = vcvt.s32.f32 %v892_v48  ;;  %v799_v22 = vadd.f32 %v3941_v31, %v760_v50 }
 0x12a   : > { %5072 = vst [vmem:[#allocation4_spill] sm:$0xff] %v4109_v46  ;;  %v833_v14 = vadd.f32 128.0, %v801_v35  ;;  %v802_v32 = vadd.f32 %v3941_v31, %v763_v63  ;;  %v800_v21 = vadd.f32 %v3941_v31, %v761_v53  ;;  %v1072_v34 = vmul.f32 %v3954_v51, %v3989_v47 }
 0x12b   : > { %v4119_v23 = vmax.f32 %v3159_v0, 0.0  ;;  %v3162_v39 = vclamps-f32 %v926_v62, 127.0  ;;  %v3160_v44 = vclamps-f32 %v924_v5, 127.0  ;;  %v831_v17 = vadd.f32 128.0, %v799_v22 }
 0x12c   : > { %v3509_v40 = vtrunc.f32 %v833_v14  ;;  %v834_v43 = vadd.f32 128.0, %v802_v32  ;;  %v832_v49 = vadd.f32 128.0, %v800_v21  ;;  %v1104_v37 = vadd.f32 %v1072_v34, %v3967_v61 }
 0x12d   : > { %5073 = vst [vmem:[#allocation5_spill] sm:$0xff] %v4119_v23  ;;  %v4122_v48 = vmax.f32 %v3162_v39, 0.0  ;;  %v4124_v50 = vmax.f32 %v3160_v44, 0.0  ;;  %v3505_v35 = vtrunc.f32 %v831_v17  ;;  %v1105_v63 = vadd.f32 %v4023_v15, %v3967_v61 }
 0x12e   : > { %v3510_v53 = vcvt.f32.s32 %v3509_v40  ;;  %v3511_v46 = vtrunc.f32 %v834_v43  ;;  %v3507_v0 = vtrunc.f32 %v832_v49  ;;  %v1140_v62 = vmul.f32 %v3969_v1, %v3987_v41 }
 0x12f   : > { %5074 = vst [vmem:[#allocation6_spill] sm:$0xff] %v4122_v48  ;;  %5075 = vst [vmem:[#allocation7_spill] sm:$0xff] %v4124_v50  ;;  %v3506_v5 = vcvt.f32.s32 %v3505_v35  ;;  %v1141_v22 = vmul.f32 %v3969_v1, %v3997_v60  ;;  %v1242_v14 = vmul.f32 %v3959_v55, %v3989_v47  ;;  %v1243_v32 = vmul.f32 %v3959_v55, %v4005_v4 }
 0x130   : > { %v897_v21 = vshra.s32 %v3510_v53, 8  ;;  %v3512_v34 = vcvt.f32.s32 %v3511_v46  ;;  %v3508_v61 = vcvt.f32.s32 %v3507_v0  ;;  %v1171_v15 = vadd.f32 %v1140_v62, %v1104_v37  ;;  %v4143_v46 = vld [vmem:[%s5056_s4 + $0x8] ss:$0 sm:$0xff] }
 0x131   : > { %v895_v39 = vshra.s32 %v3506_v5, 8  ;;  %v1172_v44 = vadd.f32 %v1141_v22, %v1105_v63  ;;  %v1274_v17 = vadd.f32 %v1242_v14, %v3975_v7  ;;  %v1275_v40 = vadd.f32 %v1243_v32, %v3975_v7 }
 0x132   : > { %v929_v43 = vcvt.s32.f32 %v897_v21  ;;  %v898_v49 = vshra.s32 %v3512_v34, 8  ;;  %v896_v35 = vshra.s32 %v3508_v61, 8  ;;  %v1310_v48 = vmul.f32 %v3971_v2, %v3987_v41 }
 0x133   : > { %v927_v50 = vcvt.s32.f32 %v895_v39  ;;  %v1311_v37 = vmul.f32 %v3971_v2, %v3997_v60  ;;  %v1412_v63 = vmul.f32 %v3964_v59, %v3989_v47  ;;  %v1413_v7 = vmul.f32 %v3964_v59, %v4005_v4 }
 0x134   : > { %v3165_v53 = vclamps-f32 %v929_v43, 127.0  ;;  %v930_v0 = vcvt.s32.f32 %v898_v49  ;;  %v928_v62 = vcvt.s32.f32 %v896_v35  ;;  %v1341_v5 = vadd.f32 %v1310_v48, %v1274_v17 }
 0x135   : > { %v3163_v22 = vclamps-f32 %v927_v50, 127.0  ;;  %v1342_v14 = vadd.f32 %v1311_v37, %v1275_v40  ;;  %v1444_v32 = vadd.f32 %v1412_v63, %v3979_v12  ;;  %v1445_v21 = vadd.f32 %v1413_v7, %v3979_v12 }
 0x136   : > { %v4153_v34 = vmax.f32 %v3165_v53, 0.0  ;;  %v3166_v61 = vclamps-f32 %v930_v0, 127.0  ;;  %v3164_v39 = vclamps-f32 %v928_v62, 127.0  ;;  %v1480_v47 = vmul.f32 %v4143_v46, %v3987_v41 }
 0x137   : > { %v4157_v23 = vmax.f32 %v3163_v22, 0.0  ;;  %v1481_v4 = vmul.f32 %v4143_v46, %v3997_v60  ;;  %v1576_v43 = vrot.slane %v1171_v15, 7  ;;  %v1577_v48 = vrot.slane %v1172_v44, 7 }
 0x138   : > { %v4161_v50 = vmax.f32 %v3166_v61, 0.0  ;;  %v4163_v17 = vmax.f32 %v3164_v39, 0.0  ;;  %v1511_v40 = vadd.f32 %v1480_v47, %v1444_v32  ;;  %v766_v12 = vmul.f32 %v4091_v54, %v3936_v28 }
 0x139   : > { %v1512_v49 = vadd.f32 %v1481_v4, %v1445_v21  ;;  %v1578_v35 = vsel %vm1575_vm1, %v1576_v43, %v1577_v48  ;;  %v1656_v37 = vsel %vm1575_vm1, 0.0, %v1576_v43  ;;  %v764_v63 = vmul.f32 %v3936_v28, %v4093_v58  ;;  %v4195_v48 = vld [vmem:[%s5058_s6] ss:$0 sm:$0xff] }
 0x13a   : > { %v1705_v7 = vrot.slane %v1511_v40, 1  ;;  %v1801_v53 = vadd.f32 %v1656_v37, %v1341_v5  ;;  %v1802_v15 = vadd.f32 %v1578_v35, %v1342_v14  ;;  %v805_v44 = vadd.f32 %v3941_v31, %v766_v12 }
 0x13b   : > { %v1706_v0 = vrot.slane %v1512_v49, 1  ;;  %v803_v62 = vadd.f32 %v3941_v31, %v764_v63  ;;  %v767_v22 = vmul.f32 %v4095_v16, %v3936_v28  ;;  %v765_v54 = vmul.f32 %v3936_v28, %v4099_v20  ;;  %v4188_v16 = vld [vmem:[%s5057_s5] ss:$0 sm:$0xff] }
 0x13c   : > { %v837_v32 = vadd.f32 128.0, %v805_v44  ;;  %v1142_v21 = vmul.f32 %v3969_v1, %v4046_v57  ;;  %v1143_v58 = vmul.f32 %v3969_v1, %v4051_v8  ;;  %v1312_v5 = vmul.f32 %v3971_v2, %v4046_v57 }
 0x13d   : > { %v1707_v14 = vsel %vm1704_vm2, %v1705_v7, %v1706_v0  ;;  %v1785_v61 = vsel %vm1704_vm2, %v1706_v0, 0.0  ;;  %v835_v28 = vadd.f32 128.0, %v803_v62  ;;  %v806_v20 = vadd.f32 %v3941_v31, %v767_v22 }
 0x13e   : > { %v1833_v39 = vadd.f32 %v1801_v53, %v1707_v14  ;;  %v1834_v47 = vadd.f32 %v1802_v15, %v1785_v61  ;;  %v3517_v4 = vtrunc.f32 %v837_v32  ;;  %v804_v43 = vadd.f32 %v3941_v31, %v765_v54 }
 0x13f   : > { %v3513_v40 = vtrunc.f32 %v835_v28  ;;  %v838_v12 = vadd.f32 128.0, %v806_v20  ;;  %v1173_v49 = vadd.f32 %v1142_v21, %v4013_v10  ;;  %v1174_v35 = vadd.f32 %v1143_v58, %v4029_v19 }
 0x140   : > { %v1872_v37 = vmul.f32 %v4188_v16, %v1833_v39  ;;  %v1873_v63 = vmul.f32 %v4188_v16, %v1834_v47  ;;  %v3518_v7 = vcvt.f32.s32 %v3517_v4  ;;  %v836_v53 = vadd.f32 128.0, %v804_v43 }
 0x141   : > { %v3514_v15 = vcvt.f32.s32 %v3513_v40  ;;  %v3519_v44 = vtrunc.f32 %v838_v12  ;;  %v1313_v31 = vmul.f32 %v3971_v2, %v4051_v8  ;;  %v1343_v0 = vadd.f32 %v1312_v5, %v4015_v11 }
 0x142   : > { %v1911_v62 = vadd.f32 %v4195_v48, %v1872_v37  ;;  %v1912_v22 = vadd.f32 %v4195_v48, %v1873_v63  ;;  %v901_v10 = vshra.s32 %v3518_v7, 8  ;;  %v3515_v54 = vtrunc.f32 %v836_v53 }
 0x143   : > { %v899_v19 = vshra.s32 %v3514_v15, 8  ;;  %v3520_v32 = vcvt.f32.s32 %v3519_v44  ;;  %v1344_v21 = vadd.f32 %v1313_v31, %v4031_v24  ;;  %v1482_v58 = vmul.f32 %v4143_v46, %v4046_v57 }
 0x144   : > { %v1943_v14 = vadd.f32 128.0, %v1911_v62  ;;  %v1944_v61 = vadd.f32 128.0, %v1912_v22  ;;  %v933_v28 = vcvt.s32.f32 %v901_v10  ;;  %v3516_v20 = vcvt.f32.s32 %v3515_v54 }
 0x145   : > { %v931_v39 = vcvt.s32.f32 %v899_v19  ;;  %v902_v47 = vshra.s32 %v3520_v32, 8  ;;  %v1483_v11 = vmul.f32 %v4143_v46, %v4051_v8  ;;  %v1513_v5 = vadd.f32 %v1482_v58, %v4017_v13 }
 0x146   : > { %v3521_v4 = vtrunc.f32 %v1943_v14  ;;  %v3523_v43 = vtrunc.f32 %v1944_v61  ;;  %v3169_v40 = vclamps-f32 %v933_v28, 127.0  ;;  %v900_v12 = vshra.s32 %v3516_v20, 8 }
 0x147   : > { %v3167_v37 = vclamps-f32 %v931_v39, 127.0  ;;  %v934_v24 = vcvt.s32.f32 %v902_v47  ;;  %v1514_v63 = vadd.f32 %v1483_v11, %v4033_v25  ;;  %v1579_v7 = vrot.slane %v1173_v49, 7 }
 0x148   : > { %v3522_v53 = vcvt.f32.s32 %v3521_v4  ;;  %v3524_v15 = vcvt.f32.s32 %v3523_v43  ;;  %v4213_v44 = vmax.f32 %v3169_v40, 0.0  ;;  %v932_v31 = vcvt.s32.f32 %v900_v12 }
 0x149   : > { %v4215_v62 = vmax.f32 %v3167_v37, 0.0  ;;  %v3170_v22 = vclamps-f32 %v934_v24, 127.0  ;;  %v1580_v10 = vrot.slane %v1174_v35, 7  ;;  %v1657_v13 = vsel %vm1575_vm1, 0.0, %v1579_v7 }
 0x14a   : > { %v2007_v54 = vshra.s32 %v3522_v53, 8  ;;  %v2008_v19 = vshra.s32 %v3524_v15, 8  ;;  %v3168_v32 = vclamps-f32 %v932_v31, 127.0  ;;  %v1708_v58 = vrot.slane %v1513_v5, 1 }
 0x14b   : > { %v4218_v14 = vmax.f32 %v3170_v22, 0.0  ;;  %v1581_v25 = vsel %vm1575_vm1, %v1579_v7, %v1580_v10  ;;  %v1709_v49 = vrot.slane %v1514_v63, 1  ;;  %v1803_v61 = vadd.f32 %v1657_v13, %v1343_v0 }
 0x14c   : > { %v2039_v28 = vcvt.s32.f32 %v2007_v54  ;;  %v2040_v20 = vcvt.s32.f32 %v2008_v19  ;;  %v4221_v39 = vmax.f32 %v3168_v32, 0.0  ;;  %v1804_v47 = vadd.f32 %v1581_v25, %v1344_v21 }
 0x14d   : > { %v4225_v35 = vmul.f32 %v3954_v51, %v4218_v14  ;;  %v1710_v11 = vsel %vm1704_vm2, %v1708_v58, %v1709_v49  ;;  %v1786_v4 = vsel %vm1704_vm2, %v1709_v49, 0.0  ;;  %v1040_v5 = vmul.f32 %v3949_v42, %v3987_v41 }
 0x14e   : > { %v3174_v43 = vclamps-f32 %v2039_v28, 127.0  ;;  %v3175_v40 = vclamps-f32 %v2040_v20, 127.0  ;;  %v1835_v12 = vadd.f32 %v1803_v61, %v1710_v11  ;;  %v1836_v0 = vadd.f32 %v1804_v47, %v1786_v4 }
 0x14f   : > { %v1041_v37 = vmul.f32 %v3949_v42, %v3997_v60  ;;  %v1076_v21 = vmul.f32 %v3954_v51, %v4046_v57  ;;  %v1077_v24 = vmul.f32 %v3954_v51, %v4051_v8  ;;  %v1144_v63 = vmul.f32 %v3969_v1, %v4037_v36 }
 0x150   : > { %v2135_v7 = vmax.f32 %v3174_v43, 0.0  ;;  %v2136_v53 = vmax.f32 %v3175_v40, 0.0  ;;  %v1874_v15 = vmul.f32 %v4188_v16, %v1835_v12  ;;  %v1875_v31 = vmul.f32 %v4188_v16, %v1836_v0 }
 0x151   : > { %v1108_v22 = vadd.f32 %v1076_v21, %v1040_v5  ;;  %v1109_v10 = vadd.f32 %v1077_v24, %v1041_v37  ;;  %v1145_v13 = vmul.f32 %v3969_v1, %v4049_v6  ;;  %v1210_v54 = vmul.f32 %v3956_v52, %v3987_v41 }
 0x152   : > { %v2167_v19 = vpack.c.bf16 %v2136_v53, %v2135_v7  ;;  %v1913_v32 = vadd.f32 %v4195_v48, %v1874_v15  ;;  %v1914_v58 = vadd.f32 %v4195_v48, %v1875_v31  ;;  %v1211_v25 = vmul.f32 %v3956_v52, %v3997_v60 }
 0x153   : > { %v1175_v49 = vadd.f32 %v1144_v63, %v1108_v22  ;;  %v1176_v61 = vadd.f32 %v1145_v13, %v1109_v10  ;;  %v1246_v28 = vmul.f32 %v3959_v55, %v4046_v57  ;;  %v1247_v20 = vmul.f32 %v3959_v55, %v4051_v8 }
 0x154   : > { %3409 = vmatprep.mubr.bf16.mxu0 %v2167_v19  ;;  %v1945_v47 = vadd.f32 128.0, %v1913_v32  ;;  %v1946_v11 = vadd.f32 128.0, %v1914_v58  ;;  %v1314_v4 = vmul.f32 %v3971_v2, %v4037_v36  ;;  %v1315_v5 = vmul.f32 %v3971_v2, %v4049_v6 }
 0x155   : > { %v1278_v43 = vadd.f32 %v1246_v28, %v1210_v54  ;;  %v1279_v40 = vadd.f32 %v1247_v20, %v1211_v25  ;;  %v1380_v12 = vmul.f32 %v3961_v56, %v3987_v41  ;;  %v1381_v0 = vmul.f32 %v3961_v56, %v3997_v60 }
 0x156   : > { %v3525_v37 = vtrunc.f32 %v1945_v47  ;;  %v3527_v21 = vtrunc.f32 %v1946_v11  ;;  %v1416_v24 = vmul.f32 %v3964_v59, %v4046_v57  ;;  %v1417_v63 = vmul.f32 %v3964_v59, %v4051_v8 }
 0x157   : > { %v1345_v7 = vadd.f32 %v1314_v4, %v1278_v43  ;;  %v1346_v53 = vadd.f32 %v1315_v5, %v1279_v40  ;;  %v1484_v15 = vmul.f32 %v4143_v46, %v4037_v36  ;;  %v1485_v31 = vmul.f32 %v4143_v46, %v4049_v6 }
 0x158   : > { %v3526_v41 = vcvt.f32.s32 %v3525_v37  ;;  %v3528_v22 = vcvt.f32.s32 %v3527_v21  ;;  %v1448_v10 = vadd.f32 %v1416_v24, %v1380_v12  ;;  %v1449_v60 = vadd.f32 %v1417_v63, %v1381_v0 }
 0x159   : > { %v1582_v13 = vrot.slane %v1175_v49, 7  ;;  %v1583_v54 = vrot.slane %v1176_v61, 7  ;;  %v1042_v19 = vmul.f32 %v3949_v42, %v4046_v57  ;;  %v1043_v32 = vmul.f32 %v3949_v42, %v4051_v8 }
 0x15a   : > { %v2009_v58 = vshra.s32 %v3526_v41, 8  ;;  %v2010_v25 = vshra.s32 %v3528_v22, 8  ;;  %v1515_v28 = vadd.f32 %v1484_v15, %v1448_v10  ;;  %v1516_v20 = vadd.f32 %v1485_v31, %v1449_v60 }
 0x15b   : > { %v1584_v47 = vsel %vm1575_vm1, %v1582_v13, %v1583_v54  ;;  %v1658_v11 = vsel %vm1575_vm1, 0.0, %v1582_v13  ;;  %v1078_v4 = vmul.f32 %v3954_v51, %v4037_v36  ;;  %v1079_v49 = vmul.f32 %v3954_v51, %v4049_v6 }
 0x15c   : > { %v2041_v61 = vcvt.s32.f32 %v2009_v58  ;;  %v2042_v5 = vcvt.s32.f32 %v2010_v25  ;;  %v1711_v43 = vrot.slane %v1515_v28, 1  ;;  %v1712_v40 = vrot.slane %v1516_v20, 1 }
 0x15d   : > { %v1805_v12 = vadd.f32 %v1658_v11, %v1345_v7  ;;  %v1806_v0 = vadd.f32 %v1584_v47, %v1346_v53  ;;  %v1110_v37 = vadd.f32 %v1078_v4, %v1042_v19  ;;  %v1111_v21 = vadd.f32 %v1079_v49, %v1043_v32 }
 0x15e   : > { %v3176_v24 = vclamps-f32 %v2041_v61, 127.0  ;;  %v3177_v63 = vclamps-f32 %v2042_v5, 127.0  ;;  %v1713_v15 = vsel %vm1704_vm2, %v1711_v43, %v1712_v40  ;;  %v1787_v31 = vsel %vm1704_vm2, %v1712_v40, 0.0 }
 0x15f   : > { %v1837_v41 = vadd.f32 %v1805_v12, %v1713_v15  ;;  %v1838_v22 = vadd.f32 %v1806_v0, %v1787_v31  ;;  %v1146_v10 = vmul.f32 %v3969_v1, %v4061_v27  ;;  %v1147_v60 = vmul.f32 %v3969_v1, %v4065_v29 }
 0x160   : > { %v2137_v13 = vmax.f32 %v3176_v24, 0.0  ;;  %v2138_v54 = vmax.f32 %v3177_v63, 0.0  ;;  %v1212_v7 = vmul.f32 %v3956_v52, %v4046_v57  ;;  %v1213_v53 = vmul.f32 %v3956_v52, %v4051_v8 }
 0x161   : > { %v1876_v19 = vmul.f32 %v4188_v16, %v1837_v41  ;;  %v1877_v32 = vmul.f32 %v4188_v16, %v1838_v22  ;;  %v1177_v58 = vadd.f32 %v1146_v10, %v1110_v37  ;;  %v1178_v25 = vadd.f32 %v1147_v60, %v1111_v21 }
 0x162   : > { %v2168_v28 = vpack.c.bf16 %v2138_v54, %v2137_v13  ;;  %v1248_v20 = vmul.f32 %v3959_v55, %v4037_v36  ;;  %v1249_v47 = vmul.f32 %v3959_v55, %v4049_v6  ;;  %v1316_v11 = vmul.f32 %v3971_v2, %v4061_v27 }
 0x163   : > { %v1915_v4 = vadd.f32 %v4195_v48, %v1876_v19  ;;  %v1916_v49 = vadd.f32 %v4195_v48, %v1877_v32  ;;  %v1317_v61 = vmul.f32 %v3971_v2, %v4065_v29  ;;  %v1382_v5 = vmul.f32 %v3961_v56, %v4046_v57 }
 0x164   : > { %3410 = vmatmul.mubr.bf16.vlgmr.msra.gmra.mrb[32].mxu0 %v2168_v28  ;;  %v1280_v43 = vadd.f32 %v1248_v20, %v1212_v7  ;;  %v1281_v40 = vadd.f32 %v1249_v47, %v1213_v53  ;;  %v1383_v12 = vmul.f32 %v3961_v56, %v4051_v8  ;;  %v1418_v0 = vmul.f32 %v3964_v59, %v4037_v36 }
 0x165   : > { %v1947_v37 = vadd.f32 128.0, %v1915_v4  ;;  %v1948_v21 = vadd.f32 128.0, %v1916_v49  ;;  %v1419_v24 = vmul.f32 %v3964_v59, %v4049_v6  ;;  %v1486_v63 = vmul.f32 %v4143_v46, %v4061_v27 }
 0x166   : > { %v1347_v15 = vadd.f32 %v1316_v11, %v1280_v43  ;;  %v1348_v31 = vadd.f32 %v1317_v61, %v1281_v40  ;;  %v1450_v57 = vadd.f32 %v1418_v0, %v1382_v5  ;;  %v1487_v41 = vmul.f32 %v4143_v46, %v4065_v29 }
 0x167   : > { %v3529_v22 = vtrunc.f32 %v1947_v37  ;;  %v3531_v10 = vtrunc.f32 %v1948_v21  ;;  %v1451_v8 = vadd.f32 %v1419_v24, %v1383_v12  ;;  %v1585_v60 = vrot.slane %v1177_v58, 7 }
 0x168   : > { %v1517_v13 = vadd.f32 %v1486_v63, %v1450_v57  ;;  %v1586_v54 = vrot.slane %v1178_v25, 7  ;;  %v1044_v7 = vmul.f32 %v3949_v42, %v4037_v36  ;;  %v1045_v53 = vmul.f32 %v3949_v42, %v4049_v6 }
 0x169   : > { %v3530_v19 = vcvt.f32.s32 %v3529_v22  ;;  %v3532_v32 = vcvt.f32.s32 %v3531_v10  ;;  %v1518_v28 = vadd.f32 %v1487_v41, %v1451_v8  ;;  %v1659_v20 = vsel %vm1575_vm1, 0.0, %v1585_v60 }
 0x16a   : > { %v1587_v47 = vsel %vm1575_vm1, %v1585_v60, %v1586_v54  ;;  %v1714_v11 = vrot.slane %v1517_v13, 1  ;;  %v1807_v4 = vadd.f32 %v1659_v20, %v1347_v15  ;;  %v1080_v58 = vmul.f32 %v3954_v51, %v4061_v27 }
 0x16b   : > { %v2011_v49 = vshra.s32 %v3530_v19, 8  ;;  %v2012_v25 = vshra.s32 %v3532_v32, 8  ;;  %v1715_v61 = vrot.slane %v1518_v28, 1  ;;  %v1808_v5 = vadd.f32 %v1587_v47, %v1348_v31 }
 0x16c   : > { %v1081_v43 = vmul.f32 %v3954_v51, %v4065_v29  ;;  %v1112_v40 = vadd.f32 %v1080_v58, %v1044_v7  ;;  %v1148_v12 = vmul.f32 %v3969_v1, %v4059_v18  ;;  %v1149_v0 = vmul.f32 %v3969_v1, %v4063_v38 }
 0x16d   : > { %v2043_v37 = vcvt.s32.f32 %v2011_v49  ;;  %v2044_v21 = vcvt.s32.f32 %v2012_v25  ;;  %v1716_v24 = vsel %vm1704_vm2, %v1714_v11, %v1715_v61  ;;  %v1788_v63 = vsel %vm1704_vm2, %v1715_v61, 0.0 }
 0x16e   : > { %v1839_v15 = vadd.f32 %v1807_v4, %v1716_v24  ;;  %v1840_v57 = vadd.f32 %v1808_v5, %v1788_v63  ;;  %v1113_v41 = vadd.f32 %v1081_v43, %v1045_v53  ;;  %v1179_v31 = vadd.f32 %v1148_v12, %v1112_v40 }
 0x16f   : > { %v3178_v22 = vclamps-f32 %v2043_v37, 127.0  ;;  %v3179_v10 = vclamps-f32 %v2044_v21, 127.0  ;;  %v1214_v8 = vmul.f32 %v3956_v52, %v4037_v36  ;;  %v1215_v60 = vmul.f32 %v3956_v52, %v4049_v6 }
 0x170   : > { %v1878_v13 = vmul.f32 %v4188_v16, %v1839_v15  ;;  %v1879_v54 = vmul.f32 %v4188_v16, %v1840_v57  ;;  %v1180_v7 = vadd.f32 %v1149_v0, %v1113_v41  ;;  %v1250_v19 = vmul.f32 %v3959_v55, %v4061_v27 }
 0x171   : > { %v2139_v32 = vmax.f32 %v3178_v22, 0.0  ;;  %v2140_v28 = vmax.f32 %v3179_v10, 0.0  ;;  %v1251_v53 = vmul.f32 %v3959_v55, %v4065_v29  ;;  %v1318_v20 = vmul.f32 %v3971_v2, %v4059_v18 }
 0x172   : > { %v1917_v47 = vadd.f32 %v4195_v48, %v1878_v13  ;;  %v1918_v11 = vadd.f32 %v4195_v48, %v1879_v54  ;;  %v1282_v4 = vadd.f32 %v1250_v19, %v1214_v8  ;;  %v1319_v58 = vmul.f32 %v3971_v2, %v4063_v38 }
 0x173   : > { %v2169_v49 = vpack.c.bf16 %v2140_v28, %v2139_v32  ;;  %v1283_v25 = vadd.f32 %v1251_v53, %v1215_v60  ;;  %v1384_v61 = vmul.f32 %v3961_v56, %v4037_v36  ;;  %v1385_v5 = vmul.f32 %v3961_v56, %v4049_v6 }
 0x174   : > { %v1949_v43 = vadd.f32 128.0, %v1917_v47  ;;  %v1950_v40 = vadd.f32 128.0, %v1918_v11  ;;  %v1349_v12 = vadd.f32 %v1318_v20, %v1282_v4  ;;  %v1420_v0 = vmul.f32 %v3964_v59, %v4061_v27 }
 0x175   : > { %3413 = vmatprep.mubr.bf16.mxu1 %v2169_v49  ;;  %v1350_v37 = vadd.f32 %v1319_v58, %v1283_v25  ;;  %v1421_v21 = vmul.f32 %v3964_v59, %v4065_v29  ;;  %v1488_v24 = vmul.f32 %v4143_v46, %v4059_v18  ;;  %v1489_v36 = vmul.f32 %v4143_v46, %v4063_v38 }
 0x176   : > { %v3533_v63 = vtrunc.f32 %v1949_v43  ;;  %v3535_v15 = vtrunc.f32 %v1950_v40  ;;  %v1452_v6 = vadd.f32 %v1420_v0, %v1384_v61  ;;  %v1588_v57 = vrot.slane %v1179_v31, 7 }
 0x177   : > { %v1453_v41 = vadd.f32 %v1421_v21, %v1385_v5  ;;  %v1589_v22 = vrot.slane %v1180_v7, 7  ;;  %v1046_v10 = vmul.f32 %v3949_v42, %v4061_v27  ;;  %v1047_v8 = vmul.f32 %v3949_v42, %v4065_v29 }
 0x178   : > { %v3534_v60 = vcvt.f32.s32 %v3533_v63  ;;  %v3536_v13 = vcvt.f32.s32 %v3535_v15  ;;  %v1519_v54 = vadd.f32 %v1488_v24, %v1452_v6  ;;  %v1660_v19 = vsel %vm1575_vm1, 0.0, %v1588_v57 }
 0x179   : > { %v1520_v32 = vadd.f32 %v1489_v36, %v1453_v41  ;;  %v1590_v28 = vsel %vm1575_vm1, %v1588_v57, %v1589_v22  ;;  %v1809_v53 = vadd.f32 %v1660_v19, %v1349_v12  ;;  %v1082_v31 = vmul.f32 %v3954_v51, %v4059_v18 }
 0x17a   : > { %v2013_v20 = vshra.s32 %v3534_v60, 8  ;;  %v2014_v7 = vshra.s32 %v3536_v13, 8  ;;  %v1717_v47 = vrot.slane %v1519_v54, 1  ;;  %v1810_v11 = vadd.f32 %v1590_v28, %v1350_v37 }
 0x17b   : > { %v1718_v4 = vrot.slane %v1520_v32, 1  ;;  %v1083_v58 = vmul.f32 %v3954_v51, %v4063_v38  ;;  %v1114_v49 = vadd.f32 %v1082_v31, %v1046_v10  ;;  %v1150_v25 = vmul.f32 %v3969_v1, %v4078_v9 }
 0x17c   : > { %v2045_v61 = vcvt.s32.f32 %v2013_v20  ;;  %v2046_v5 = vcvt.s32.f32 %v2014_v7  ;;  %v1151_v43 = vmul.f32 %v3969_v1, %v4083_v45  ;;  %v1216_v40 = vmul.f32 %v3956_v52, %v4061_v27 }
 0x17d   : > { %v1719_v12 = vsel %vm1704_vm2, %v1717_v47, %v1718_v4  ;;  %v1789_v0 = vsel %vm1704_vm2, %v1718_v4, 0.0  ;;  %v1115_v37 = vadd.f32 %v1083_v58, %v1047_v8  ;;  %v1181_v21 = vadd.f32 %v1150_v25, %v1114_v49 }
 0x17e   : > { %v3180_v24 = vclamps-f32 %v2045_v61, 127.0  ;;  %v3181_v36 = vclamps-f32 %v2046_v5, 127.0  ;;  %v1841_v63 = vadd.f32 %v1809_v53, %v1719_v12  ;;  %v1842_v15 = vadd.f32 %v1810_v11, %v1789_v0 }
 0x17f   : > { %v1182_v6 = vadd.f32 %v1151_v43, %v1115_v37  ;;  %v1217_v57 = vmul.f32 %v3956_v52, %v4065_v29  ;;  %v1252_v41 = vmul.f32 %v3959_v55, %v4059_v18  ;;  %v1253_v22 = vmul.f32 %v3959_v55, %v4063_v38 }
 0x180   : > { %v2141_v10 = vmax.f32 %v3180_v24, 0.0  ;;  %v2142_v60 = vmax.f32 %v3181_v36, 0.0  ;;  %v1880_v13 = vmul.f32 %v4188_v16, %v1841_v63  ;;  %v1881_v8 = vmul.f32 %v4188_v16, %v1842_v15 }
 0x181   : > { %v1284_v54 = vadd.f32 %v1252_v41, %v1216_v40  ;;  %v1285_v19 = vadd.f32 %v1253_v22, %v1217_v57  ;;  %v1320_v32 = vmul.f32 %v3971_v2, %v4078_v9  ;;  %v1321_v28 = vmul.f32 %v3971_v2, %v4083_v45 }
 0x182   : > { %v2170_v53 = vpack.c.bf16 %v2142_v60, %v2141_v10  ;;  %v1919_v31 = vadd.f32 %v4195_v48, %v1880_v13  ;;  %v1920_v20 = vadd.f32 %v4195_v48, %v1881_v8  ;;  %v1386_v7 = vmul.f32 %v3961_v56, %v4061_v27 }
 0x183   : > { %v1351_v47 = vadd.f32 %v1320_v32, %v1284_v54  ;;  %v1352_v11 = vadd.f32 %v1321_v28, %v1285_v19  ;;  %v1387_v4 = vmul.f32 %v3961_v56, %v4065_v29  ;;  %v1422_v58 = vmul.f32 %v3964_v59, %v4059_v18  ;;  %v5076_v28 = vld [vmem:[#allocation2_spill] sm:$0xff] }
 0x184   : > { %3414 = vmatmul.mubr.bf16.vlgmr.msra.gmra.mrb[0].mxu1 %v2170_v53  ;;  %v1951_v49 = vadd.f32 128.0, %v1919_v31  ;;  %v1952_v25 = vadd.f32 128.0, %v1920_v20  ;;  %v1423_v61 = vmul.f32 %v3964_v59, %v4063_v38  ;;  %v1490_v5 = vmul.f32 %v4143_v46, %v4078_v9 }
 0x185   : > { %v1454_v43 = vadd.f32 %v1422_v58, %v1386_v7  ;;  %v1491_v27 = vmul.f32 %v4143_v46, %v4083_v45  ;;  %v1591_v40 = vrot.slane %v1181_v21, 7  ;;  %v1592_v12 = vrot.slane %v1182_v6, 7  ;;  %v5077_v7 = vld [vmem:[#allocation3_spill] sm:$0xff] }
 0x186   : > { %v3537_v0 = vtrunc.f32 %v1951_v49  ;;  %v3539_v29 = vtrunc.f32 %v1952_v25  ;;  %v1455_v37 = vadd.f32 %v1423_v61, %v1387_v4  ;;  %v1048_v24 = vmul.f32 %v3949_v42, %v4059_v18 }
 0x187   : > { %v1521_v36 = vadd.f32 %v1490_v5, %v1454_v43  ;;  %v1593_v63 = vsel %vm1575_vm1, %v1591_v40, %v1592_v12  ;;  %v1661_v15 = vsel %vm1575_vm1, 0.0, %v1591_v40  ;;  %v1049_v57 = vmul.f32 %v3949_v42, %v4063_v38 }
 0x188   : > { %v3538_v41 = vcvt.f32.s32 %v3537_v0  ;;  %v3540_v22 = vcvt.f32.s32 %v3539_v29  ;;  %v1522_v10 = vadd.f32 %v1491_v27, %v1455_v37  ;;  %v1811_v60 = vadd.f32 %v1661_v15, %v1351_v47 }
 0x189   : > { %v1720_v21 = vrot.slane %v1521_v36, 1  ;;  %v1812_v6 = vadd.f32 %v1593_v63, %v1352_v11  ;;  %v1084_v13 = vmul.f32 %v3954_v51, %v4078_v9  ;;  %v1085_v8 = vmul.f32 %v3954_v51, %v4083_v45 }
 0x18a   : > { %v2015_v54 = vshra.s32 %v3538_v41, 8  ;;  %v2016_v19 = vshra.s32 %v3540_v22, 8  ;;  %v1721_v32 = vrot.slane %v1522_v10, 1  ;;  %v1152_v53 = vmul.f32 %v3969_v1, %v5076_v28 }
 0x18b   : > { %v1116_v31 = vadd.f32 %v1084_v13, %v1048_v24  ;;  %v1117_v20 = vadd.f32 %v1085_v8, %v1049_v57  ;;  %v1153_v4 = vmul.f32 %v3969_v1, %v5077_v7  ;;  %v1218_v47 = vmul.f32 %v3956_v52, %v4059_v18 }
 0x18c   : > { %v2047_v11 = vcvt.s32.f32 %v2015_v54  ;;  %v2048_v58 = vcvt.s32.f32 %v2016_v19  ;;  %v1722_v49 = vsel %vm1704_vm2, %v1720_v21, %v1721_v32  ;;  %v1790_v25 = vsel %vm1704_vm2, %v1721_v32, 0.0 }
 0x18d   : > { %v1843_v61 = vadd.f32 %v1811_v60, %v1722_v49  ;;  %v1844_v5 = vadd.f32 %v1812_v6, %v1790_v25  ;;  %v1183_v43 = vadd.f32 %v1152_v53, %v1116_v31  ;;  %v1184_v27 = vadd.f32 %v1153_v4, %v1117_v20 }
 0x18e   : > { %v3182_v40 = vclamps-f32 %v2047_v11, 127.0  ;;  %v3183_v12 = vclamps-f32 %v2048_v58, 127.0  ;;  %v1219_v0 = vmul.f32 %v3956_v52, %v4063_v38  ;;  %v1254_v29 = vmul.f32 %v3959_v55, %v4078_v9 }
 0x18f   : > { %v1882_v37 = vmul.f32 %v4188_v16, %v1843_v61  ;;  %v1883_v24 = vmul.f32 %v4188_v16, %v1844_v5  ;;  %v1255_v36 = vmul.f32 %v3959_v55, %v4083_v45  ;;  %v1322_v63 = vmul.f32 %v3971_v2, %v5076_v28 }
 0x190   : > { %v2143_v15 = vmax.f32 %v3182_v40, 0.0  ;;  %v2144_v57 = vmax.f32 %v3183_v12, 0.0  ;;  %v1286_v41 = vadd.f32 %v1254_v29, %v1218_v47  ;;  %v1323_v22 = vmul.f32 %v3971_v2, %v5077_v7 }
 0x191   : > { %v1921_v10 = vadd.f32 %v4195_v48, %v1882_v37  ;;  %v1922_v60 = vadd.f32 %v4195_v48, %v1883_v24  ;;  %v1287_v21 = vadd.f32 %v1255_v36, %v1219_v0  ;;  %v1388_v6 = vmul.f32 %v3961_v56, %v4059_v18 }
 0x192   : > { %v2171_v13 = vpack.c.bf16 %v2144_v57, %v2143_v15  ;;  %v1353_v8 = vadd.f32 %v1322_v63, %v1286_v41  ;;  %v1389_v54 = vmul.f32 %v3961_v56, %v4063_v38  ;;  %v1424_v19 = vmul.f32 %v3964_v59, %v4078_v9 }
 0x193   : > { %v1953_v32 = vadd.f32 128.0, %v1921_v10  ;;  %v1954_v53 = vadd.f32 128.0, %v1922_v60  ;;  %v1354_v31 = vadd.f32 %v1323_v22, %v1287_v21  ;;  %v1425_v20 = vmul.f32 %v3964_v59, %v4083_v45 }
 0x194   : > { %3417 = vmatprep.mubr.bf16.mxu1 %v2171_v13  ;;  %v1456_v4 = vadd.f32 %v1424_v19, %v1388_v6  ;;  %v1492_v47 = vmul.f32 %v4143_v46, %v5076_v28  ;;  %v1493_v18 = vmul.f32 %v4143_v46, %v5077_v7  ;;  %v1594_v11 = vrot.slane %v1183_v43, 7 }
 0x195   : > { %v3541_v58 = vtrunc.f32 %v1953_v32  ;;  %v3543_v38 = vtrunc.f32 %v1954_v53  ;;  %v1457_v49 = vadd.f32 %v1425_v20, %v1389_v54  ;;  %v1595_v25 = vrot.slane %v1184_v27, 7 }
 0x196   : > { %v1523_v61 = vadd.f32 %v1492_v47, %v1456_v4  ;;  %v1662_v5 = vsel %vm1575_vm1, 0.0, %v1594_v11  ;;  %v1050_v40 = vmul.f32 %v3949_v42, %v4078_v9  ;;  %v1051_v12 = vmul.f32 %v3949_v42, %v4083_v45 }
 0x197   : > { %v3542_v0 = vcvt.f32.s32 %v3541_v58  ;;  %v3544_v29 = vcvt.f32.s32 %v3543_v38  ;;  %v1524_v37 = vadd.f32 %v1493_v18, %v1457_v49  ;;  %v1596_v24 = vsel %vm1575_vm1, %v1594_v11, %v1595_v25 }
 0x198   : > { %v1723_v36 = vrot.slane %v1523_v61, 1  ;;  %v1813_v43 = vadd.f32 %v1662_v5, %v1353_v8  ;;  %v1814_v63 = vadd.f32 %v1596_v24, %v1354_v31  ;;  %v1086_v27 = vmul.f32 %v3954_v51, %v5076_v28 }
 0x199   : > { %v2017_v15 = vshra.s32 %v3542_v0, 8  ;;  %v2018_v57 = vshra.s32 %v3544_v29, 8  ;;  %v1724_v41 = vrot.slane %v1524_v37, 1  ;;  %v1087_v22 = vmul.f32 %v3954_v51, %v5077_v7 }
 0x19a   : > { %v1118_v10 = vadd.f32 %v1086_v27, %v1050_v40  ;;  %v1154_v60 = vmul.f32 %v3969_v1, %v4101_v26  ;;  %v1155_v21 = vmul.f32 %v3969_v1, %v4105_v33  ;;  %v1220_v6 = vmul.f32 %v3956_v52, %v4078_v9 }
 0x19b   : > { %v2049_v13 = vcvt.s32.f32 %v2017_v15  ;;  %v2050_v8 = vcvt.s32.f32 %v2018_v57  ;;  %v1725_v54 = vsel %vm1704_vm2, %v1723_v36, %v1724_v41  ;;  %v1791_v19 = vsel %vm1704_vm2, %v1724_v41, 0.0 }
 0x19c   : > { %v1845_v32 = vadd.f32 %v1813_v43, %v1725_v54  ;;  %v1846_v53 = vadd.f32 %v1814_v63, %v1791_v19  ;;  %v1119_v31 = vadd.f32 %v1087_v22, %v1051_v12  ;;  %v1185_v20 = vadd.f32 %v1154_v60, %v1118_v10 }
 0x19d   : > { %v3184_v4 = vclamps-f32 %v2049_v13, 127.0  ;;  %v3185_v47 = vclamps-f32 %v2050_v8, 127.0  ;;  %v1221_v18 = vmul.f32 %v3956_v52, %v4083_v45  ;;  %v1256_v11 = vmul.f32 %v3959_v55, %v5076_v28 }
 0x19e   : > { %v1884_v58 = vmul.f32 %v4188_v16, %v1845_v32  ;;  %v1885_v38 = vmul.f32 %v4188_v16, %v1846_v53  ;;  %v1186_v49 = vadd.f32 %v1155_v21, %v1119_v31  ;;  %v1257_v25 = vmul.f32 %v3959_v55, %v5077_v7 }
 0x19f   : > { %v2145_v61 = vmax.f32 %v3184_v4, 0.0  ;;  %v2146_v5 = vmax.f32 %v3185_v47, 0.0  ;;  %v1288_v40 = vadd.f32 %v1256_v11, %v1220_v6  ;;  %v1324_v12 = vmul.f32 %v3971_v2, %v4101_v26 }
 0x1a0   : > { %v1923_v0 = vadd.f32 %v4195_v48, %v1884_v58  ;;  %v1924_v29 = vadd.f32 %v4195_v48, %v1885_v38  ;;  %v1289_v37 = vadd.f32 %v1257_v25, %v1221_v18  ;;  %v1325_v24 = vmul.f32 %v3971_v2, %v4105_v33 }
 0x1a1   : > { %v2172_v36 = vpack.c.bf16 %v2146_v5, %v2145_v61  ;;  %v1355_v43 = vadd.f32 %v1324_v12, %v1288_v40  ;;  %v1390_v63 = vmul.f32 %v3961_v56, %v4078_v9  ;;  %v1391_v27 = vmul.f32 %v3961_v56, %v4083_v45 }
 0x1a2   : > { %v1955_v15 = vadd.f32 128.0, %v1923_v0  ;;  %v1956_v57 = vadd.f32 128.0, %v1924_v29  ;;  %v1356_v41 = vadd.f32 %v1325_v24, %v1289_v37  ;;  %v1426_v22 = vmul.f32 %v3964_v59, %v5076_v28 }
 0x1a3   : > { %3418 = vmatmul.mubr.bf16.gmra.mrb[4].mxu1 %v2172_v36  ;;  %v1427_v10 = vmul.f32 %v3964_v59, %v5077_v7  ;;  %v1494_v60 = vmul.f32 %v4143_v46, %v4101_v26  ;;  %v1495_v21 = vmul.f32 %v4143_v46, %v4105_v33  ;;  %v1597_v9 = vrot.slane %v1185_v20, 7 }
 0x1a4   : > { %v3545_v6 = vtrunc.f32 %v1955_v15  ;;  %v3547_v13 = vtrunc.f32 %v1956_v57  ;;  %v1458_v45 = vadd.f32 %v1426_v22, %v1390_v63  ;;  %v1598_v8 = vrot.slane %v1186_v49, 7 }
 0x1a5   : > { %v1459_v54 = vadd.f32 %v1427_v10, %v1391_v27  ;;  %v1663_v19 = vsel %vm1575_vm1, 0.0, %v1597_v9  ;;  %v1052_v32 = vmul.f32 %v3949_v42, %v5076_v28  ;;  %v1053_v53 = vmul.f32 %v3949_v42, %v5077_v7 }
 0x1a6   : > { %v3546_v31 = vcvt.f32.s32 %v3545_v6  ;;  %v3548_v4 = vcvt.f32.s32 %v3547_v13  ;;  %v1525_v47 = vadd.f32 %v1494_v60, %v1458_v45  ;;  %v1599_v18 = vsel %vm1575_vm1, %v1597_v9, %v1598_v8 }
 0x1a7   : > { %v1526_v46 = vadd.f32 %v1495_v21, %v1459_v54  ;;  %v1815_v20 = vadd.f32 %v1663_v19, %v1355_v43  ;;  %v1816_v11 = vadd.f32 %v1599_v18, %v1356_v41  ;;  %v1088_v58 = vmul.f32 %v3954_v51, %v4101_v26 }
 0x1a8   : > { %v2019_v38 = vshra.s32 %v3546_v31, 8  ;;  %v2020_v49 = vshra.s32 %v3548_v4, 8  ;;  %v1726_v25 = vrot.slane %v1525_v47, 1  ;;  %v1089_v61 = vmul.f32 %v3954_v51, %v4105_v33 }
 0x1a9   : > { %v1727_v5 = vrot.slane %v1526_v46, 1  ;;  %v1120_v40 = vadd.f32 %v1088_v58, %v1052_v32  ;;  %v1156_v12 = vmul.f32 %v3969_v1, %v4097_v3  ;;  %v1157_v0 = vmul.f32 %v3969_v1, %v4103_v30 }
 0x1aa   : > { %v2051_v29 = vcvt.s32.f32 %v2019_v38  ;;  %v2052_v37 = vcvt.s32.f32 %v2020_v49  ;;  %v1121_v24 = vadd.f32 %v1089_v61, %v1053_v53  ;;  %v1222_v36 = vmul.f32 %v3956_v52, %v5076_v28 }
 0x1ab   : > { %v1728_v43 = vsel %vm1704_vm2, %v1726_v25, %v1727_v5  ;;  %v1792_v63 = vsel %vm1704_vm2, %v1727_v5, 0.0  ;;  %v1187_v27 = vadd.f32 %v1156_v12, %v1120_v40  ;;  %v1223_v15 = vmul.f32 %v3956_v52, %v5077_v7 }
 0x1ac   : > { %v3186_v57 = vclamps-f32 %v2051_v29, 127.0  ;;  %v3187_v41 = vclamps-f32 %v2052_v37, 127.0  ;;  %v1847_v22 = vadd.f32 %v1815_v20, %v1728_v43  ;;  %v1848_v10 = vadd.f32 %v1816_v11, %v1792_v63 }
 0x1ad   : > { %v1188_v60 = vadd.f32 %v1157_v0, %v1121_v24  ;;  %v1258_v21 = vmul.f32 %v3959_v55, %v4101_v26  ;;  %v1259_v9 = vmul.f32 %v3959_v55, %v4105_v33  ;;  %v1326_v6 = vmul.f32 %v3971_v2, %v4097_v3 }
 0x1ae   : > { %v2147_v13 = vmax.f32 %v3186_v57, 0.0  ;;  %v2148_v45 = vmax.f32 %v3187_v41, 0.0  ;;  %v1886_v8 = vmul.f32 %v4188_v16, %v1847_v22  ;;  %v1887_v54 = vmul.f32 %v4188_v16, %v1848_v10 }
 0x1af   : > { %v1290_v19 = vadd.f32 %v1258_v21, %v1222_v36  ;;  %v1291_v32 = vadd.f32 %v1259_v9, %v1223_v15  ;;  %v1327_v53 = vmul.f32 %v3971_v2, %v4103_v30  ;;  %v1392_v31 = vmul.f32 %v3961_v56, %v5076_v28  ;;  %v4532_v28 = vld [vmem:[%s5056_s4 + $0x8] ss:$0 sm:$0xff] }
 0x1b0   : > { %v2173_v4 = vpack.c.bf16 %v2148_v45, %v2147_v13  ;;  %v1925_v47 = vadd.f32 %v4195_v48, %v1886_v8  ;;  %v1926_v18 = vadd.f32 %v4195_v48, %v1887_v54  ;;  %v1393_v46 = vmul.f32 %v3961_v56, %v5077_v7  ;;  %v5078_v13 = vld [vmem:[#allocation5_spill] sm:$0xff]  ;;  %v5079_v8 = vld [vmem:[#allocation7_spill] sm:$0xff] }
 0x1b1   : > { %v1357_v20 = vadd.f32 %v1326_v6, %v1290_v19  ;;  %v1358_v11 = vadd.f32 %v1327_v53, %v1291_v32  ;;  %v1428_v16 = vmul.f32 %v3964_v59, %v4101_v26  ;;  %v1429_v58 = vmul.f32 %v3964_v59, %v4105_v33 }
 0x1b2   : > { %3421 = vmatprep.mubr.bf16.mxu1 %v2173_v4  ;;  %v1957_v38 = vadd.f32 128.0, %v1925_v47  ;;  %v1958_v49 = vadd.f32 128.0, %v1926_v18  ;;  %v1496_v48 = vmul.f32 %v4532_v28, %v4097_v3  ;;  %v1497_v7 = vmul.f32 %v4532_v28, %v4103_v30 }
 0x1b3   : > { %v1460_v25 = vadd.f32 %v1428_v16, %v1392_v31  ;;  %v1461_v61 = vadd.f32 %v1429_v58, %v1393_v46  ;;  %v1600_v5 = vrot.slane %v1187_v27, 7  ;;  %v1601_v40 = vrot.slane %v1188_v60, 7 }
 0x1b4   : > { %v3549_v12 = vtrunc.f32 %v1957_v38  ;;  %v3551_v0 = vtrunc.f32 %v1958_v49  ;;  %v1054_v29 = vmul.f32 %v3949_v42, %v4101_v26  ;;  %v1055_v37 = vmul.f32 %v3949_v42, %v4105_v33 }
 0x1b5   : > { %v1527_v24 = vadd.f32 %v1496_v48, %v1460_v25  ;;  %v1528_v36 = vadd.f32 %v1497_v7, %v1461_v61  ;;  %v1602_v43 = vsel %vm1575_vm1, %v1600_v5, %v1601_v40  ;;  %v1664_v63 = vsel %vm1575_vm1, 0.0, %v1600_v5  ;;  %v4561_v48 = vld [vmem:[%s5057_s5] ss:$0 sm:$0xff] }
 0x1b6   : > { %v3550_v15 = vcvt.f32.s32 %v3549_v12  ;;  %v3552_v57 = vcvt.f32.s32 %v3551_v0  ;;  %v1817_v41 = vadd.f32 %v1664_v63, %v1357_v20  ;;  %v1818_v22 = vadd.f32 %v1602_v43, %v1358_v11 }
 0x1b7   : > { %v1729_v27 = vrot.slane %v1527_v24, 1  ;;  %v1730_v10 = vrot.slane %v1528_v36, 1  ;;  %v1090_v60 = vmul.f32 %v3954_v51, %v4097_v3  ;;  %v1091_v21 = vmul.f32 %v3954_v51, %v4103_v30 }
 0x1b8   : > { %v2021_v9 = vshra.s32 %v3550_v15, 8  ;;  %v2022_v6 = vshra.s32 %v3552_v57, 8  ;;  %v1158_v45 = vmul.f32 %v3969_v1, %v5078_v13  ;;  %v1159_v54 = vmul.f32 %v3969_v1, %v5079_v8 }
 0x1b9   : > { %v1731_v19 = vsel %vm1704_vm2, %v1729_v27, %v1730_v10  ;;  %v1793_v32 = vsel %vm1704_vm2, %v1730_v10, 0.0  ;;  %v1122_v53 = vadd.f32 %v1090_v60, %v1054_v29  ;;  %v1123_v31 = vadd.f32 %v1091_v21, %v1055_v37  ;;  %v4576_v37 = vld [vmem:[%s5058_s6] ss:$0 sm:$0xff] }
 0x1ba   : > { %v2053_v4 = vcvt.s32.f32 %v2021_v9  ;;  %v2054_v47 = vcvt.s32.f32 %v2022_v6  ;;  %v1849_v18 = vadd.f32 %v1817_v41, %v1731_v19  ;;  %v1850_v46 = vadd.f32 %v1818_v22, %v1793_v32 }
 0x1bb   : > { %v1189_v20 = vadd.f32 %v1158_v45, %v1122_v53  ;;  %v1190_v11 = vadd.f32 %v1159_v54, %v1123_v31  ;;  %v1224_v16 = vmul.f32 %v3956_v52, %v4101_v26  ;;  %v1225_v58 = vmul.f32 %v3956_v52, %v4105_v33 }
 0x1bc   : > { %v3188_v38 = vclamps-f32 %v2053_v4, 127.0  ;;  %v3189_v49 = vclamps-f32 %v2054_v47, 127.0  ;;  %v1888_v7 = vmul.f32 %v4561_v48, %v1849_v18  ;;  %v1889_v25 = vmul.f32 %v4561_v48, %v1850_v46 }
 0x1bd   : > { %v1260_v61 = vmul.f32 %v3959_v55, %v4097_v3  ;;  %v1261_v5 = vmul.f32 %v3959_v55, %v4103_v30  ;;  %v1328_v40 = vmul.f32 %v3971_v2, %v5078_v13  ;;  %v1329_v12 = vmul.f32 %v3971_v2, %v5079_v8 }
 0x1be   : > { %v2149_v0 = vmax.f32 %v3188_v38, 0.0  ;;  %v2150_v29 = vmax.f32 %v3189_v49, 0.0  ;;  %v1927_v24 = vadd.f32 %v4576_v37, %v1888_v7  ;;  %v1928_v36 = vadd.f32 %v4576_v37, %v1889_v25 }
 0x1bf   : > { %v1292_v43 = vadd.f32 %v1260_v61, %v1224_v16  ;;  %v1293_v63 = vadd.f32 %v1261_v5, %v1225_v58  ;;  %v1394_v15 = vmul.f32 %v3961_v56, %v4101_v26  ;;  %v1395_v57 = vmul.f32 %v3961_v56, %v4105_v33 }
 0x1c0   : > { %v2174_v41 = vpack.c.bf16 %v2150_v29, %v2149_v0  ;;  %v1959_v22 = vadd.f32 128.0, %v1927_v24  ;;  %v1960_v27 = vadd.f32 128.0, %v1928_v36  ;;  %v1430_v10 = vmul.f32 %v3964_v59, %v4097_v3  ;;  %v5080_v24 = vld [vmem:[#allocation4_spill] sm:$0xff] }
 0x1c1   : > { %v1359_v60 = vadd.f32 %v1328_v40, %v1292_v43  ;;  %v1360_v21 = vadd.f32 %v1329_v12, %v1293_v63  ;;  %v1431_v9 = vmul.f32 %v3964_v59, %v4103_v30  ;;  %v1498_v6 = vmul.f32 %v4532_v28, %v5078_v13  ;;  %v5081_v43 = vld [vmem:[#allocation6_spill] sm:$0xff] }
 0x1c2   : > { %3422 = vmatmul.mubr.bf16.gmra.mrb[8].mxu1 %v2174_v41  ;;  %v3553_v45 = vtrunc.f32 %v1959_v22  ;;  %v3555_v26 = vtrunc.f32 %v1960_v27  ;;  %v1462_v54 = vadd.f32 %v1430_v10, %v1394_v15  ;;  %v1499_v33 = vmul.f32 %v4532_v28, %v5079_v8 }
 0x1c3   : > { %v1463_v19 = vadd.f32 %v1431_v9, %v1395_v57  ;;  %v1603_v32 = vrot.slane %v1189_v20, 7  ;;  %v1604_v53 = vrot.slane %v1190_v11, 7  ;;  %v1056_v31 = vmul.f32 %v3949_v42, %v4097_v3 }
 0x1c4   : > { %v3554_v4 = vcvt.f32.s32 %v3553_v45  ;;  %v3556_v47 = vcvt.f32.s32 %v3555_v26  ;;  %v1529_v18 = vadd.f32 %v1498_v6, %v1462_v54  ;;  %v1057_v46 = vmul.f32 %v3949_v42, %v4103_v30 }
 0x1c5   : > { %v1530_v16 = vadd.f32 %v1499_v33, %v1463_v19  ;;  %v1605_v58 = vsel %vm1575_vm1, %v1603_v32, %v1604_v53  ;;  %v1665_v38 = vsel %vm1575_vm1, 0.0, %v1603_v32  ;;  %v1092_v49 = vmul.f32 %v3954_v51, %v5078_v13 }
 0x1c6   : > { %v2023_v7 = vshra.s32 %v3554_v4, 8  ;;  %v2024_v20 = vshra.s32 %v3556_v47, 8  ;;  %v1732_v11 = vrot.slane %v1529_v18, 1  ;;  %v1819_v25 = vadd.f32 %v1665_v38, %v1359_v60 }
 0x1c7   : > { %v1733_v61 = vrot.slane %v1530_v16, 1  ;;  %v1820_v5 = vadd.f32 %v1605_v58, %v1360_v21  ;;  %v1093_v40 = vmul.f32 %v3954_v51, %v5079_v8  ;;  %v1124_v12 = vadd.f32 %v1092_v49, %v1056_v31 }
 0x1c8   : > { %v2055_v0 = vcvt.s32.f32 %v2023_v7  ;;  %v2056_v29 = vcvt.s32.f32 %v2024_v20  ;;  %v1160_v36 = vmul.f32 %v3969_v1, %v5080_v24  ;;  %v1161_v63 = vmul.f32 %v3969_v1, %v5081_v43 }
 0x1c9   : > { %v1734_v15 = vsel %vm1704_vm2, %v1732_v11, %v1733_v61  ;;  %v1794_v57 = vsel %vm1704_vm2, %v1733_v61, 0.0  ;;  %v1125_v41 = vadd.f32 %v1093_v40, %v1057_v46  ;;  %v1226_v22 = vmul.f32 %v3956_v52, %v4097_v3 }
 0x1ca   : > { %v3190_v27 = vclamps-f32 %v2055_v0, 127.0  ;;  %v3191_v10 = vclamps-f32 %v2056_v29, 127.0  ;;  %v1851_v60 = vadd.f32 %v1819_v25, %v1734_v15  ;;  %v1852_v21 = vadd.f32 %v1820_v5, %v1794_v57 }
 0x1cb   : > { %v1191_v9 = vadd.f32 %v1160_v36, %v1124_v12  ;;  %v1192_v6 = vadd.f32 %v1161_v63, %v1125_v41  ;;  %v1227_v45 = vmul.f32 %v3956_v52, %v4103_v30  ;;  %v1262_v26 = vmul.f32 %v3959_v55, %v5078_v13 }
 0x1cc   : > { %v2151_v54 = vmax.f32 %v3190_v27, 0.0  ;;  %v2152_v33 = vmax.f32 %v3191_v10, 0.0  ;;  %v1890_v19 = vmul.f32 %v4561_v48, %v1851_v60  ;;  %v1891_v32 = vmul.f32 %v4561_v48, %v1852_v21 }
 0x1cd   : > { %v1263_v53 = vmul.f32 %v3959_v55, %v5079_v8  ;;  %v1294_v31 = vadd.f32 %v1262_v26, %v1226_v22  ;;  %v1330_v4 = vmul.f32 %v3971_v2, %v5080_v24  ;;  %v1331_v47 = vmul.f32 %v3971_v2, %v5081_v43 }
 0x1ce   : > { %v2175_v18 = vpack.c.bf16 %v2152_v33, %v2151_v54  ;;  %v1929_v46 = vadd.f32 %v4576_v37, %v1890_v19  ;;  %v1930_v16 = vadd.f32 %v4576_v37, %v1891_v32  ;;  %v1396_v58 = vmul.f32 %v3961_v56, %v4097_v3 }
 0x1cf   : > { %v1295_v38 = vadd.f32 %v1263_v53, %v1227_v45  ;;  %v1361_v49 = vadd.f32 %v1330_v4, %v1294_v31  ;;  %v1397_v7 = vmul.f32 %v3961_v56, %v4103_v30  ;;  %v1432_v20 = vmul.f32 %v3964_v59, %v5078_v13 }
 0x1d0   : > { %3425 = vmatprep.mubr.bf16.mxu1 %v2175_v18  ;;  %v1961_v11 = vadd.f32 128.0, %v1929_v46  ;;  %v1962_v25 = vadd.f32 128.0, %v1930_v16  ;;  %v1433_v61 = vmul.f32 %v3964_v59, %v5079_v8  ;;  %v1500_v5 = vmul.f32 %v4532_v28, %v5080_v24 }
 0x1d1   : > { %v1362_v40 = vadd.f32 %v1331_v47, %v1295_v38  ;;  %v1464_v12 = vadd.f32 %v1432_v20, %v1396_v58  ;;  %v1501_v3 = vmul.f32 %v4532_v28, %v5081_v43  ;;  %v1606_v0 = vrot.slane %v1191_v9, 7 }
 0x1d2   : > { %v3557_v29 = vtrunc.f32 %v1961_v11  ;;  %v3559_v30 = vtrunc.f32 %v1962_v25  ;;  %v1465_v36 = vadd.f32 %v1433_v61, %v1397_v7  ;;  %v1607_v63 = vrot.slane %v1192_v6, 7 }
 0x1d3   : > { %v1531_v15 = vadd.f32 %v1500_v5, %v1464_v12  ;;  %v1666_v57 = vsel %vm1575_vm1, 0.0, %v1606_v0  ;;  %v1058_v41 = vmul.f32 %v3949_v42, %v5078_v13  ;;  %v1059_v22 = vmul.f32 %v3949_v42, %v5079_v8 }
 0x1d4   : > { %v3558_v27 = vcvt.f32.s32 %v3557_v29  ;;  %v3560_v10 = vcvt.f32.s32 %v3559_v30  ;;  %v1532_v60 = vadd.f32 %v1501_v3, %v1465_v36  ;;  %v1608_v21 = vsel %vm1575_vm1, %v1606_v0, %v1607_v63 }
 0x1d5   : > { %v1735_v45 = vrot.slane %v1531_v15, 1  ;;  %v1821_v9 = vadd.f32 %v1666_v57, %v1361_v49  ;;  %v1822_v26 = vadd.f32 %v1608_v21, %v1362_v40  ;;  %v1094_v6 = vmul.f32 %v3954_v51, %v5080_v24 }
 0x1d6   : > { %v2025_v54 = vshra.s32 %v3558_v27, 8  ;;  %v2026_v33 = vshra.s32 %v3560_v10, 8  ;;  %v1736_v19 = vrot.slane %v1532_v60, 1  ;;  %v1095_v32 = vmul.f32 %v3954_v51, %v5081_v43 }
 0x1d7   : > { %v1126_v53 = vadd.f32 %v1094_v6, %v1058_v41  ;;  %v1162_v31 = vmul.f32 %v3969_v1, %v4157_v23  ;;  %v1163_v4 = vmul.f32 %v3969_v1, %v4163_v17  ;;  %v1228_v47 = vmul.f32 %v3956_v52, %v5078_v13 }
 0x1d8   : > { %v2057_v18 = vcvt.s32.f32 %v2025_v54  ;;  %v2058_v46 = vcvt.s32.f32 %v2026_v33  ;;  %v1737_v16 = vsel %vm1704_vm2, %v1735_v45, %v1736_v19  ;;  %v1795_v58 = vsel %vm1704_vm2, %v1736_v19, 0.0 }
 0x1d9   : > { %v1853_v38 = vadd.f32 %v1821_v9, %v1737_v16  ;;  %v1854_v49 = vadd.f32 %v1822_v26, %v1795_v58  ;;  %v1127_v7 = vadd.f32 %v1095_v32, %v1059_v22  ;;  %v1193_v20 = vadd.f32 %v1162_v31, %v1126_v53 }
 0x1da   : > { %v3192_v11 = vclamps-f32 %v2057_v18, 127.0  ;;  %v3193_v25 = vclamps-f32 %v2058_v46, 127.0  ;;  %v1229_v61 = vmul.f32 %v3956_v52, %v5079_v8  ;;  %v1264_v5 = vmul.f32 %v3959_v55, %v5080_v24 }
 0x1db   : > { %v1892_v40 = vmul.f32 %v4561_v48, %v1853_v38  ;;  %v1893_v12 = vmul.f32 %v4561_v48, %v1854_v49  ;;  %v1194_v3 = vadd.f32 %v1163_v4, %v1127_v7  ;;  %v1265_v0 = vmul.f32 %v3959_v55, %v5081_v43 }
 0x1dc   : > { %v2153_v29 = vmax.f32 %v3192_v11, 0.0  ;;  %v2154_v30 = vmax.f32 %v3193_v25, 0.0  ;;  %v1296_v36 = vadd.f32 %v1264_v5, %v1228_v47  ;;  %v1332_v63 = vmul.f32 %v3971_v2, %v4157_v23 }
 0x1dd   : > { %v1931_v15 = vadd.f32 %v4576_v37, %v1892_v40  ;;  %v1932_v57 = vadd.f32 %v4576_v37, %v1893_v12  ;;  %v1297_v41 = vadd.f32 %v1265_v0, %v1229_v61  ;;  %v1333_v22 = vmul.f32 %v3971_v2, %v4163_v17 }
 0x1de   : > { %v2176_v27 = vpack.c.bf16 %v2154_v30, %v2153_v29  ;;  %v1363_v10 = vadd.f32 %v1332_v63, %v1296_v36  ;;  %v1398_v60 = vmul.f32 %v3961_v56, %v5078_v13  ;;  %v1399_v21 = vmul.f32 %v3961_v56, %v5079_v8 }
 0x1df   : > { %v1963_v45 = vadd.f32 128.0, %v1931_v15  ;;  %v1964_v9 = vadd.f32 128.0, %v1932_v57  ;;  %v1364_v26 = vadd.f32 %v1333_v22, %v1297_v41  ;;  %v1434_v6 = vmul.f32 %v3964_v59, %v5080_v24 }
 0x1e0   : > { %3426 = vmatmul.mubr.bf16.gmra.mrb[12].mxu1 %v2176_v27  ;;  %v1435_v54 = vmul.f32 %v3964_v59, %v5081_v43  ;;  %v1502_v33 = vmul.f32 %v4532_v28, %v4157_v23  ;;  %v1503_v19 = vmul.f32 %v4532_v28, %v4163_v17  ;;  %v1609_v13 = vrot.slane %v1193_v20, 7 }
 0x1e1   : > { %v3561_v32 = vtrunc.f32 %v1963_v45  ;;  %v3563_v53 = vtrunc.f32 %v1964_v9  ;;  %v1466_v8 = vadd.f32 %v1434_v6, %v1398_v60  ;;  %v1610_v31 = vrot.slane %v1194_v3, 7 }
 0x1e2   : > { %v1467_v4 = vadd.f32 %v1435_v54, %v1399_v21  ;;  %v1667_v47 = vsel %vm1575_vm1, 0.0, %v1609_v13  ;;  %v1060_v18 = vmul.f32 %v3949_v42, %v5080_v24  ;;  %v1061_v46 = vmul.f32 %v3949_v42, %v5081_v43 }
 0x1e3   : > { %v3562_v16 = vcvt.f32.s32 %v3561_v32  ;;  %v3564_v58 = vcvt.f32.s32 %v3563_v53  ;;  %v1533_v38 = vadd.f32 %v1502_v33, %v1466_v8  ;;  %v1611_v49 = vsel %vm1575_vm1, %v1609_v13, %v1610_v31 }
 0x1e4   : > { %v1534_v7 = vadd.f32 %v1503_v19, %v1467_v4  ;;  %v1823_v20 = vadd.f32 %v1667_v47, %v1363_v10  ;;  %v1824_v11 = vadd.f32 %v1611_v49, %v1364_v26  ;;  %v1096_v25 = vmul.f32 %v3954_v51, %v4157_v23 }
 0x1e5   : > { %v2027_v61 = vshra.s32 %v3562_v16, 8  ;;  %v2028_v5 = vshra.s32 %v3564_v58, 8  ;;  %v1738_v40 = vrot.slane %v1533_v38, 1  ;;  %v1097_v12 = vmul.f32 %v3954_v51, %v4163_v17 }
 0x1e6   : > { %v1739_v3 = vrot.slane %v1534_v7, 1  ;;  %v1128_v0 = vadd.f32 %v1096_v25, %v1060_v18  ;;  %v1164_v29 = vmul.f32 %v3969_v1, %v4153_v34  ;;  %v1165_v30 = vmul.f32 %v3969_v1, %v4161_v50 }
 0x1e7   : > { %v2059_v36 = vcvt.s32.f32 %v2027_v61  ;;  %v2060_v63 = vcvt.s32.f32 %v2028_v5  ;;  %v1129_v15 = vadd.f32 %v1097_v12, %v1061_v46  ;;  %v1230_v57 = vmul.f32 %v3956_v52, %v5080_v24 }
 0x1e8   : > { %v1740_v41 = vsel %vm1704_vm2, %v1738_v40, %v1739_v3  ;;  %v1796_v22 = vsel %vm1704_vm2, %v1739_v3, 0.0  ;;  %v1195_v27 = vadd.f32 %v1164_v29, %v1128_v0  ;;  %v1231_v10 = vmul.f32 %v3956_v52, %v5081_v43 }
 0x1e9   : > { %v3194_v60 = vclamps-f32 %v2059_v36, 127.0  ;;  %v3195_v21 = vclamps-f32 %v2060_v63, 127.0  ;;  %v1855_v45 = vadd.f32 %v1823_v20, %v1740_v41  ;;  %v1856_v9 = vadd.f32 %v1824_v11, %v1796_v22 }
 0x1ea   : > { %v1196_v26 = vadd.f32 %v1165_v30, %v1129_v15  ;;  %v1266_v6 = vmul.f32 %v3959_v55, %v4157_v23  ;;  %v1267_v54 = vmul.f32 %v3959_v55, %v4163_v17  ;;  %v1334_v33 = vmul.f32 %v3971_v2, %v4153_v34 }
 0x1eb   : > { %v2155_v19 = vmax.f32 %v3194_v60, 0.0  ;;  %v2156_v13 = vmax.f32 %v3195_v21, 0.0  ;;  %v1894_v32 = vmul.f32 %v4561_v48, %v1855_v45  ;;  %v1895_v53 = vmul.f32 %v4561_v48, %v1856_v9 }
 0x1ec   : > { %v1298_v8 = vadd.f32 %v1266_v6, %v1230_v57  ;;  %v1299_v31 = vadd.f32 %v1267_v54, %v1231_v10  ;;  %v1335_v4 = vmul.f32 %v3971_v2, %v4161_v50  ;;  %v1400_v47 = vmul.f32 %v3961_v56, %v5080_v24 }
 0x1ed   : > { %v2177_v18 = vpack.c.bf16 %v2156_v13, %v2155_v19  ;;  %v1933_v46 = vadd.f32 %v4576_v37, %v1894_v32  ;;  %v1934_v16 = vadd.f32 %v4576_v37, %v1895_v53  ;;  %v1401_v58 = vmul.f32 %v3961_v56, %v5081_v43 }
 0x1ee   : > { %v1365_v38 = vadd.f32 %v1334_v33, %v1298_v8  ;;  %v1366_v49 = vadd.f32 %v1335_v4, %v1299_v31  ;;  %v1436_v7 = vmul.f32 %v3964_v59, %v4157_v23  ;;  %v1437_v20 = vmul.f32 %v3964_v59, %v4163_v17 }
 0x1ef   : > { %3429 = vmatprep.mubr.bf16.mxu1 %v2177_v18  ;;  %v1965_v11 = vadd.f32 128.0, %v1933_v46  ;;  %v1966_v25 = vadd.f32 128.0, %v1934_v16  ;;  %v1504_v24 = vmul.f32 %v4532_v28, %v4153_v34  ;;  %v1505_v61 = vmul.f32 %v4532_v28, %v4161_v50 }
 0x1f0   : > { %v1468_v5 = vadd.f32 %v1436_v7, %v1400_v47  ;;  %v1469_v40 = vadd.f32 %v1437_v20, %v1401_v58  ;;  %v1612_v43 = vrot.slane %v1195_v27, 7  ;;  %v1613_v12 = vrot.slane %v1196_v26, 7 }
 0x1f1   : > { %v3565_v3 = vtrunc.f32 %v1965_v11  ;;  %v3567_v0 = vtrunc.f32 %v1966_v25  ;;  %v1062_v29 = vmul.f32 %v3949_v42, %v4157_v23  ;;  %v1063_v30 = vmul.f32 %v3949_v42, %v4163_v17 }
 0x1f2   : > { %v1535_v36 = vadd.f32 %v1504_v24, %v1468_v5  ;;  %v1536_v63 = vadd.f32 %v1505_v61, %v1469_v40  ;;  %v1614_v15 = vsel %vm1575_vm1, %v1612_v43, %v1613_v12  ;;  %v1668_v57 = vsel %vm1575_vm1, 0.0, %v1612_v43 }
 0x1f3   : > { %v3566_v41 = vcvt.f32.s32 %v3565_v3  ;;  %v3568_v22 = vcvt.f32.s32 %v3567_v0  ;;  %v1825_v10 = vadd.f32 %v1668_v57, %v1365_v38  ;;  %v1826_v60 = vadd.f32 %v1614_v15, %v1366_v49 }
 0x1f4   : > { %v1741_v27 = vrot.slane %v1535_v36, 1  ;;  %v1742_v21 = vrot.slane %v1536_v63, 1  ;;  %v1098_v45 = vmul.f32 %v3954_v51, %v4153_v34  ;;  %v1099_v9 = vmul.f32 %v3954_v51, %v4161_v50 }
 0x1f5   : > { %v2029_v26 = vshra.s32 %v3566_v41, 8  ;;  %v2030_v6 = vshra.s32 %v3568_v22, 8  ;;  %v1166_v54 = vmul.f32 %v3969_v1, %v4215_v62  ;;  %v1167_v33 = vmul.f32 %v3969_v1, %v4221_v39 }
 0x1f6   : > { %v1743_v19 = vsel %vm1704_vm2, %v1741_v27, %v1742_v21  ;;  %v1797_v13 = vsel %vm1704_vm2, %v1742_v21, 0.0  ;;  %v1130_v32 = vadd.f32 %v1098_v45, %v1062_v29  ;;  %v1131_v53 = vadd.f32 %v1099_v9, %v1063_v30 }
 0x1f7   : > { %v2061_v8 = vcvt.s32.f32 %v2029_v26  ;;  %v2062_v31 = vcvt.s32.f32 %v2030_v6  ;;  %v1857_v4 = vadd.f32 %v1825_v10, %v1743_v19  ;;  %v1858_v47 = vadd.f32 %v1826_v60, %v1797_v13 }
 0x1f8   : > { %v1197_v18 = vadd.f32 %v1166_v54, %v1130_v32  ;;  %v1198_v46 = vadd.f32 %v1167_v33, %v1131_v53  ;;  %v1232_v16 = vmul.f32 %v3956_v52, %v4157_v23  ;;  %v1233_v58 = vmul.f32 %v3956_v52, %v4163_v17 }
 0x1f9   : > { %v3196_v38 = vclamps-f32 %v2061_v8, 127.0  ;;  %v3197_v49 = vclamps-f32 %v2062_v31, 127.0  ;;  %v1896_v7 = vmul.f32 %v4561_v48, %v1857_v4  ;;  %v1897_v20 = vmul.f32 %v4561_v48, %v1858_v47 }
 0x1fa   : > { %v1268_v11 = vmul.f32 %v3959_v55, %v4153_v34  ;;  %v1269_v25 = vmul.f32 %v3959_v55, %v4161_v50  ;;  %v1336_v24 = vmul.f32 %v3971_v2, %v4215_v62  ;;  %v1337_v61 = vmul.f32 %v3971_v2, %v4221_v39 }
 0x1fb   : > { %v2157_v5 = vmax.f32 %v3196_v38, 0.0  ;;  %v2158_v40 = vmax.f32 %v3197_v49, 0.0  ;;  %v1935_v43 = vadd.f32 %v4576_v37, %v1896_v7  ;;  %v1936_v12 = vadd.f32 %v4576_v37, %v1897_v20 }
 0x1fc   : > { %v1300_v3 = vadd.f32 %v1268_v11, %v1232_v16  ;;  %v1301_v0 = vadd.f32 %v1269_v25, %v1233_v58  ;;  %v1402_v29 = vmul.f32 %v3961_v56, %v4157_v23  ;;  %v1403_v30 = vmul.f32 %v3961_v56, %v4163_v17 }
 0x1fd   : > { %v2178_v36 = vpack.c.bf16 %v2158_v40, %v2157_v5  ;;  %v1967_v63 = vadd.f32 128.0, %v1935_v43  ;;  %v1968_v15 = vadd.f32 128.0, %v1936_v12  ;;  %v1438_v57 = vmul.f32 %v3964_v59, %v4153_v34 }
 0x1fe   : > { %v1367_v41 = vadd.f32 %v1336_v24, %v1300_v3  ;;  %v1368_v22 = vadd.f32 %v1337_v61, %v1301_v0  ;;  %v1439_v10 = vmul.f32 %v3964_v59, %v4161_v50  ;;  %v1506_v60 = vmul.f32 %v4532_v28, %v4215_v62 }
 0x1ff   : > { %3430 = vmatmul.mubr.bf16.gmra.mrb[16].mxu1 %v2178_v36  ;;  %v3569_v27 = vtrunc.f32 %v1967_v63  ;;  %v3571_v23 = vtrunc.f32 %v1968_v15  ;;  %v1470_v21 = vadd.f32 %v1438_v57, %v1402_v29  ;;  %v1507_v17 = vmul.f32 %v4532_v28, %v4221_v39 }
 0x200   : > { %v1471_v45 = vadd.f32 %v1439_v10, %v1403_v30  ;;  %v1615_v9 = vrot.slane %v1197_v18, 7  ;;  %v1616_v26 = vrot.slane %v1198_v46, 7  ;;  %v1064_v6 = vmul.f32 %v3949_v42, %v4153_v34 }
 0x201   : > { %v3570_v54 = vcvt.f32.s32 %v3569_v27  ;;  %v3572_v33 = vcvt.f32.s32 %v3571_v23  ;;  %v1537_v19 = vadd.f32 %v1506_v60, %v1470_v21  ;;  %v1065_v13 = vmul.f32 %v3949_v42, %v4161_v50 }
 0x202   : > { %v1538_v32 = vadd.f32 %v1507_v17, %v1471_v45  ;;  %v1617_v53 = vsel %vm1575_vm1, %v1615_v9, %v1616_v26  ;;  %v1669_v8 = vsel %vm1575_vm1, 0.0, %v1615_v9  ;;  %v1100_v31 = vmul.f32 %v3954_v51, %v4215_v62 }
 0x203   : > { %v2031_v4 = vshra.s32 %v3570_v54, 8  ;;  %v2032_v47 = vshra.s32 %v3572_v33, 8  ;;  %v1744_v18 = vrot.slane %v1537_v19, 1  ;;  %v1827_v46 = vadd.f32 %v1669_v8, %v1367_v41 }
 0x204   : > { %v1745_v16 = vrot.slane %v1538_v32, 1  ;;  %v1828_v58 = vadd.f32 %v1617_v53, %v1368_v22  ;;  %v1101_v38 = vmul.f32 %v3954_v51, %v4221_v39  ;;  %v1132_v49 = vadd.f32 %v1100_v31, %v1064_v6 }
 0x205   : > { %v2063_v7 = vcvt.s32.f32 %v2031_v4  ;;  %v2064_v20 = vcvt.s32.f32 %v2032_v47  ;;  %v1168_v11 = vmul.f32 %v3969_v1, %v4213_v44  ;;  %v1169_v25 = vmul.f32 %v3969_v1, %v4218_v14 }
 0x206   : > { %v1746_v24 = vsel %vm1704_vm2, %v1744_v18, %v1745_v16  ;;  %v1798_v61 = vsel %vm1704_vm2, %v1745_v16, 0.0  ;;  %v1133_v5 = vadd.f32 %v1101_v38, %v1065_v13  ;;  %v1234_v40 = vmul.f32 %v3956_v52, %v4153_v34 }
 0x207   : > { %v3198_v43 = vclamps-f32 %v2063_v7, 127.0  ;;  %v3199_v12 = vclamps-f32 %v2064_v20, 127.0  ;;  %v1859_v3 = vadd.f32 %v1827_v46, %v1746_v24  ;;  %v1860_v0 = vadd.f32 %v1828_v58, %v1798_v61 }
 0x208   : > { %v1199_v29 = vadd.f32 %v1168_v11, %v1132_v49  ;;  %v1200_v30 = vadd.f32 %v1169_v25, %v1133_v5  ;;  %v1235_v36 = vmul.f32 %v3956_v52, %v4161_v50  ;;  %v1270_v63 = vmul.f32 %v3959_v55, %v4215_v62 }
 0x209   : > { %v2159_v15 = vmax.f32 %v3198_v43, 0.0  ;;  %v2160_v57 = vmax.f32 %v3199_v12, 0.0  ;;  %v1898_v41 = vmul.f32 %v4561_v48, %v1859_v3  ;;  %v1899_v22 = vmul.f32 %v4561_v48, %v1860_v0 }
 0x20a   : > { %v1271_v10 = vmul.f32 %v3959_v55, %v4221_v39  ;;  %v1302_v60 = vadd.f32 %v1270_v63, %v1234_v40  ;;  %v1338_v27 = vmul.f32 %v3971_v2, %v4213_v44  ;;  %v1339_v23 = vmul.f32 %v3971_v2, %v4218_v14 }
 0x20b   : > { %v2179_v21 = vpack.c.bf16 %v2160_v57, %v2159_v15  ;;  %v1937_v17 = vadd.f32 %v4576_v37, %v1898_v41  ;;  %v1938_v45 = vadd.f32 %v4576_v37, %v1899_v22  ;;  %v1404_v9 = vmul.f32 %v3961_v56, %v4153_v34 }
 0x20c   : > { %v1303_v26 = vadd.f32 %v1271_v10, %v1235_v36  ;;  %v1369_v6 = vadd.f32 %v1338_v27, %v1302_v60  ;;  %v1405_v54 = vmul.f32 %v3961_v56, %v4161_v50  ;;  %v1440_v33 = vmul.f32 %v3964_v59, %v4215_v62 }
 0x20d   : > { %3433 = vmatprep.mubr.bf16.mxu1 %v2179_v21  ;;  %v1969_v19 = vadd.f32 128.0, %v1937_v17  ;;  %v1970_v13 = vadd.f32 128.0, %v1938_v45  ;;  %v1441_v32 = vmul.f32 %v3964_v59, %v4221_v39  ;;  %v1508_v53 = vmul.f32 %v4532_v28, %v4213_v44 }
 0x20e   : > { %v1370_v8 = vadd.f32 %v1339_v23, %v1303_v26  ;;  %v1472_v31 = vadd.f32 %v1440_v33, %v1404_v9  ;;  %v1509_v34 = vmul.f32 %v4532_v28, %v4218_v14  ;;  %v1618_v4 = vrot.slane %v1199_v29, 7 }
 0x20f   : > { %v3573_v47 = vtrunc.f32 %v1969_v19  ;;  %v3575_v50 = vtrunc.f32 %v1970_v13  ;;  %v1473_v18 = vadd.f32 %v1441_v32, %v1405_v54  ;;  %v1619_v46 = vrot.slane %v1200_v30, 7 }
 0x210   : > { %v1539_v16 = vadd.f32 %v1508_v53, %v1472_v31  ;;  %v1670_v58 = vsel %vm1575_vm1, 0.0, %v1618_v4  ;;  %v1066_v38 = vmul.f32 %v3949_v42, %v4215_v62  ;;  %v1067_v49 = vmul.f32 %v3949_v42, %v4221_v39 }
 0x211   : > { %v3574_v7 = vcvt.f32.s32 %v3573_v47  ;;  %v3576_v20 = vcvt.f32.s32 %v3575_v50  ;;  %v1540_v11 = vadd.f32 %v1509_v34, %v1473_v18  ;;  %v1620_v25 = vsel %vm1575_vm1, %v1618_v4, %v1619_v46 }
 0x212   : > { %v1747_v24 = vrot.slane %v1539_v16, 1  ;;  %v1829_v61 = vadd.f32 %v1670_v58, %v1369_v6  ;;  %v1830_v5 = vadd.f32 %v1620_v25, %v1370_v8  ;;  %v1102_v40 = vmul.f32 %v3954_v51, %v4213_v44 }
 0x213   : > { %v2033_v43 = vshra.s32 %v3574_v7, 8  ;;  %v2034_v12 = vshra.s32 %v3576_v20, 8  ;;  %v1748_v3 = vrot.slane %v1540_v11, 1  ;;  %v1135_v0 = vadd.f32 %v4225_v35, %v1067_v49 }
 0x214   : > { %v1134_v29 = vadd.f32 %v1102_v40, %v1066_v38  ;;  %v1170_v30 = vmul.f32 0.0, %v3969_v1  ;;  %v1236_v42 = vmul.f32 %v3956_v52, %v4215_v62  ;;  %v1237_v36 = vmul.f32 %v3956_v52, %v4221_v39 }
 0x215   : > { %v2065_v63 = vcvt.s32.f32 %v2033_v43  ;;  %v2066_v15 = vcvt.s32.f32 %v2034_v12  ;;  %v1749_v57 = vsel %vm1704_vm2, %v1747_v24, %v1748_v3  ;;  %v1799_v51 = vsel %vm1704_vm2, %v1748_v3, 0.0 }
 0x216   : > { %v1861_v41 = vadd.f32 %v1829_v61, %v1749_v57  ;;  %v1862_v22 = vadd.f32 %v1830_v5, %v1799_v51  ;;  %v1201_v10 = vadd.f32 %v1170_v30, %v1134_v29  ;;  %v1202_v60 = vadd.f32 %v1170_v30, %v1135_v0 }
 0x217   : > { %v3200_v35 = vclamps-f32 %v2065_v63, 127.0  ;;  %v3201_v27 = vclamps-f32 %v2066_v15, 127.0  ;;  %v1272_v1 = vmul.f32 %v3959_v55, %v4213_v44  ;;  %v1273_v23 = vmul.f32 %v3959_v55, %v4218_v14 }
 0x218   : > { %v1900_v52 = vmul.f32 %v4561_v48, %v1861_v41  ;;  %v1901_v21 = vmul.f32 %v4561_v48, %v1862_v22  ;;  %v1340_v17 = vmul.f32 0.0, %v3971_v2  ;;  %v1406_v45 = vmul.f32 %v3961_v56, %v4215_v62  ;;  %v3766_v41 = vld [vmem:[%s3875_s27 + $0x8] sm:$0xff]  }
 0x219   : > { %v2161_v9 = vmax.f32 %v3200_v35, 0.0  ;;  %v2162_v26 = vmax.f32 %v3201_v27, 0.0  ;;  %v1304_v6 = vadd.f32 %v1272_v1, %v1236_v42  ;;  %v1305_v54 = vadd.f32 %v1273_v23, %v1237_v36  ;;  %v4858_v35 = vld [vmem:[%s5062_s10] ss:$0 sm:$0xff] }
 0x21a   : > { %v1939_v33 = vadd.f32 %v4576_v37, %v1900_v52  ;;  %v1940_v19 = vadd.f32 %v4576_v37, %v1901_v21  ;;  %v1407_v55 = vmul.f32 %v3961_v56, %v4221_v39  ;;  %v1442_v13 = vmul.f32 %v3964_v59, %v4213_v44 }
 0x21b   : > { %v2180_v32 = vpack.c.bf16 %v2162_v26, %v2161_v9  ;;  %v1443_v2 = vmul.f32 %v3964_v59, %v4218_v14  ;;  %v1510_v31 = vmul.f32 0.0, %v4532_v28  ;;  %v1621_v4 = vrot.slane %v1201_v10, 7 }
 0x21c   : > { %v1971_v53 = vadd.f32 128.0, %v1939_v33  ;;  %v1972_v62 = vadd.f32 128.0, %v1940_v19  ;;  %v1474_v8 = vadd.f32 %v1442_v13, %v1406_v45  ;;  %v1622_v47 = vrot.slane %v1202_v60, 7 }
 0x21d   : > { %3434 = vmatmul.mubr.bf16.gmra.mrb[20].mxu1 %v2180_v32  ;;  %v1475_v34 = vadd.f32 %v1443_v2, %v1407_v55  ;;  %v1371_v46 = vadd.f32 %v1340_v17, %v1304_v6  ;;  %v1372_v39 = vadd.f32 %v1340_v17, %v1305_v54  ;;  %v1671_v58 = vsel %vm1575_vm1, 0.0, %v1621_v4  ;;  %v4868_v2 = vld [vmem:[%s5060_s8] ss:$0 sm:$0xff] }
 0x21e   : > { %v3577_v50 = vtrunc.f32 %v1971_v53  ;;  %v3579_v18 = vtrunc.f32 %v1972_v62  ;;  %v1541_v56 = vadd.f32 %v1510_v31, %v1474_v8  ;;  %v1623_v44 = vsel %vm1575_vm1, %v1621_v4, %v1622_v47  ;;  %v4873_v4 = vld [vmem:[%s5061_s9] ss:$0 sm:$0xff] }
 0x21f   : > { %v1542_v16 = vadd.f32 %v1510_v31, %v1475_v34  ;;  %v1831_v38 = vadd.f32 %v1671_v58, %v1371_v46  ;;  %v1832_v28 = vadd.f32 %v1623_v44, %v1372_v39  ;;  %v2585_v22 = vunpack.c.l.bf16 %v3766_v41 }
 0x220   : > { %v3578_v59 = vcvt.f32.s32 %v3577_v50  ;;  %v3580_v14 = vcvt.f32.s32 %v3579_v18  ;;  %v1750_v49 = vrot.slane %v1541_v56, 1  ;;  %v2586_v1 = vunpack.c.h.bf16 %v3766_v41 }
 0x221   : > { %v1751_v7 = vrot.slane %v1542_v16, 1  ;;  %v2623_v45 = vmul.f32 %v4858_v35, %v2585_v22 }
 0x222   : > { %v2035_v20 = vshra.s32 %v3578_v59, 8  ;;  %v2036_v11 = vshra.s32 %v3580_v14, 8  ;;  %v2624_v54 = vmul.f32 %v4858_v35, %v2586_v1 }
 0x223   : > { %v1752_v25 = vsel %vm1704_vm2, %v1750_v49, %v1751_v7  ;;  %v1800_v24 = vsel %vm1704_vm2, %v1751_v7, 0.0  ;;  %v3653_v13 = vtrunc.f32 %v2623_v45 }
 0x224   : > { %v2067_v61 = vcvt.s32.f32 %v2035_v20  ;;  %v2068_v5 = vcvt.s32.f32 %v2036_v11  ;;  %v1863_v40 = vadd.f32 %v1831_v38, %v1752_v25  ;;  %v1864_v43 = vadd.f32 %v1832_v28, %v1800_v24 }
 0x225   : > { %v3655_v8 = vtrunc.f32 %v2624_v54  ;;  %v3654_v18 = vcvt.f32.s32 %v3653_v13  ;;  %v3768_v13 = vld [vmem:[%s3875_s27 + $0x18] sm:$0xff]  }
 0x226   : > { %v3202_v12 = vclamps-f32 %v2067_v61, 127.0  ;;  %v3203_v3 = vclamps-f32 %v2068_v5, 127.0  ;;  %v1902_v0 = vmul.f32 %v4561_v48, %v1863_v40  ;;  %v1903_v29 = vmul.f32 %v4561_v48, %v1864_v43  ;;  %v3767_v48 = vld [vmem:[%s3875_s27] sm:$0xff]  }
 0x227   : > { %v2583_v27 = vunpack.c.l.bf16 %v3767_v48  ;;  %v2584_v21 = vunpack.c.h.bf16 %v3767_v48  ;;  %v3656_v59 = vcvt.f32.s32 %v3655_v8  ;;  %v2687_v20 = vadd.s32 128, %v3654_v18 }
 0x228   : > { %v2163_v30 = vmax.f32 %v3202_v12, 0.0  ;;  %v2164_v42 = vmax.f32 %v3203_v3, 0.0  ;;  %v1941_v36 = vadd.f32 %v4576_v37, %v1902_v0  ;;  %v1942_v63 = vadd.f32 %v4576_v37, %v1903_v29 }
 0x229   : > { %v2621_v9 = vmul.f32 %v4858_v35, %v2583_v27  ;;  %v2622_v33 = vmul.f32 %v4858_v35, %v2584_v21  ;;  %v2688_v43 = vadd.s32 128, %v3656_v59 }
 0x22a   : > { %v2181_v15 = vpack.c.bf16 %v2164_v42, %v2163_v30  ;;  %v1973_v57 = vadd.f32 128.0, %v1941_v36  ;;  %v1974_v51 = vadd.f32 128.0, %v1942_v63  ;;  %v2719_v30 = vshra.s32 %v2687_v20, 8 }
 0x22b   : > { %v3649_v32 = vtrunc.f32 %v2621_v9  ;;  %v3651_v31 = vtrunc.f32 %v2622_v33  ;;  %v2720_v41 = vshra.s32 %v2688_v43, 8 }
 0x22c   : > { %3437 = vmatprep.mubr.bf16.mxu1 %v2181_v15  ;;  %v3581_v10 = vtrunc.f32 %v1973_v57  ;;  %v3583_v60 = vtrunc.f32 %v1974_v51 }
 0x22d   : > { %v3650_v56 = vcvt.f32.s32 %v3649_v32  ;;  %v3652_v38 = vcvt.f32.s32 %v3651_v31  ;;  %v2589_v32 = vunpack.c.l.bf16 %v3768_v13 }
 0x22e   : > { %v3582_v23 = vcvt.f32.s32 %v3581_v10  ;;  %v3584_v52 = vcvt.f32.s32 %v3583_v60 }
 0x22f   : > { %v2685_v25 = vadd.s32 128, %v3650_v56  ;;  %v2686_v12 = vadd.s32 128, %v3652_v38 }
 0x230   : > { %v2037_v37 = vshra.s32 %v3582_v23, 8  ;;  %v2038_v17 = vshra.s32 %v3584_v52, 8 }
 0x231   : > { %v2717_v36 = vshra.s32 %v2685_v25, 8  ;;  %v2718_v22 = vshra.s32 %v2686_v12, 8 }
 0x232   : > { %v2069_v26 = vcvt.s32.f32 %v2037_v37  ;;  %v2070_v6 = vcvt.s32.f32 %v2038_v17 }
 0x234   : > { %v3204_v19 = vclamps-f32 %v2069_v26, 127.0  ;;  %v3205_v55 = vclamps-f32 %v2070_v6, 127.0 }
 0x236   : > { %v2165_v53 = vmax.f32 %v3204_v19, 0.0  ;;  %v2166_v62 = vmax.f32 %v3205_v55, 0.0 }
 0x237   : > { %v3411_v34 = vpop.f32.mrb[32].mxu0 }
 0x238   : > { %v2182_v47 = vpack.c.bf16 %v2166_v62, %v2165_v53  ;;  %v2417_v50 = vmul.f32 %v3411_v34, %v4868_v2  ;;  %v2281_v46 = vpop.f32.mrb[33].mxu0  ;;  %v3769_v62 = vld [vmem:[%s3875_s27 + $0x10] sm:$0xff]   ;;  %v2590_v34 = vunpack.c.h.bf16 %v3768_v13 }
 0x239   : > { %v2415_v39 = vmul.f32 %v4868_v2, %v2281_v46  ;;  %v3412_v16 = vpop.f32.mrb[34].mxu0  ;;  %v2587_v8 = vunpack.c.l.bf16 %v3769_v62 }
 0x23a   : > { %3438 = vmatmul.mubr.bf16.gmra.mrb[24].mxu1 %v2182_v47  ;;  %v2456_v44 = vadd.f32 %v4873_v4, %v2417_v50  ;;  %v2418_v58 = vmul.f32 %v3412_v16, %v4868_v2  ;;  %v2284_v14 = vpop.f32.mrb[35].mxu0  ;;  %v2588_v47 = vunpack.c.h.bf16 %v3769_v62  ;;  %v2627_v50 = vmul.f32 %v4858_v35, %v2589_v32 }
 0x23b   : > { %v2454_v49 = vadd.f32 %v4873_v4, %v2415_v39  ;;  %v2416_v7 = vmul.f32 %v4868_v2, %v2284_v14  ;;  %v2625_v18 = vmul.f32 %v4858_v35, %v2587_v8  ;;  %v2628_v46 = vmul.f32 %v4858_v35, %v2590_v34 }
 0x23c   : > { %v3589_v28 = vtrunc.f32 %v2456_v44  ;;  %v2457_v11 = vadd.f32 %v4873_v4, %v2418_v58  ;;  %v2626_v56 = vmul.f32 %v4858_v35, %v2588_v47  ;;  %v3661_v39 = vtrunc.f32 %v2627_v50  ;;  %v3770_v47 = vld [vmem:[%s3875_s27 + $0x28] sm:$0xff]  }
 0x23d   : > { %v3585_v24 = vtrunc.f32 %v2454_v49  ;;  %v2455_v61 = vadd.f32 %v4873_v4, %v2416_v7  ;;  %v3657_v16 = vtrunc.f32 %v2625_v18  ;;  %v3663_v44 = vtrunc.f32 %v2628_v46 }
 0x23e   : > { %v3590_v5 = vcvt.f32.s32 %v3589_v28  ;;  %v3591_v40 = vtrunc.f32 %v2457_v11  ;;  %v3659_v59 = vtrunc.f32 %v2626_v56  ;;  %v3662_v38 = vcvt.f32.s32 %v3661_v39  ;;  %v3771_v56 = vld [vmem:[%s3875_s27 + $0x20] sm:$0xff]  }
 0x23f   : > { %v3586_v3 = vcvt.f32.s32 %v3585_v24  ;;  %v3587_v0 = vtrunc.f32 %v2455_v61  ;;  %v3658_v28 = vcvt.f32.s32 %v3657_v16  ;;  %v3664_v24 = vcvt.f32.s32 %v3663_v44 }
 0x240   : > { %v2520_v29 = vadd.s32 128, %v3590_v5  ;;  %v3592_v42 = vcvt.f32.s32 %v3591_v40  ;;  %v3660_v43 = vcvt.f32.s32 %v3659_v59  ;;  %v2593_v50 = vunpack.c.l.bf16 %v3770_v47 }
 0x241   : > { %v2518_v63 = vadd.s32 128, %v3586_v3  ;;  %v3588_v15 = vcvt.f32.s32 %v3587_v0  ;;  %v2691_v3 = vadd.s32 128, %v3662_v38  ;;  %v2591_v39 = vunpack.c.l.bf16 %v3771_v56 }
 0x242   : > { %v2552_v57 = vshra.s32 %v2520_v29, 8  ;;  %v2521_v51 = vadd.s32 128, %v3592_v42  ;;  %v2594_v44 = vunpack.c.h.bf16 %v3770_v47  ;;  %v2592_v59 = vunpack.c.h.bf16 %v3771_v56 }
 0x243   : > { %v2550_v10 = vshra.s32 %v2518_v63, 8  ;;  %v2519_v60 = vadd.s32 128, %v3588_v15  ;;  %v2692_v15 = vadd.s32 128, %v3664_v24  ;;  %v2629_v38 = vmul.f32 %v4858_v35, %v2591_v39 }
 0x244   : > { %v2751_v48 = vadd.s32 %v2719_v30, %v2552_v57  ;;  %v2553_v27 = vshra.s32 %v2521_v51, 8  ;;  %v2689_v30 = vadd.s32 128, %v3658_v28 }
 0x245   : > { %v2749_v1 = vadd.s32 %v2717_v36, %v2550_v10  ;;  %v2551_v23 = vshra.s32 %v2519_v60, 8  ;;  %v2723_v10 = vshra.s32 %v2691_v3, 8 }
 0x246   : > { %v2783_v52 = vcvt.s32.f32 %v2751_v48  ;;  %v2752_v21 = vadd.s32 %v2720_v41, %v2553_v27  ;;  %v2690_v41 = vadd.s32 128, %v3660_v43  ;;  %v2721_v27 = vshra.s32 %v2689_v30, 8 }
 0x247   : > { %v2781_v37 = vcvt.s32.f32 %v2749_v1  ;;  %v2750_v17 = vadd.s32 %v2718_v22, %v2551_v23 }
 0x248   : > { %v3219_v45 = vclamps-f32 %v2783_v52, 127.0  ;;  %v2784_v9 = vcvt.s32.f32 %v2752_v21  ;;  %v2724_v21 = vshra.s32 %v2692_v15, 8 }
 0x249   : > { %v3217_v26 = vclamps-f32 %v2781_v37, 127.0  ;;  %v2782_v6 = vcvt.s32.f32 %v2750_v17 }
 0x24a   : > { %v3285_v54 = vpack.c.bf16 %v3219_v45, %v3219_v45  ;;  %v3220_v33 = vclamps-f32 %v2784_v9, 127.0  ;;  %v2722_v45 = vshra.s32 %v2690_v41, 8 }
 0x24b   : > { %v3283_v19 = vpack.c.bf16 %v3217_v26, %v3217_v26  ;;  %v3218_v55 = vclamps-f32 %v2782_v6, 127.0 }
 0x24c   : > { %3008 = vst.msk [vmem:[%s4888_s23 + $0x8] sm:$0xf] %vm3005_vm3, %v3285_v54  ;;  %v3286_v53 = vpack.c.bf16 %v3220_v33, %v3220_v33 }
 0x24d   : > { %3006 = vst.msk [vmem:[%s4888_s23] sm:$0xf] %vm3005_vm3, %v3283_v19  ;;  %v3284_v31 = vpack.c.bf16 %v3218_v55, %v3218_v55 }
 0x24e   : > { %3009 = vst.msk [vmem:[%s4888_s23 + $0xc] sm:$0xf] %vm3005_vm3, %v3286_v53 }
 0x24f   : > { %3007 = vst.msk [vmem:[%s4888_s23 + $0x4] sm:$0xf] %vm3005_vm3, %v3284_v31 }
 0x257   : > { %v3415_v58 = vpop.f32.mrb[0].mxu1 }
 0x258   : > { %v2421_v14 = vmul.f32 %v3415_v58, %v4868_v2  ;;  %v2297_v49 = vpop.f32.mrb[1].mxu1 }
 0x259   : > { %v2419_v7 = vmul.f32 %v4868_v2, %v2297_v49  ;;  %v3416_v20 = vpop.f32.mrb[2].mxu1  ;;  %v2632_v49 = vmul.f32 %v4858_v35, %v2594_v44 }
 0x25a   : > { %v2460_v11 = vadd.f32 %v4873_v4, %v2421_v14  ;;  %v2422_v25 = vmul.f32 %v3416_v20, %v4868_v2  ;;  %v2300_v61 = vpop.f32.mrb[3].mxu1  ;;  %v2631_v14 = vmul.f32 %v4858_v35, %v2593_v50  ;;  %v3665_v20 = vtrunc.f32 %v2629_v38 }
 0x25b   : > { %v2458_v5 = vadd.f32 %v4873_v4, %v2419_v7  ;;  %v2420_v40 = vmul.f32 %v4868_v2, %v2300_v61  ;;  %v2630_v7 = vmul.f32 %v4858_v35, %v2592_v59  ;;  %v3772_v59 = vld [vmem:[%s3875_s27 + $0x38] sm:$0xff]  }
 0x25c   : > { %v3597_v12 = vtrunc.f32 %v2460_v11  ;;  %v2461_v0 = vadd.f32 %v4873_v4, %v2422_v25  ;;  %v3669_v28 = vtrunc.f32 %v2631_v14  ;;  %v3671_v11 = vtrunc.f32 %v2632_v49 }
 0x25d   : > { %v3593_v29 = vtrunc.f32 %v2458_v5  ;;  %v2459_v42 = vadd.f32 %v4873_v4, %v2420_v40  ;;  %v3667_v24 = vtrunc.f32 %v2630_v7  ;;  %v2597_v14 = vunpack.c.l.bf16 %v3772_v59  ;;  %v3773_v7 = vld [vmem:[%s3875_s27 + $0x30] sm:$0xff]  }
 0x25e   : > { %v3598_v36 = vcvt.f32.s32 %v3597_v12  ;;  %v3599_v63 = vtrunc.f32 %v2461_v0  ;;  %v3670_v5 = vcvt.f32.s32 %v3669_v28  ;;  %v3666_v12 = vcvt.f32.s32 %v3665_v20 }
 0x25f   : > { %v3594_v57 = vcvt.f32.s32 %v3593_v29  ;;  %v3595_v51 = vtrunc.f32 %v2459_v42  ;;  %v3672_v30 = vcvt.f32.s32 %v3671_v11  ;;  %v3668_v15 = vcvt.f32.s32 %v3667_v24 }
 0x260   : > { %v2524_v22 = vadd.s32 128, %v3598_v36  ;;  %v3600_v60 = vcvt.f32.s32 %v3599_v63  ;;  %v2595_v28 = vunpack.c.l.bf16 %v3773_v7  ;;  %v2598_v11 = vunpack.c.h.bf16 %v3772_v59 }
 0x261   : > { %v2522_v48 = vadd.s32 128, %v3594_v57  ;;  %v3596_v1 = vcvt.f32.s32 %v3595_v51  ;;  %v2695_v51 = vadd.s32 128, %v3670_v5  ;;  %v2596_v24 = vunpack.c.h.bf16 %v3773_v7 }
 0x262   : > { %v2556_v23 = vshra.s32 %v2524_v22, 8  ;;  %v2525_v52 = vadd.s32 128, %v3600_v60  ;;  %v2633_v5 = vmul.f32 %v4858_v35, %v2595_v28 }
 0x263   : > { %v2554_v37 = vshra.s32 %v2522_v48, 8  ;;  %v2523_v17 = vadd.s32 128, %v3596_v1  ;;  %v2696_v1 = vadd.s32 128, %v3672_v30 }
 0x264   : > { %v2755_v9 = vadd.s32 %v2723_v10, %v2556_v23  ;;  %v2557_v26 = vshra.s32 %v2525_v52, 8  ;;  %v2693_v10 = vadd.s32 128, %v3666_v12 }
 0x265   : > { %v2753_v6 = vadd.s32 %v2721_v27, %v2554_v37  ;;  %v2555_v54 = vshra.s32 %v2523_v17, 8  ;;  %v2727_v17 = vshra.s32 %v2695_v51, 8 }
 0x266   : > { %v2787_v33 = vcvt.s32.f32 %v2755_v9  ;;  %v2756_v19 = vadd.s32 %v2724_v21, %v2557_v26  ;;  %v2694_v21 = vadd.s32 128, %v3668_v15  ;;  %v2725_v26 = vshra.s32 %v2693_v10, 8 }
 0x267   : > { %v2785_v55 = vcvt.s32.f32 %v2753_v6  ;;  %v2754_v13 = vadd.s32 %v2722_v45, %v2555_v54 }
 0x268   : > { %v3223_v32 = vclamps-f32 %v2787_v33, 127.0  ;;  %v2788_v53 = vcvt.s32.f32 %v2756_v19  ;;  %v2728_v19 = vshra.s32 %v2696_v1, 8 }
 0x269   : > { %v3221_v62 = vclamps-f32 %v2785_v55, 127.0  ;;  %v2786_v8 = vcvt.s32.f32 %v2754_v13 }
 0x26a   : > { %v3289_v31 = vpack.c.bf16 %v3223_v32, %v3223_v32  ;;  %v3224_v34 = vclamps-f32 %v2788_v53, 127.0  ;;  %v2726_v32 = vshra.s32 %v2694_v21, 8 }
 0x26b   : > { %v3287_v18 = vpack.c.bf16 %v3221_v62, %v3221_v62  ;;  %v3222_v46 = vclamps-f32 %v2786_v8, 127.0 }
 0x26c   : > { %3012 = vst.msk [vmem:[%s4888_s23 + $0x18] sm:$0xf] %vm3005_vm3, %v3289_v31  ;;  %v3290_v16 = vpack.c.bf16 %v3224_v34, %v3224_v34 }
 0x26d   : > { %3010 = vst.msk [vmem:[%s4888_s23 + $0x10] sm:$0xf] %vm3005_vm3, %v3287_v18  ;;  %v3288_v58 = vpack.c.bf16 %v3222_v46, %v3222_v46 }
 0x26e   : > { %3013 = vst.msk [vmem:[%s4888_s23 + $0x1c] sm:$0xf] %vm3005_vm3, %v3290_v16 }
 0x26f   : > { %3011 = vst.msk [vmem:[%s4888_s23 + $0x14] sm:$0xf] %vm3005_vm3, %v3288_v58 }
 0x276   : > { %v3419_v25 = vpop.f32.mrb[4].mxu1 }
 0x277   : > { %v2425_v61 = vmul.f32 %v3419_v25, %v4868_v2  ;;  %v2313_v40 = vpop.f32.mrb[5].mxu1 }
 0x278   : > { %v2423_v43 = vmul.f32 %v4868_v2, %v2313_v40  ;;  %v3420_v3 = vpop.f32.mrb[6].mxu1  ;;  %v2636_v40 = vmul.f32 %v4858_v35, %v2598_v11  ;;  %v3774_v11 = vld [vmem:[%s3875_s27 + $0x48] sm:$0xff]  }
 0x279   : > { %v2464_v0 = vadd.f32 %v4873_v4, %v2425_v61  ;;  %v2426_v29 = vmul.f32 %v3420_v3, %v4868_v2  ;;  %v2316_v42 = vpop.f32.mrb[7].mxu1  ;;  %v2635_v61 = vmul.f32 %v4858_v35, %v2597_v14  ;;  %v3673_v3 = vtrunc.f32 %v2633_v5  ;;  %v3775_v5 = vld [vmem:[%s3875_s27 + $0x40] sm:$0xff]  }
 0x27a   : > { %v2462_v36 = vadd.f32 %v4873_v4, %v2423_v43  ;;  %v2424_v63 = vmul.f32 %v4868_v2, %v2316_v42  ;;  %v2634_v43 = vmul.f32 %v4858_v35, %v2596_v24 }
 0x27b   : > { %v3605_v57 = vtrunc.f32 %v2464_v0  ;;  %v2465_v41 = vadd.f32 %v4873_v4, %v2426_v29  ;;  %v3677_v12 = vtrunc.f32 %v2635_v61  ;;  %v3679_v0 = vtrunc.f32 %v2636_v40 }
 0x27c   : > { %v3601_v22 = vtrunc.f32 %v2462_v36  ;;  %v2463_v60 = vadd.f32 %v4873_v4, %v2424_v63  ;;  %v3675_v30 = vtrunc.f32 %v2634_v43  ;;  %v2599_v40 = vunpack.c.l.bf16 %v3775_v5 }
 0x27d   : > { %v3606_v48 = vcvt.f32.s32 %v3605_v57  ;;  %v3607_v27 = vtrunc.f32 %v2465_v41  ;;  %v3678_v36 = vcvt.f32.s32 %v3677_v12  ;;  %v3674_v57 = vcvt.f32.s32 %v3673_v3 }
 0x27e   : > { %v3602_v23 = vcvt.f32.s32 %v3601_v22  ;;  %v3603_v52 = vtrunc.f32 %v2463_v60  ;;  %v3680_v10 = vcvt.f32.s32 %v3679_v0  ;;  %v3676_v1 = vcvt.f32.s32 %v3675_v30 }
 0x27f   : > { %v2528_v37 = vadd.s32 128, %v3606_v48  ;;  %v3608_v45 = vcvt.f32.s32 %v3607_v27  ;;  %v2602_v3 = vunpack.c.h.bf16 %v3774_v11 }
 0x280   : > { %v2526_v9 = vadd.s32 128, %v3602_v23  ;;  %v3604_v6 = vcvt.f32.s32 %v3603_v52  ;;  %v2699_v52 = vadd.s32 128, %v3678_v36  ;;  %v2637_v36 = vmul.f32 %v4858_v35, %v2599_v40 }
 0x281   : > { %v2560_v54 = vshra.s32 %v2528_v37, 8  ;;  %v2529_v33 = vadd.s32 128, %v3608_v45 }
 0x282   : > { %v2558_v55 = vshra.s32 %v2526_v9, 8  ;;  %v2527_v13 = vadd.s32 128, %v3604_v6  ;;  %v2700_v6 = vadd.s32 128, %v3680_v10 }
 0x283   : > { %v2759_v53 = vadd.s32 %v2727_v17, %v2560_v54  ;;  %v2561_v62 = vshra.s32 %v2529_v33, 8  ;;  %v2697_v17 = vadd.s32 128, %v3674_v57 }
 0x284   : > { %v2757_v8 = vadd.s32 %v2725_v26, %v2558_v55  ;;  %v2559_v31 = vshra.s32 %v2527_v13, 8  ;;  %v2731_v13 = vshra.s32 %v2699_v52, 8 }
 0x285   : > { %v2791_v34 = vcvt.s32.f32 %v2759_v53  ;;  %v2760_v47 = vadd.s32 %v2728_v19, %v2561_v62  ;;  %v2698_v19 = vadd.s32 128, %v3676_v1  ;;  %v2729_v62 = vshra.s32 %v2697_v17, 8 }
 0x286   : > { %v2789_v50 = vcvt.s32.f32 %v2757_v8  ;;  %v2758_v18 = vadd.s32 %v2726_v32, %v2559_v31 }
 0x287   : > { %v3227_v46 = vclamps-f32 %v2791_v34, 127.0  ;;  %v2792_v56 = vcvt.s32.f32 %v2760_v47  ;;  %v2732_v47 = vshra.s32 %v2700_v6, 8 }
 0x288   : > { %v3225_v39 = vclamps-f32 %v2789_v50, 127.0  ;;  %v2790_v16 = vcvt.s32.f32 %v2758_v18 }
 0x289   : > { %v3293_v44 = vpack.c.bf16 %v3227_v46, %v3227_v46  ;;  %v3228_v58 = vclamps-f32 %v2792_v56, 127.0  ;;  %v2730_v46 = vshra.s32 %v2698_v19, 8 }
 0x28a   : > { %v3291_v38 = vpack.c.bf16 %v3225_v39, %v3225_v39  ;;  %v3226_v49 = vclamps-f32 %v2790_v16, 127.0 }
 0x28b   : > { %3016 = vst.msk [vmem:[%s4888_s23 + $0x28] sm:$0xf] %vm3005_vm3, %v3293_v44  ;;  %v3294_v20 = vpack.c.bf16 %v3228_v58, %v3228_v58 }
 0x28c   : > { %3014 = vst.msk [vmem:[%s4888_s23 + $0x20] sm:$0xf] %vm3005_vm3, %v3291_v38  ;;  %v3292_v25 = vpack.c.bf16 %v3226_v49, %v3226_v49 }
 0x28d   : > { %3017 = vst.msk [vmem:[%s4888_s23 + $0x2c] sm:$0xf] %vm3005_vm3, %v3294_v20 }
 0x28e   : > { %3015 = vst.msk [vmem:[%s4888_s23 + $0x24] sm:$0xf] %vm3005_vm3, %v3292_v25  ;;  %v2601_v25 = vunpack.c.l.bf16 %v3774_v11 }
 0x295   : > { %v3423_v29 = vpop.f32.mrb[8].mxu1 }
 0x296   : > { %v2429_v42 = vmul.f32 %v3423_v29, %v4868_v2  ;;  %v2329_v63 = vpop.f32.mrb[9].mxu1  ;;  %v2600_v29 = vunpack.c.h.bf16 %v3775_v5 }
 0x297   : > { %v2427_v15 = vmul.f32 %v4868_v2, %v2329_v63  ;;  %v3424_v51 = vpop.f32.mrb[10].mxu1  ;;  %v2640_v63 = vmul.f32 %v4858_v35, %v2602_v3 }
 0x298   : > { %v2468_v41 = vadd.f32 %v4873_v4, %v2429_v42  ;;  %v2430_v22 = vmul.f32 %v3424_v51, %v4868_v2  ;;  %v2332_v60 = vpop.f32.mrb[11].mxu1  ;;  %v2639_v42 = vmul.f32 %v4858_v35, %v2601_v25  ;;  %v3681_v51 = vtrunc.f32 %v2637_v36 }
 0x299   : > { %v2466_v48 = vadd.f32 %v4873_v4, %v2427_v15  ;;  %v2428_v27 = vmul.f32 %v4868_v2, %v2332_v60  ;;  %v2638_v15 = vmul.f32 %v4858_v35, %v2600_v29 }
 0x29a   : > { %v3613_v23 = vtrunc.f32 %v2468_v41  ;;  %v2469_v21 = vadd.f32 %v4873_v4, %v2430_v22  ;;  %v3685_v57 = vtrunc.f32 %v2639_v42  ;;  %v3687_v41 = vtrunc.f32 %v2640_v63 }
 0x29b   : > { %v3609_v37 = vtrunc.f32 %v2466_v48  ;;  %v2467_v45 = vadd.f32 %v4873_v4, %v2428_v27  ;;  %v3683_v10 = vtrunc.f32 %v2638_v15  ;;  %v3777_v15 = vld [vmem:[%s3875_s27 + $0x50] sm:$0xff]  }
 0x29c   : > { %v3614_v9 = vcvt.f32.s32 %v3613_v23  ;;  %v3615_v26 = vtrunc.f32 %v2469_v21  ;;  %v3686_v48 = vcvt.f32.s32 %v3685_v57  ;;  %v3682_v23 = vcvt.f32.s32 %v3681_v51 }
 0x29d   : > { %v3610_v54 = vcvt.f32.s32 %v3609_v37  ;;  %v3611_v33 = vtrunc.f32 %v2467_v45  ;;  %v3688_v17 = vcvt.f32.s32 %v3687_v41  ;;  %v3684_v6 = vcvt.f32.s32 %v3683_v10 }
 0x29e   : > { %v2532_v55 = vadd.s32 128, %v3614_v9  ;;  %v3616_v32 = vcvt.f32.s32 %v3615_v26  ;;  %v2603_v57 = vunpack.c.l.bf16 %v3777_v15  ;;  %v2604_v10 = vunpack.c.h.bf16 %v3777_v15 }
 0x29f   : > { %v2530_v53 = vadd.s32 128, %v3610_v54  ;;  %v3612_v8 = vcvt.f32.s32 %v3611_v33  ;;  %v2703_v33 = vadd.s32 128, %v3686_v48 }
 0x2a0   : > { %v2564_v31 = vshra.s32 %v2532_v55, 8  ;;  %v2533_v34 = vadd.s32 128, %v3616_v32  ;;  %v2641_v48 = vmul.f32 %v4858_v35, %v2603_v57 }
 0x2a1   : > { %v2562_v50 = vshra.s32 %v2530_v53, 8  ;;  %v2531_v18 = vadd.s32 128, %v3612_v8  ;;  %v2704_v8 = vadd.s32 128, %v3688_v17 }
 0x2a2   : > { %v2763_v56 = vadd.s32 %v2731_v13, %v2564_v31  ;;  %v2565_v39 = vshra.s32 %v2533_v34, 8  ;;  %v2701_v13 = vadd.s32 128, %v3682_v23 }
 0x2a3   : > { %v2761_v16 = vadd.s32 %v2729_v62, %v2562_v50  ;;  %v2563_v44 = vshra.s32 %v2531_v18, 8  ;;  %v2735_v18 = vshra.s32 %v2703_v33, 8 }
 0x2a4   : > { %v2795_v58 = vcvt.s32.f32 %v2763_v56  ;;  %v2764_v59 = vadd.s32 %v2732_v47, %v2565_v39  ;;  %v2702_v47 = vadd.s32 128, %v3684_v6  ;;  %v2733_v39 = vshra.s32 %v2701_v13, 8 }
 0x2a5   : > { %v2793_v14 = vcvt.s32.f32 %v2761_v16  ;;  %v2762_v38 = vadd.s32 %v2730_v46, %v2563_v44 }
 0x2a6   : > { %v3231_v49 = vclamps-f32 %v2795_v58, 127.0  ;;  %v2796_v7 = vcvt.s32.f32 %v2764_v59  ;;  %v2736_v59 = vshra.s32 %v2704_v8, 8 }
 0x2a7   : > { %v3229_v28 = vclamps-f32 %v2793_v14, 127.0  ;;  %v2794_v20 = vcvt.s32.f32 %v2762_v38 }
 0x2a8   : > { %v3297_v24 = vpack.c.bf16 %v3231_v49, %v3231_v49  ;;  %v3232_v61 = vclamps-f32 %v2796_v7, 127.0  ;;  %v2734_v49 = vshra.s32 %v2702_v47, 8 }
 0x2a9   : > { %v3295_v43 = vpack.c.bf16 %v3229_v28, %v3229_v28  ;;  %v3230_v12 = vclamps-f32 %v2794_v20, 127.0 }
 0x2aa   : > { %3020 = vst.msk [vmem:[%s4888_s23 + $0x38] sm:$0xf] %vm3005_vm3, %v3297_v24  ;;  %v3298_v0 = vpack.c.bf16 %v3232_v61, %v3232_v61 }
 0x2ab   : > { %3018 = vst.msk [vmem:[%s4888_s23 + $0x30] sm:$0xf] %vm3005_vm3, %v3295_v43  ;;  %v3296_v30 = vpack.c.bf16 %v3230_v12, %v3230_v12 }
 0x2ac   : > { %3021 = vst.msk [vmem:[%s4888_s23 + $0x3c] sm:$0xf] %vm3005_vm3, %v3298_v0 }
 0x2ad   : > { %3019 = vst.msk [vmem:[%s4888_s23 + $0x34] sm:$0xf] %vm3005_vm3, %v3296_v30  ;;  %v3776_v30 = vld [vmem:[%s3875_s27 + $0x58] sm:$0xff]  }
 0x2ae   : > { %v2605_v42 = vunpack.c.l.bf16 %v3776_v30  ;;  %v2606_v41 = vunpack.c.h.bf16 %v3776_v30 }
 0x2b3   : > { %v3427_v22 = vpop.f32.mrb[12].mxu1 }
 0x2b4   : > { %v2433_v60 = vmul.f32 %v3427_v22, %v4868_v2  ;;  %v2345_v27 = vpop.f32.mrb[13].mxu1 }
 0x2b5   : > { %v2431_v1 = vmul.f32 %v4868_v2, %v2345_v27  ;;  %v3428_v52 = vpop.f32.mrb[14].mxu1  ;;  %v2644_v27 = vmul.f32 %v4858_v35, %v2606_v41  ;;  %v3778_v41 = vld [vmem:[%s3875_s27 + $0x68] sm:$0xff]  }
 0x2b6   : > { %v2472_v21 = vadd.f32 %v4873_v4, %v2433_v60  ;;  %v2434_v37 = vmul.f32 %v3428_v52, %v4868_v2  ;;  %v2348_v45 = vpop.f32.mrb[15].mxu1  ;;  %v2643_v60 = vmul.f32 %v4858_v35, %v2605_v42  ;;  %v3689_v52 = vtrunc.f32 %v2641_v48  ;;  %v3779_v48 = vld [vmem:[%s3875_s27 + $0x60] sm:$0xff]  }
 0x2b7   : > { %v2470_v9 = vadd.f32 %v4873_v4, %v2431_v1  ;;  %v2432_v26 = vmul.f32 %v4868_v2, %v2348_v45  ;;  %v2642_v1 = vmul.f32 %v4858_v35, %v2604_v10 }
 0x2b8   : > { %v3621_v54 = vtrunc.f32 %v2472_v21  ;;  %v2473_v19 = vadd.f32 %v4873_v4, %v2434_v37  ;;  %v3693_v23 = vtrunc.f32 %v2643_v60  ;;  %v3695_v21 = vtrunc.f32 %v2644_v27 }
 0x2b9   : > { %v3617_v55 = vtrunc.f32 %v2470_v9  ;;  %v2471_v32 = vadd.f32 %v4873_v4, %v2432_v26  ;;  %v3691_v17 = vtrunc.f32 %v2642_v1  ;;  %v2607_v27 = vunpack.c.l.bf16 %v3779_v48 }
 0x2ba   : > { %v3622_v53 = vcvt.f32.s32 %v3621_v54  ;;  %v3623_v62 = vtrunc.f32 %v2473_v19  ;;  %v3694_v9 = vcvt.f32.s32 %v3693_v23  ;;  %v3690_v54 = vcvt.f32.s32 %v3689_v52 }
 0x2bb   : > { %v3618_v31 = vcvt.f32.s32 %v3617_v55  ;;  %v3619_v34 = vtrunc.f32 %v2471_v32  ;;  %v3696_v13 = vcvt.f32.s32 %v3695_v21  ;;  %v3692_v8 = vcvt.f32.s32 %v3691_v17 }
 0x2bc   : > { %v2536_v50 = vadd.s32 128, %v3622_v53  ;;  %v3624_v46 = vcvt.f32.s32 %v3623_v62  ;;  %v2610_v52 = vunpack.c.h.bf16 %v3778_v41 }
 0x2bd   : > { %v2534_v56 = vadd.s32 128, %v3618_v31  ;;  %v3620_v16 = vcvt.f32.s32 %v3619_v34  ;;  %v2707_v34 = vadd.s32 128, %v3694_v9  ;;  %v2645_v9 = vmul.f32 %v4858_v35, %v2607_v27 }
 0x2be   : > { %v2568_v44 = vshra.s32 %v2536_v50, 8  ;;  %v2537_v58 = vadd.s32 128, %v3624_v46 }
 0x2bf   : > { %v2566_v14 = vshra.s32 %v2534_v56, 8  ;;  %v2535_v38 = vadd.s32 128, %v3620_v16  ;;  %v2708_v16 = vadd.s32 128, %v3696_v13 }
 0x2c0   : > { %v2767_v7 = vadd.s32 %v2735_v18, %v2568_v44  ;;  %v2569_v28 = vshra.s32 %v2537_v58, 8  ;;  %v2705_v18 = vadd.s32 128, %v3690_v54 }
 0x2c1   : > { %v2765_v20 = vadd.s32 %v2733_v39, %v2566_v14  ;;  %v2567_v11 = vshra.s32 %v2535_v38, 8  ;;  %v2739_v38 = vshra.s32 %v2707_v34, 8 }
 0x2c2   : > { %v2799_v25 = vcvt.s32.f32 %v2767_v7  ;;  %v2768_v24 = vadd.s32 %v2736_v59, %v2569_v28  ;;  %v2706_v59 = vadd.s32 128, %v3692_v8  ;;  %v2737_v28 = vshra.s32 %v2705_v18, 8 }
 0x2c3   : > { %v2797_v61 = vcvt.s32.f32 %v2765_v20  ;;  %v2766_v5 = vadd.s32 %v2734_v49, %v2567_v11 }
 0x2c4   : > { %v3235_v40 = vclamps-f32 %v2799_v25, 127.0  ;;  %v2800_v43 = vcvt.s32.f32 %v2768_v24  ;;  %v2740_v24 = vshra.s32 %v2708_v16, 8 }
 0x2c5   : > { %v3233_v12 = vclamps-f32 %v2797_v61, 127.0  ;;  %v2798_v3 = vcvt.s32.f32 %v2766_v5 }
 0x2c6   : > { %v3301_v0 = vpack.c.bf16 %v3235_v40, %v3235_v40  ;;  %v3236_v29 = vclamps-f32 %v2800_v43, 127.0  ;;  %v2738_v40 = vshra.s32 %v2706_v59, 8 }
 0x2c7   : > { %v3299_v36 = vpack.c.bf16 %v3233_v12, %v3233_v12  ;;  %v3234_v63 = vclamps-f32 %v2798_v3, 127.0 }
 0x2c8   : > { %3024 = vst.msk [vmem:[%s4888_s23 + $0x48] sm:$0xf] %vm3005_vm3, %v3301_v0  ;;  %v3302_v51 = vpack.c.bf16 %v3236_v29, %v3236_v29 }
 0x2c9   : > { %3022 = vst.msk [vmem:[%s4888_s23 + $0x40] sm:$0xf] %vm3005_vm3, %v3299_v36  ;;  %v3300_v22 = vpack.c.bf16 %v3234_v63, %v3234_v63 }
 0x2ca   : > { %3025 = vst.msk [vmem:[%s4888_s23 + $0x4c] sm:$0xf] %vm3005_vm3, %v3302_v51 }
 0x2cb   : > { %3023 = vst.msk [vmem:[%s4888_s23 + $0x44] sm:$0xf] %vm3005_vm3, %v3300_v22  ;;  %v2609_v22 = vunpack.c.l.bf16 %v3778_v41 }
 0x2d2   : > { %v3431_v37 = vpop.f32.mrb[16].mxu1 }
 0x2d3   : > { %v2437_v45 = vmul.f32 %v3431_v37, %v4868_v2  ;;  %v2361_v26 = vpop.f32.mrb[17].mxu1  ;;  %v2608_v37 = vunpack.c.h.bf16 %v3779_v48  ;;  %v3780_v48 = vld [vmem:[%s3875_s27 + $0x78] sm:$0xff]  }
 0x2d4   : > { %v2435_v6 = vmul.f32 %v4868_v2, %v2361_v26  ;;  %v3432_v33 = vpop.f32.mrb[18].mxu1  ;;  %v2648_v26 = vmul.f32 %v4858_v35, %v2610_v52  ;;  %v2613_v27 = vunpack.c.l.bf16 %v3780_v48  ;;  %v3781_v52 = vld [vmem:[%s3875_s27 + $0x70] sm:$0xff]  }
 0x2d5   : > { %v2476_v19 = vadd.f32 %v4873_v4, %v2437_v45  ;;  %v2438_v55 = vmul.f32 %v3432_v33, %v4868_v2  ;;  %v2364_v32 = vpop.f32.mrb[19].mxu1  ;;  %v2647_v45 = vmul.f32 %v4858_v35, %v2609_v22  ;;  %v3697_v33 = vtrunc.f32 %v2645_v9 }
 0x2d6   : > { %v2474_v53 = vadd.f32 %v4873_v4, %v2435_v6  ;;  %v2436_v62 = vmul.f32 %v4868_v2, %v2364_v32  ;;  %v2646_v6 = vmul.f32 %v4858_v35, %v2608_v37 }
 0x2d7   : > { %v3629_v31 = vtrunc.f32 %v2476_v19  ;;  %v2477_v47 = vadd.f32 %v4873_v4, %v2438_v55  ;;  %v3701_v54 = vtrunc.f32 %v2647_v45  ;;  %v3703_v19 = vtrunc.f32 %v2648_v26 }
 0x2d8   : > { %v3625_v50 = vtrunc.f32 %v2474_v53  ;;  %v2475_v46 = vadd.f32 %v4873_v4, %v2436_v62  ;;  %v3699_v13 = vtrunc.f32 %v2646_v6  ;;  %v2614_v45 = vunpack.c.h.bf16 %v3780_v48 }
 0x2d9   : > { %v3630_v56 = vcvt.f32.s32 %v3629_v31  ;;  %v3631_v39 = vtrunc.f32 %v2477_v47  ;;  %v3702_v53 = vcvt.f32.s32 %v3701_v54  ;;  %v3698_v31 = vcvt.f32.s32 %v3697_v33 }
 0x2da   : > { %v3626_v44 = vcvt.f32.s32 %v3625_v50  ;;  %v3627_v58 = vtrunc.f32 %v2475_v46  ;;  %v3704_v18 = vcvt.f32.s32 %v3703_v19  ;;  %v2612_v6 = vunpack.c.h.bf16 %v3781_v52  ;;  %v3782_v19 = vld [vmem:[%s5062_s10] ss:$0 sm:$0xff] }
 0x2db   : > { %v2540_v14 = vadd.s32 128, %v3630_v56  ;;  %v3632_v49 = vcvt.f32.s32 %v3631_v39  ;;  %v3700_v39 = vcvt.f32.s32 %v3699_v13 }
 0x2dc   : > { %v2538_v7 = vadd.s32 128, %v3626_v44  ;;  %v3628_v20 = vcvt.f32.s32 %v3627_v58  ;;  %v2711_v44 = vadd.s32 128, %v3702_v53  ;;  %v2650_v53 = vmul.f32 %v3782_v19, %v2612_v6 }
 0x2dd   : > { %v2572_v11 = vshra.s32 %v2540_v14, 8  ;;  %v2541_v25 = vadd.s32 128, %v3632_v49  ;;  %v2709_v14 = vadd.s32 128, %v3698_v31 }
 0x2de   : > { %v2570_v61 = vshra.s32 %v2538_v7, 8  ;;  %v2539_v5 = vadd.s32 128, %v3628_v20 }
 0x2df   : > { %v2771_v43 = vadd.s32 %v2739_v38, %v2572_v11  ;;  %v2573_v12 = vshra.s32 %v2541_v25, 8  ;;  %v2710_v25 = vadd.s32 128, %v3700_v39 }
 0x2e0   : > { %v2769_v3 = vadd.s32 %v2737_v28, %v2570_v61  ;;  %v2571_v0 = vshra.s32 %v2539_v5, 8  ;;  %v2712_v28 = vadd.s32 128, %v3704_v18  ;;  %v2743_v61 = vshra.s32 %v2711_v44, 8  ;;  %v3784_v44 = vld [vmem:[%s5061_s9] ss:$0 sm:$0xff] }
 0x2e1   : > { %v2803_v29 = vcvt.s32.f32 %v2771_v43  ;;  %v2772_v30 = vadd.s32 %v2740_v24, %v2573_v12 }
 0x2e2   : > { %v2801_v42 = vcvt.s32.f32 %v2769_v3  ;;  %v2770_v36 = vadd.s32 %v2738_v40, %v2571_v0  ;;  %v2744_v0 = vshra.s32 %v2712_v28, 8 }
 0x2e3   : > { %v3239_v63 = vclamps-f32 %v2803_v29, 127.0  ;;  %v2804_v15 = vcvt.s32.f32 %v2772_v30 }
 0x2e4   : > { %v3237_v57 = vclamps-f32 %v2801_v42, 127.0  ;;  %v2802_v51 = vcvt.s32.f32 %v2770_v36 }
 0x2e5   : > { %v3305_v10 = vpack.c.bf16 %v3239_v63, %v3239_v63  ;;  %v3240_v60 = vclamps-f32 %v2804_v15, 127.0 }
 0x2e6   : > { %v3303_v1 = vpack.c.bf16 %v3237_v57, %v3237_v57  ;;  %v3238_v23 = vclamps-f32 %v2802_v51, 127.0 }
 0x2e7   : > { %3028 = vst.msk [vmem:[%s4888_s23 + $0x58] sm:$0xf] %vm3005_vm3, %v3305_v10  ;;  %v3306_v21 = vpack.c.bf16 %v3240_v60, %v3240_v60 }
 0x2e8   : > { %3026 = vst.msk [vmem:[%s4888_s23 + $0x50] sm:$0xf] %vm3005_vm3, %v3303_v1  ;;  %v3304_v17 = vpack.c.bf16 %v3238_v23, %v3238_v23 }
 0x2e9   : > { %3029 = vst.msk [vmem:[%s4888_s23 + $0x5c] sm:$0xf] %vm3005_vm3, %v3306_v21  ;;  %v2611_v21 = vunpack.c.l.bf16 %v3781_v52 }
 0x2ea   : > { %3027 = vst.msk [vmem:[%s4888_s23 + $0x54] sm:$0xf] %vm3005_vm3, %v3304_v17 }
 0x2eb   : > { %v2649_v13 = vmul.f32 %v3782_v19, %v2611_v21 }
 0x2f0   : > { %v3435_v55 = vpop.f32.mrb[20].mxu1 }
 0x2f1   : > { %v2441_v32 = vmul.f32 %v3435_v55, %v4868_v2  ;;  %v2377_v62 = vpop.f32.mrb[21].mxu1  ;;  %v2651_v55 = vmul.f32 %v3782_v19, %v2613_v27 }
 0x2f2   : > { %v2439_v8 = vmul.f32 %v4868_v2, %v2377_v62  ;;  %v3436_v34 = vpop.f32.mrb[22].mxu1 }
 0x2f3   : > { %v2480_v47 = vadd.f32 %v4873_v4, %v2441_v32  ;;  %v2442_v50 = vmul.f32 %v3436_v34, %v4868_v2  ;;  %v2380_v46 = vpop.f32.mrb[23].mxu1  ;;  %v2652_v32 = vmul.f32 %v3782_v19, %v2614_v45  ;;  %v3709_v62 = vtrunc.f32 %v2651_v55 }
 0x2f4   : > { %v2478_v35 = vadd.f32 %v4873_v4, %v2439_v8  ;;  %v2440_v56 = vmul.f32 %v4868_v2, %v2380_v46  ;;  %v2741_v2 = vshra.s32 %v2709_v14, 8  ;;  %v3705_v8 = vtrunc.f32 %v2649_v13 }
 0x2f5   : > { %v3637_v16 = vtrunc.f32 %v2480_v47  ;;  %v2481_v58 = vadd.f32 %v4873_v4, %v2442_v50  ;;  %v3711_v31 = vtrunc.f32 %v2652_v32  ;;  %v3707_v47 = vtrunc.f32 %v2650_v53  ;;  %v3783_v50 = vld [vmem:[%s5060_s8] ss:$0 sm:$0xff] }
 0x2f6   : > { %v3633_v59 = vtrunc.f32 %v2478_v35  ;;  %v2479_v38 = vadd.f32 %v4873_v4, %v2440_v56  ;;  %v2742_v4 = vshra.s32 %v2710_v25, 8  ;;  %v3710_v46 = vcvt.f32.s32 %v3709_v62 }
 0x2f7   : > { %v3638_v49 = vcvt.f32.s32 %v3637_v16  ;;  %v3639_v7 = vtrunc.f32 %v2481_v58  ;;  %v3706_v39 = vcvt.f32.s32 %v3705_v8  ;;  %v3712_v14 = vcvt.f32.s32 %v3711_v31 }
 0x2f8   : > { %v3634_v20 = vcvt.f32.s32 %v3633_v59  ;;  %v3635_v11 = vtrunc.f32 %v2479_v38  ;;  %v3708_v28 = vcvt.f32.s32 %v3707_v47 }
 0x2f9   : > { %v2544_v24 = vadd.s32 128, %v3638_v49  ;;  %v3640_v5 = vcvt.f32.s32 %v3639_v7 }
 0x2fa   : > { %v2542_v40 = vadd.s32 128, %v3634_v20  ;;  %v3636_v43 = vcvt.f32.s32 %v3635_v11  ;;  %v2715_v11 = vadd.s32 128, %v3710_v46 }
 0x2fb   : > { %v2576_v12 = vshra.s32 %v2544_v24, 8  ;;  %v2545_v3 = vadd.s32 128, %v3640_v5 }
 0x2fc   : > { %v2574_v29 = vshra.s32 %v2542_v40, 8  ;;  %v2543_v30 = vadd.s32 128, %v3636_v43  ;;  %v2716_v43 = vadd.s32 128, %v3712_v14 }
 0x2fd   : > { %v2775_v42 = vadd.s32 %v2743_v61, %v2576_v12  ;;  %v2577_v36 = vshra.s32 %v2545_v3, 8  ;;  %v2713_v61 = vadd.s32 128, %v3706_v39 }
 0x2fe   : > { %v2773_v63 = vadd.s32 %v2741_v2, %v2574_v29  ;;  %v2575_v15 = vshra.s32 %v2543_v30, 8  ;;  %v2747_v30 = vshra.s32 %v2715_v11, 8 }
 0x2ff   : > { %v2807_v57 = vcvt.s32.f32 %v2775_v42  ;;  %v2776_v51 = vadd.s32 %v2744_v0, %v2577_v36  ;;  %v2714_v0 = vadd.s32 128, %v3708_v28  ;;  %v2745_v36 = vshra.s32 %v2713_v61, 8 }
 0x300   : > { %v2805_v41 = vcvt.s32.f32 %v2773_v63  ;;  %v2774_v22 = vadd.s32 %v2742_v4, %v2575_v15 }
 0x301   : > { %v3243_v10 = vclamps-f32 %v2807_v57, 127.0  ;;  %v2808_v60 = vcvt.s32.f32 %v2776_v51  ;;  %v2748_v51 = vshra.s32 %v2716_v43, 8 }
 0x302   : > { %v3241_v1 = vclamps-f32 %v2805_v41, 127.0  ;;  %v2806_v23 = vcvt.s32.f32 %v2774_v22 }
 0x303   : > { %v3309_v37 = vpack.c.bf16 %v3243_v10, %v3243_v10  ;;  %v3244_v17 = vclamps-f32 %v2808_v60, 127.0  ;;  %v2746_v10 = vshra.s32 %v2714_v0, 8 }
 0x304   : > { %v3307_v9 = vpack.c.bf16 %v3241_v1, %v3241_v1  ;;  %v3242_v26 = vclamps-f32 %v2806_v23, 127.0 }
 0x305   : > { %3032 = vst.msk [vmem:[%s4888_s23 + $0x68] sm:$0xf] %vm3005_vm3, %v3309_v37  ;;  %v3310_v54 = vpack.c.bf16 %v3244_v17, %v3244_v17 }
 0x306   : > { %3030 = vst.msk [vmem:[%s4888_s23 + $0x60] sm:$0xf] %vm3005_vm3, %v3307_v9  ;;  %v3308_v33 = vpack.c.bf16 %v3242_v26, %v3242_v26 }
 0x307   : > { %3033 = vst.msk [vmem:[%s4888_s23 + $0x6c] sm:$0xf] %vm3005_vm3, %v3310_v54 }
 0x308   : > { %3031 = vst.msk [vmem:[%s4888_s23 + $0x64] sm:$0xf] %vm3005_vm3, %v3308_v33 }
 0x30d   : > { %v3439_v34 = vpop.f32.mrb[24].mxu1 }
 0x30e   : > { %v2445_v18 = vmul.f32 %v3783_v50, %v3439_v34  ;;  %v2393_v35 = vpop.f32.mrb[25].mxu1 }
 0x30f   : > { %v2443_v56 = vmul.f32 %v3783_v50, %v2393_v35  ;;  %v3440_v16 = vpop.f32.mrb[26].mxu1 }
 0x310   : > { %v2484_v58 = vadd.f32 %v3784_v44, %v2445_v18  ;;  %v2446_v59 = vmul.f32 %v3783_v50, %v3440_v16  ;;  %v2396_v38 = vpop.f32.mrb[27].mxu1 }
 0x311   : > { %v2482_v49 = vadd.f32 %v3784_v44, %v2443_v56  ;;  %v2444_v7 = vmul.f32 %v3783_v50, %v2396_v38 }
 0x312   : > { %v3645_v20 = vtrunc.f32 %v2484_v58  ;;  %v2485_v25 = vadd.f32 %v3784_v44, %v2446_v59 }
 0x313   : > { %v3641_v24 = vtrunc.f32 %v2482_v49  ;;  %v2483_v5 = vadd.f32 %v3784_v44, %v2444_v7 }
 0x314   : > { %v3646_v40 = vcvt.f32.s32 %v3645_v20  ;;  %v3647_v2 = vtrunc.f32 %v2485_v25 }
 0x315   : > { %v3642_v12 = vcvt.f32.s32 %v3641_v24  ;;  %v3643_v3 = vtrunc.f32 %v2483_v5 }
 0x316   : > { %v2548_v29 = vadd.s32 128, %v3646_v40  ;;  %v3648_v4 = vcvt.f32.s32 %v3647_v2 }
 0x317   : > { %v2546_v42 = vadd.s32 128, %v3642_v12  ;;  %v3644_v63 = vcvt.f32.s32 %v3643_v3 }
 0x318   : > { %v2580_v15 = vshra.s32 %v2548_v29, 8  ;;  %v2549_v57 = vadd.s32 128, %v3648_v4 }
 0x319   : > { %v2578_v41 = vshra.s32 %v2546_v42, 8  ;;  %v2547_v22 = vadd.s32 128, %v3644_v63 }
 0x31a   : > { %v2779_v60 = vadd.s32 %v2747_v30, %v2580_v15  ;;  %v2581_v48 = vshra.s32 %v2549_v57, 8 }
 0x31b   : > { %v2777_v27 = vadd.s32 %v2745_v36, %v2578_v41  ;;  %v2579_v1 = vshra.s32 %v2547_v22, 8 }
 0x31c   : > { %v2811_v23 = vcvt.s32.f32 %v2779_v60  ;;  %v2780_v52 = vadd.s32 %v2748_v51, %v2581_v48 }
 0x31d   : > { %v2809_v21 = vcvt.s32.f32 %v2777_v27  ;;  %v2778_v37 = vadd.s32 %v2746_v10, %v2579_v1 }
 0x31e   : > { %v3247_v17 = vclamps-f32 %v2811_v23, 127.0  ;;  %v2812_v45 = vcvt.s32.f32 %v2780_v52 }
 0x31f   : > { %v3245_v9 = vclamps-f32 %v2809_v21, 127.0  ;;  %v2810_v26 = vcvt.s32.f32 %v2778_v37 }
 0x320   : > { %v3313_v6 = vpack.c.bf16 %v3247_v17, %v3247_v17  ;;  %v3248_v54 = vclamps-f32 %v2812_v45, 127.0 }
 0x321   : > { %v3311_v33 = vpack.c.bf16 %v3245_v9, %v3245_v9  ;;  %v3246_v19 = vclamps-f32 %v2810_v26, 127.0 }
 0x322   : > { %3036 = vst.msk [vmem:[%s4888_s23 + $0x78] sm:$0xf] %vm3005_vm3, %v3313_v6  ;;  %v3314_v55 = vpack.c.bf16 %v3248_v54, %v3248_v54 }
 0x323   : > { %3034 = vst.msk [vmem:[%s4888_s23 + $0x70] sm:$0xf] %vm3005_vm3, %v3311_v33  ;;  %v3312_v13 = vpack.c.bf16 %v3246_v19, %v3246_v19 }
 0x324   : > { %3037 = vst.msk [vmem:[%s4888_s23 + $0x7c] sm:$0xf] %vm3005_vm3, %v3314_v55 }
 0x325   : > { %3035 = vst.msk [vmem:[%s4888_s23 + $0x74] sm:$0xf] %vm3005_vm3, %v3312_v13 }
 0x326 PF: > { %s21_s17 = sadd.s32 1, %s3791_s17  }
 0x327   : > { %p18_p4 = scmp.ge.s32.totalorder %s21_s17, 4  }
 0x329   :  { %20 = sbr.rel (!%p18_p4) target bundleno = 1 (0x1), region = 94 }

</bundles_post_ra>
